<compile_context>
chip_gen: v7x
topology: tpu7x:2x2x1
jax: 0.10.0
libtpu: 0.0.40
codegen_flags: <defaults>
</compile_context>

<pallas_src>
import jax
import jax.numpy as jnp
from jax import lax
from jax.experimental import pallas as pl
from jax.experimental.pallas import tpu as pltpu


# Padding pixels (when H*W is not a multiple of the lane chunk): label 0, logit -1e30
# => error = 1 - 1e30 << 0, so they never rank before a real pixel, do not change the
# foreground total, and contribute exactly 0 to the loss (relu(error) == 0).
_PAD_LOGIT = -1e30


def _lovasz_hinge_kernel(logits_row_ref, labels_row_ref,
                         logits_col_ref, labels_col_ref, labels_colchunk_ref,
                         out_ref, acc_ref):
    j = pl.program_id(1)
    num_j = pl.num_programs(1)
    p_pad = acc_ref.shape[0]
    tj = logits_row_ref.shape[2]

    @pl.when(j == 0)
    def _init():
        acc_ref[...] = jnp.zeros_like(acc_ref)

    # Column layout (the "i" axis of the pairwise mask): full image, (P, 1), f32.
    log_col = logits_col_ref[0].astype(jnp.float32)               # (P, 1)
    gt_col = labels_col_ref[0].astype(jnp.float32)                # (P, 1)
    err_col = 1.0 - log_col * (2.0 * gt_col - 1.0)                # (P, 1)

    # Row layout (the "j" axis): current lane chunk, (1, Tj), f32.
    # Same arithmetic as err_col -> bitwise-identical values, so ties are exact.
    log_row = logits_row_ref[0].astype(jnp.float32)               # (1, Tj)
    gt_row = labels_row_ref[0].astype(jnp.float32)                # (1, Tj)
    err_row = 1.0 - log_row * (2.0 * gt_row - 1.0)                # (1, Tj)

    # leq[i, jj] = 1 iff global pixel (j*Tj + jj) sorts at-or-before pixel i
    # (descending errors, stable index tie-break).  Emit as exact 0/1 bf16.
    ii = lax.broadcasted_iota(jnp.int32, (p_pad, tj), 0)
    jj = lax.broadcasted_iota(jnp.int32, (p_pad, tj), 1) + j * tj
    leq = jnp.where(
        (err_row > err_col) | ((err_row == err_col) & (jj <= ii)),
        1.0, 0.0,
    ).astype(jnp.bfloat16)                                        # (P, Tj)

    # One MXU matmul gives both row reductions:
    #   rhs column 0 = ones -> count (rank + 1); rhs column 1 = gt -> cumulative gt.
    gt_chunk_col = labels_colchunk_ref[0].astype(jnp.float32)     # (Tj, 1)
    lane = lax.broadcasted_iota(jnp.int32, (tj, 128), 1)
    rhs = jnp.where(lane == 0, 1.0,
                    jnp.where(lane == 1, gt_chunk_col, 0.0)).astype(jnp.bfloat16)
    acc_ref[...] += jnp.dot(leq, rhs, preferred_element_type=jnp.float32)  # (P, 128)

    @pl.when(j == num_j - 1)
    def _epilogue():
        acc = acc_ref[...]
        count = acc[:, 0:1]                                       # (P, 1) rank + 1
        cumgt = acc[:, 1:2]                                       # (P, 1) cumsum(gt_sorted)
        cumneg = count - cumgt                                    # cumsum(1 - gt_sorted)
        gts = jnp.sum(gt_col, keepdims=True)                      # (1, 1) foreground total

        # lovasz_grad: jaccard[r] - jaccard[r-1] (jaccard[-1] := 0 via count == 1).
        jacc_cur = 1.0 - (gts - cumgt) / (gts + cumneg)
        cumgt_prev = cumgt - gt_col
        cumneg_prev = cumneg - (1.0 - gt_col)
        denom_prev = gts + cumneg_prev
        safe_denom = jnp.where(denom_prev == 0.0, 1.0, denom_prev)
        jacc_prev = jnp.where(count <= 1.0, 0.0,
                              1.0 - (gts - cumgt_prev) / safe_denom)
        grad = jacc_cur - jacc_prev                               # (P, 1)

        loss = jnp.sum(jnp.maximum(err_col, 0.0) * grad, keepdims=True)  # (1, 1)
        out_ref[...] = jnp.broadcast_to(loss[:, :, None], (1, 1, 128))


def lovasz_hinge_loss(inp, target, *, tj=None):
    """Matches LovaszHingeLoss.forward(input, target): NCHW, C == 1, per_image=True."""
    inp = jnp.squeeze(inp, axis=1)          # (N, H, W)
    target = jnp.squeeze(target, axis=1)    # (N, H, W)
    N = int(inp.shape[0])
    P = int(inp.shape[1]) * int(inp.shape[2])

    logits = inp.reshape(N, P).astype(jnp.float32)
    labels = target.reshape(N, P).astype(jnp.float32)

    # Pick the lane-chunk Tj (multiple of 128) so the dominant (P_pad, Tj) temporaries
    # stay well under the scoped VMEM limit on every generation (v7x: 64 MiB physical).
    p128 = ((P + 127) // 128) * 128
    if tj is None:
        temp_budget = 12 * 1024 * 1024      # bytes for (P_pad, Tj) temporaries
        bytes_per_elem = 10                 # bf16 leq + f32/int compare temps (conservative)
        tj = 128
        for cand in (1024, 512, 256, 128):
            if cand <= p128 and p128 * cand * bytes_per_elem <= temp_budget:
                tj = cand
                break
    assert tj % 128 == 0 and tj >= 128, "tj must be a positive multiple of 128"

    num_j = (P + tj - 1) // tj
    P_pad = num_j * tj
    if P_pad != P:
        pad = P_pad - P
        logits = jnp.pad(logits, ((0, 0), (0, pad)), constant_values=_PAD_LOGIT)
        labels = jnp.pad(labels, ((0, 0), (0, pad)), constant_values=0.0)

    logits_row = logits.reshape(N, 1, P_pad)
    labels_row = labels.reshape(N, 1, P_pad)
    logits_col = logits.reshape(N, P_pad, 1)
    labels_col = labels.reshape(N, P_pad, 1)

    # Explicit VMEM budget: accumulator + (P_pad, Tj) temporaries + double-buffered inputs.
    vmem_est = (P_pad * 128 * 4              # f32 accumulator scratch
                + P_pad * tj * 10            # leq + compare temporaries
                + 2 * 2 * (3 * P_pad + 2 * tj) * 4  # double-buffered input blocks
                + 2 * 1024 * 1024)           # headroom
    vmem_limit = int(min(32 * 1024 * 1024, max(8 * 1024 * 1024, vmem_est)))

    cost = pl.CostEstimate(
        flops=int(N * P_pad * P_pad * (8 + 2 * 128)),   # compare/select + MXU reduction
        transcendentals=0,
        bytes_accessed=int(5 * N * P_pad * 4 + N * 128 * 4),
    )

    grid_spec = pltpu.PrefetchScalarGridSpec(
        num_scalar_prefetch=0,
        grid=(N, num_j),                                   # j (reduction) axis last
        in_specs=[
            pl.BlockSpec((1, 1, tj), lambda n, j: (n, 0, j)),       # logits, row chunk
            pl.BlockSpec((1, 1, tj), lambda n, j: (n, 0, j)),       # labels, row chunk
            pl.BlockSpec((1, P_pad, 1), lambda n, j: (n, 0, 0)),    # logits, full column
            pl.BlockSpec((1, P_pad, 1), lambda n, j: (n, 0, 0)),    # labels, full column
            pl.BlockSpec((1, tj, 1), lambda n, j: (n, j, 0)),       # labels, column chunk
        ],
        out_specs=pl.BlockSpec((1, 1, 128), lambda n, j: (n, 0, 0)),
        scratch_shapes=[pltpu.VMEM((P_pad, 128), jnp.float32)],
    )

    per_image = pl.pallas_call(
        _lovasz_hinge_kernel,
        out_shape=jax.ShapeDtypeStruct((N, 1, 128), jnp.float32),
        grid_spec=grid_spec,
        compiler_params=pltpu.CompilerParams(
            dimension_semantics=("parallel", "arbitrary"),  # images shard across TCs on v7x
            vmem_limit_bytes=vmem_limit,
        ),
        cost_estimate=cost,
    )(logits_row, labels_row, logits_col, labels_col, labels_col)

    return jnp.mean(per_image[:, 0, 0])


def _lovasz_hinge_ref(logits, labels):
    """Pure-JAX reference mirroring the PyTorch lovasz_hinge (per_image=True)."""
    def per_image(log, lab):
        signs = 2.0 * lab - 1.0
        errors = 1.0 - log * signs
        perm = jnp.argsort(-errors)
        errors_sorted = errors[perm]
        gt_sorted = lab[perm]
        gts = gt_sorted.sum()
        intersection = gts - jnp.cumsum(gt_sorted)
        union = gts + jnp.cumsum(1.0 - gt_sorted)
        jaccard = 1.0 - intersection / union
        jaccard = jaccard.at[1:].set(jaccard[1:] - jaccard[:-1])
        return jnp.dot(jnp.maximum(errors_sorted, 0.0), jaccard)

    return jnp.mean(jax.vmap(per_image)(logits, labels))


if __name__ == "__main__":
    key = jax.random.PRNGKey(0)
    k1, k2, k3, k4 = jax.random.split(key, 4)

    # Case 1: P = 256, forced Tj = 128 -> 2 lane chunks per image (exercises the
    # j-chunk accumulation path) and a 2-image parallel grid axis.
    N, C, H, W = 2, 1, 16, 16
    x = jax.random.normal(k1, (N, C, H, W), dtype=jnp.float32)
    t = (jax.random.uniform(k2, (N, C, H, W)) > 0.5).astype(jnp.float32)
    loss = jax.block_until_ready(lovasz_hinge_loss(x, t, tj=128))
    ref = _lovasz_hinge_ref(x.reshape(N, -1).astype(jnp.float32),
                            t.reshape(N, -1).astype(jnp.float32))
    assert jnp.allclose(loss, ref, atol=1e-5, rtol=1e-5), (loss, ref)

    # Case 2: P = 144 (not a multiple of 128) -> exercises the lane padding path.
    N2, H2, W2 = 2, 12, 12
    x2 = jax.random.normal(k3, (N2, 1, H2, W2), dtype=jnp.float32)
    t2 = (jax.random.uniform(k4, (N2, 1, H2, W2)) > 0.5).astype(jnp.float32)
    loss2 = jax.block_until_ready(lovasz_hinge_loss(x2, t2))
    ref2 = _lovasz_hinge_ref(x2.reshape(N2, -1).astype(jnp.float32),
                             t2.reshape(N2, -1).astype(jnp.float32))
    assert jnp.allclose(loss2, ref2, atol=1e-5, rtol=1e-5), (loss2, ref2)

    print("KERNEL_OK")
</pallas_src>

<mosaic_0001>
module attributes {stable_mosaic.version = 11 : i64} {
  func.func @_lovasz_hinge_kernel(%arg0: i32, %arg1: i32, %arg2: memref<1x1x128xf32, #tpu.memory_space<vmem>>, %arg3: memref<1x1x128xf32, #tpu.memory_space<vmem>>, %arg4: memref<1x256x1xf32, #tpu.memory_space<vmem>>, %arg5: memref<1x256x1xf32, #tpu.memory_space<vmem>>, %arg6: memref<1x128x1xf32, #tpu.memory_space<vmem>>, %arg7: memref<1x1x128xf32, #tpu.memory_space<vmem>>, %arg8: memref<256x128xf32, #tpu.memory_space<vmem>>) attributes {dimension_semantics = [#tpu.dimension_semantics<parallel>, #tpu.dimension_semantics<arbitrary>], iteration_bounds = array<i64: 2, 2>, scalar_prefetch = 0 : i64, scratch_operands = 1 : i64, tpu.core_type = #tpu.core_type<tc>, window_params = [{transform_indices = @transform_0, window_bounds = array<i64: 1, 1, 128>}, {transform_indices = @transform_1, window_bounds = array<i64: 1, 1, 128>}, {transform_indices = @transform_2, window_bounds = array<i64: 1, 256, 1>}, {transform_indices = @transform_3, window_bounds = array<i64: 1, 256, 1>}, {transform_indices = @transform_4, window_bounds = array<i64: 1, 128, 1>}, {transform_indices = @transform_5, window_bounds = array<i64: 1, 1, 128>}]} {
    %c0_i32 = arith.constant 0 : i32
    %0 = arith.cmpi eq, %arg1, %c0_i32 : i32
    %1 = arith.extui %0 : i1 to i32
    %c0_i32_0 = arith.constant 0 : i32
    %2 = arith.cmpi ne, %1, %c0_i32_0 : i32
    scf.if %2 {
      %cst_32 = arith.constant 0.000000e+00 : f32
      %64 = vector.broadcast %cst_32 : f32 to vector<256x128xf32>
      %c0_33 = arith.constant 0 : index
      %c0_34 = arith.constant 0 : index
      %65 = vector.load %arg8[%c0_33, %c0_34] : memref<256x128xf32, #tpu.memory_space<vmem>>, vector<256x128xf32>
      tpu.vector_store %arg8[%c0_33, %c0_34], %64 {strides = array<i32>} : memref<256x128xf32, #tpu.memory_space<vmem>>, vector<256x128xf32>,
    } else {
    }
    %c0 = arith.constant 0 : index
    %c0_1 = arith.constant 0 : index
    %c0_2 = arith.constant 0 : index
    %3 = vector.load %arg4[%c0, %c0_1, %c0_2] : memref<1x256x1xf32, #tpu.memory_space<vmem>>, vector<1x256x1xf32>
    %4 = vector.shape_cast %3 : vector<1x256x1xf32> to vector<256x1xf32>
    %c0_3 = arith.constant 0 : index
    %c0_4 = arith.constant 0 : index
    %c0_5 = arith.constant 0 : index
    %5 = vector.load %arg5[%c0_3, %c0_4, %c0_5] : memref<1x256x1xf32, #tpu.memory_space<vmem>>, vector<1x256x1xf32>
    %6 = vector.shape_cast %5 : vector<1x256x1xf32> to vector<256x1xf32>
    %cst = arith.constant 2.000000e+00 : f32
    %7 = vector.broadcast %cst : f32 to vector<256x1xf32>
    %8 = arith.mulf %7, %6 : vector<256x1xf32>
    %cst_6 = arith.constant 1.000000e+00 : f32
    %9 = vector.broadcast %cst_6 : f32 to vector<256x1xf32>
    %10 = arith.subf %8, %9 : vector<256x1xf32>
    %11 = arith.mulf %4, %10 : vector<256x1xf32>
    %cst_7 = arith.constant 1.000000e+00 : f32
    %12 = vector.broadcast %cst_7 : f32 to vector<256x1xf32>
    %13 = arith.subf %12, %11 : vector<256x1xf32>
    %c0_8 = arith.constant 0 : index
    %c0_9 = arith.constant 0 : index
    %c0_10 = arith.constant 0 : index
    %14 = vector.load %arg2[%c0_8, %c0_9, %c0_10] : memref<1x1x128xf32, #tpu.memory_space<vmem>>, vector<1x1x128xf32>
    %15 = vector.shape_cast %14 : vector<1x1x128xf32> to vector<1x128xf32>
    %c0_11 = arith.constant 0 : index
    %c0_12 = arith.constant 0 : index
    %c0_13 = arith.constant 0 : index
    %16 = vector.load %arg3[%c0_11, %c0_12, %c0_13] : memref<1x1x128xf32, #tpu.memory_space<vmem>>, vector<1x1x128xf32>
    %17 = vector.shape_cast %16 : vector<1x1x128xf32> to vector<1x128xf32>
    %cst_14 = arith.constant 2.000000e+00 : f32
    %18 = vector.broadcast %cst_14 : f32 to vector<1x128xf32>
    %19 = arith.mulf %18, %17 : vector<1x128xf32>
    %cst_15 = arith.constant 1.000000e+00 : f32
    %20 = vector.broadcast %cst_15 : f32 to vector<1x128xf32>
    %21 = arith.subf %19, %20 : vector<1x128xf32>
    %22 = arith.mulf %15, %21 : vector<1x128xf32>
    %cst_16 = arith.constant 1.000000e+00 : f32
    %23 = vector.broadcast %cst_16 : f32 to vector<1x128xf32>
    %24 = arith.subf %23, %22 : vector<1x128xf32>
    %25 = tpu.iota {dimensions = array<i32: 0>} : vector<256x128xi32>
    %26 = tpu.iota {dimensions = array<i32: 1>} : vector<256x128xi32>
    %c128_i32 = arith.constant 128 : i32
    %27 = arith.muli %arg1, %c128_i32 : i32
    %28 = vector.broadcast %27 : i32 to vector<256x128xi32>
    %29 = arith.addi %26, %28 : vector<256x128xi32>
    %30 = vector.broadcast %24 : vector<1x128xf32> to vector<256x128xf32>
    %31 = vector.broadcast %13 : vector<256x1xf32> to vector<256x128xf32>
    %32 = arith.cmpf ogt, %30, %31 : vector<256x128xf32>
    %33 = vector.broadcast %24 : vector<1x128xf32> to vector<256x128xf32>
    %34 = vector.broadcast %13 : vector<256x1xf32> to vector<256x128xf32>
    %35 = arith.cmpf oeq, %33, %34 : vector<256x128xf32>
    %36 = arith.cmpi sle, %29, %25 : vector<256x128xi32>
    %37 = arith.andi %35, %36 : vector<256x128xi1>
    %38 = arith.ori %32, %37 : vector<256x128xi1>
    %cst_17 = arith.constant 1.000000e+00 : f32
    %cst_18 = arith.constant 0.000000e+00 : f32
    %39 = vector.broadcast %cst_17 : f32 to vector<256x128xf32>
    %40 = vector.broadcast %cst_18 : f32 to vector<256x128xf32>
    %41 = arith.select %38, %39, %40 : vector<256x128xi1>, vector<256x128xf32>
    %42 = arith.truncf %41 : vector<256x128xf32> to vector<256x128xbf16>
    %c0_19 = arith.constant 0 : index
    %c0_20 = arith.constant 0 : index
    %c0_21 = arith.constant 0 : index
    %43 = vector.load %arg6[%c0_19, %c0_20, %c0_21] : memref<1x128x1xf32, #tpu.memory_space<vmem>>, vector<1x128x1xf32>
    %44 = vector.shape_cast %43 : vector<1x128x1xf32> to vector<128x1xf32>
    %45 = tpu.iota {dimensions = array<i32: 1>} : vector<128x128xi32>
    %c0_i32_22 = arith.constant 0 : i32
    %46 = vector.broadcast %c0_i32_22 : i32 to vector<128x128xi32>
    %47 = arith.cmpi eq, %45, %46 : vector<128x128xi32>
    %c1_i32 = arith.constant 1 : i32
    %48 = vector.broadcast %c1_i32 : i32 to vector<128x128xi32>
    %49 = arith.cmpi eq, %45, %48 : vector<128x128xi32>
    %cst_23 = arith.constant 0.000000e+00 : f32
    %50 = vector.shape_cast %44 : vector<128x1xf32> to vector<128x1xf32>
    %51 = vector.broadcast %50 : vector<128x1xf32> to vector<128x128xf32>
    %52 = vector.broadcast %cst_23 : f32 to vector<128x128xf32>
    %53 = arith.select %49, %51, %52 : vector<128x128xi1>, vector<128x128xf32>
    %cst_24 = arith.constant 1.000000e+00 : f32
    %54 = vector.broadcast %cst_24 : f32 to vector<128x128xf32>
    %55 = arith.select %47, %54, %53 : vector<128x128xi1>, vector<128x128xf32>
    %56 = arith.truncf %55 : vector<128x128xf32> to vector<128x128xbf16>
    %c0_25 = arith.constant 0 : index
    %c0_26 = arith.constant 0 : index
    %57 = vector.load %arg8[%c0_25, %c0_26] : memref<256x128xf32, #tpu.memory_space<vmem>>, vector<256x128xf32>
    %cst_27 = arith.constant dense<0.000000e+00> : vector<256x128xf32>
    %58 = tpu.matmul %42, %56, %cst_27 {dimension_numbers = #tpu.dot_dimension_numbers<[1], [0], [0], [1], [0, 0, 1, 1], [], []>} : vector<256x128xbf16>, vector<128x128xbf16>, vector<256x128xf32> -> vector<256x128xf32>
    %59 = arith.addf %57, %58 : vector<256x128xf32>
    %c0_28 = arith.constant 0 : index
    %c0_29 = arith.constant 0 : index
    %60 = vector.load %arg8[%c0_28, %c0_29] : memref<256x128xf32, #tpu.memory_space<vmem>>, vector<256x128xf32>
    tpu.vector_store %arg8[%c0_28, %c0_29], %59 {strides = array<i32>} : memref<256x128xf32, #tpu.memory_space<vmem>>, vector<256x128xf32>,
    %c1_i32_30 = arith.constant 1 : i32
    %61 = arith.cmpi eq, %arg1, %c1_i32_30 : i32
    %62 = arith.extui %61 : i1 to i32
    %c0_i32_31 = arith.constant 0 : i32
    %63 = arith.cmpi ne, %62, %c0_i32_31 : i32
    scf.if %63 {
      %c0_32 = arith.constant 0 : index
      %c0_33 = arith.constant 0 : index
      %64 = vector.load %arg8[%c0_32, %c0_33] : memref<256x128xf32, #tpu.memory_space<vmem>>, vector<256x128xf32>
      %65 = vector.extract_strided_slice %64 {offsets = [0, 0], sizes = [256, 1], strides = [1, 1]} : vector<256x128xf32> to vector<256x1xf32>
      %66 = vector.extract_strided_slice %64 {offsets = [0, 1], sizes = [256, 1], strides = [1, 1]} : vector<256x128xf32> to vector<256x1xf32>
      %67 = arith.subf %65, %66 : vector<256x1xf32>
      %68 = vector.shape_cast %6 : vector<256x1xf32> to vector<1x256x1xf32>
      %cst_34 = arith.constant dense<0.000000e+00> : vector<1xf32>
      %69 = vector.multi_reduction <add>, %68, %cst_34 [1, 2] : vector<1x256x1xf32> to vector<1xf32>
      %70 = vector.shape_cast %69 : vector<1xf32> to vector<1x1x1xf32>
      %71 = vector.extract %70[0, 0, 0] : f32 from vector<1x1x1xf32>
      %72 = vector.broadcast %71 : f32 to vector<1x1xf32>
      %73 = vector.broadcast %72 : vector<1x1xf32> to vector<256x1xf32>
      %74 = arith.subf %73, %66 : vector<256x1xf32>
      %75 = vector.broadcast %72 : vector<1x1xf32> to vector<256x1xf32>
      %76 = arith.addf %75, %67 : vector<256x1xf32>
      %77 = arith.divf %74, %76 : vector<256x1xf32>
      %cst_35 = arith.constant 1.000000e+00 : f32
      %78 = vector.broadcast %cst_35 : f32 to vector<256x1xf32>
      %79 = arith.subf %78, %77 : vector<256x1xf32>
      %80 = arith.subf %66, %6 : vector<256x1xf32>
      %cst_36 = arith.constant 1.000000e+00 : f32
      %81 = vector.broadcast %cst_36 : f32 to vector<256x1xf32>
      %82 = arith.subf %81, %6 : vector<256x1xf32>
      %83 = arith.subf %67, %82 : vector<256x1xf32>
      %84 = vector.broadcast %72 : vector<1x1xf32> to vector<256x1xf32>
      %85 = arith.addf %84, %83 : vector<256x1xf32>
      %cst_37 = arith.constant 0.000000e+00 : f32
      %86 = vector.broadcast %cst_37 : f32 to vector<256x1xf32>
      %87 = arith.cmpf oeq, %85, %86 : vector<256x1xf32>
      %cst_38 = arith.constant 1.000000e+00 : f32
      %88 = vector.broadcast %cst_38 : f32 to vector<256x1xf32>
      %89 = arith.select %87, %88, %85 : vector<256x1xi1>, vector<256x1xf32>
      %cst_39 = arith.constant 1.000000e+00 : f32
      %90 = vector.broadcast %cst_39 : f32 to vector<256x1xf32>
      %91 = arith.cmpf ole, %65, %90 : vector<256x1xf32>
      %92 = vector.broadcast %72 : vector<1x1xf32> to vector<256x1xf32>
      %93 = arith.subf %92, %80 : vector<256x1xf32>
      %94 = arith.divf %93, %89 : vector<256x1xf32>
      %cst_40 = arith.constant 1.000000e+00 : f32
      %95 = vector.broadcast %cst_40 : f32 to vector<256x1xf32>
      %96 = arith.subf %95, %94 : vector<256x1xf32>
      %cst_41 = arith.constant 0.000000e+00 : f32
      %97 = vector.broadcast %cst_41 : f32 to vector<256x1xf32>
      %98 = arith.select %91, %97, %96 : vector<256x1xi1>, vector<256x1xf32>
      %99 = arith.subf %79, %98 : vector<256x1xf32>
      %cst_42 = arith.constant 0.000000e+00 : f32
      %100 = vector.broadcast %cst_42 : f32 to vector<256x1xf32>
      %101 = arith.maximumf %13, %100 : vector<256x1xf32>
      %102 = arith.mulf %101, %99 : vector<256x1xf32>
      %103 = vector.shape_cast %102 : vector<256x1xf32> to vector<1x256x1xf32>
      %cst_43 = arith.constant dense<0.000000e+00> : vector<1xf32>
      %104 = vector.multi_reduction <add>, %103, %cst_43 [1, 2] : vector<1x256x1xf32> to vector<1xf32>
      %105 = vector.shape_cast %104 : vector<1xf32> to vector<1x1x1xf32>
      %106 = vector.extract %105[0, 0, 0] : f32 from vector<1x1x1xf32>
      %107 = vector.broadcast %106 : f32 to vector<1x1xf32>
      %108 = vector.shape_cast %107 : vector<1x1xf32> to vector<1x1x1xf32>
      %109 = vector.shape_cast %108 : vector<1x1x1xf32> to vector<1x1x1xf32>
      %110 = vector.broadcast %109 : vector<1x1x1xf32> to vector<1x1x128xf32>
      %c0_44 = arith.constant 0 : index
      %c0_45 = arith.constant 0 : index
      %c0_46 = arith.constant 0 : index
      %111 = vector.load %arg7[%c0_44, %c0_45, %c0_46] : memref<1x1x128xf32, #tpu.memory_space<vmem>>, vector<1x1x128xf32>
      tpu.vector_store %arg7[%c0_44, %c0_45, %c0_46], %110 {strides = array<i32>} : memref<1x1x128xf32, #tpu.memory_space<vmem>>, vector<1x1x128xf32>,
    } else {
    }
    return
  }
  func.func @transform_0(%arg0: i32, %arg1: i32) -> (i32, i32, i32) {
    %c0_i32 = arith.constant 0 : i32
    %c0_i32_0 = arith.constant 0 : i32
    return %arg0, %c0_i32, %arg1 : i32, i32, i32
  }
  func.func @transform_1(%arg0: i32, %arg1: i32) -> (i32, i32, i32) {
    %c0_i32 = arith.constant 0 : i32
    %c0_i32_0 = arith.constant 0 : i32
    return %arg0, %c0_i32, %arg1 : i32, i32, i32
  }
  func.func @transform_2(%arg0: i32, %arg1: i32) -> (i32, i32, i32) {
    %c0_i32 = arith.constant 0 : i32
    %c0_i32_0 = arith.constant 0 : i32
    %c0_i32_1 = arith.constant 0 : i32
    return %arg0, %c0_i32, %c0_i32_0 : i32, i32, i32
  }
  func.func @transform_3(%arg0: i32, %arg1: i32) -> (i32, i32, i32) {
    %c0_i32 = arith.constant 0 : i32
    %c0_i32_0 = arith.constant 0 : i32
    %c0_i32_1 = arith.constant 0 : i32
    return %arg0, %c0_i32, %c0_i32_0 : i32, i32, i32
  }
  func.func @transform_4(%arg0: i32, %arg1: i32) -> (i32, i32, i32) {
    %c0_i32 = arith.constant 0 : i32
    %c0_i32_0 = arith.constant 0 : i32
    return %arg0, %arg1, %c0_i32 : i32, i32, i32
  }
  func.func @transform_5(%arg0: i32, %arg1: i32) -> (i32, i32, i32) {
    %c0_i32 = arith.constant 0 : i32
    %c0_i32_0 = arith.constant 0 : i32
    %c0_i32_1 = arith.constant 0 : i32
    return %arg0, %c0_i32, %c0_i32_0 : i32, i32, i32
  }
}

</mosaic_0001>

<bundles_post_ra>
// kernel: tpu_custom_call.1
= control target key start
LH: loop header
LB: loop body
LE: loop exit
PB: predicated region body
PF: predicated region fallthrough
CT: control target
= control target key end

     0   :  { %s6098_s0 = inlined_call_operand.vmem [shape: f32[2,1,256], index: 0, kind: input, shape index: {}]   ;;  %s6099_s1 = inlined_call_operand.vmem [shape: f32[2,1,256], index: 1, kind: input, shape index: {}]   ;;  %s6100_s2 = inlined_call_operand.vmem [shape: f32[2,256,1], index: 2, kind: input, shape index: {}]   ;;  %s6101_s3 = inlined_call_operand.vmem [shape: f32[2,256,1], index: 3, kind: input, shape index: {}]   ;;  %s6102_s4 = inlined_call_operand.vmem [shape: f32[2,256,1], index: 4, kind: input, shape index: {}]   ;;  %s6103_s5 = inlined_call_operand.hbm [shape: f32[2,1,128], index: 5, kind: output, shape index: {}]  }
   0x1   :  { %6199 = sst [smem:[#allocation91_spill]] %s6100_s2 }
   0x2   :  { %10 = vsyncpa [#allocation4], 0 }
   0x3   :  { %12 = vsyncpa [#allocation4 + $0x1], 0  ;;  %s3868_s18 = smov 0   ;;  %s3870_s19 = smov 0  }
   0x4   :  { %s3872_s20 = smov 0   ;;  %s3874_s21 = smov 0  }
   0x5   :  { %s3876_s22 = smov 0   ;;  %s3878_s23 = smov 0  }
   0x6   :  { %s3880_s24 = smov 0   ;;  %s3882_s25 = smov 0  }
   0x7 LB: > { %6200 = sst [smem:[#allocation6_spill]] %s3810_s20  ;;  %s3279_s26 = sadd.s32 4294967295, %s3830_s25   ;;  %s3830_s25 = sphi %s3882_s25, %s18_s25   ;;  %s3826_s24 = sphi %s3880_s24, %s6509_s24   ;;  %s3822_s23 = sphi %s3878_s23, %s6508_s23   ;;  %s3818_s22 = sphi %s3876_s22, %s6507_s22   ;;  %s3814_s21 = sphi %s3874_s21, %s6506_s21   ;;  %s3810_s20 = sphi %s3872_s20, %s6505_s20   ;;  %s3806_s19 = sphi %s3870_s19, %s6511_s19   ;;  %s3802_s18 = sphi %s3868_s18, %s6510_s18  }
   0x8   : > { %6201 = sst [smem:[#allocation7_spill]] %s3822_s23  ;;  %s3280_s27 = sadd.s32 4294967294, %s3830_s25  }
   0x9   : > { %6202 = sst [smem:[#allocation8_spill]] %s3826_s24  ;;  %s27_s28 = sadd.s32 1, %s3822_s23 }
   0xa   : > { %p28_p0 = scmp.ge.s32.totalorder %s27_s28, 2  ;;  %s30_s29 = sadd.s32 1, %s3826_s24 }
   0xb   : > { %p183_p1 = scmp.ne.s32.totalorder %s3810_s20, %s3806_s19  ;;  %p184_p2 = scmp.eq.s32.totalorder %s3279_s26, 3 }
   0xc   : > { %s6513_s28 = smov (%p28_p0, %s27_s28), 0  ;;  %s6515_s29 = smov (!%p28_p0, %s30_s29), %s3826_s24 }
   0xd   : > { %6203 = sst [smem:[#allocation9_spill]] %s6513_s28  ;;  %p3917_p3 = por %p184_p2, %p183_p1 }
   0xe   : > { %p189_p4 = scmp.ne.s32.totalorder %s3806_s19, %s3802_s18  ;;  %p32_p5 = scmp.ge.s32.totalorder %s6515_s29, 2 }
   0xf   : > { %p190_p6 = scmp.eq.s32.totalorder %s3280_s27, 3  ;;  %p3283_p7 = scmp.ge.s32.totalorder %s3830_s25, 1 }
  0x10   : > { %p257_p8 = scmp.lt.s32.totalorder %s3830_s25, 5  ;;  %s6517_s29 = smov (%p32_p5, %s6515_s29), 0 }
  0x11   : > { %6205 = sst [smem:[#allocation10_spill]] %s6517_s29  ;;  %p3927_p9 = por %p190_p6, %p189_p4 }
  0x12   : > { %p258_p10 = pnand %p3283_p7, %p257_p8  ;;  %s170_s7 = ssub.s32 %s3826_s24, %s6517_s29 }
  0x13   : > { %s173_s8 = sadd.s32 1, %s3810_s20  ;;  %p171_p11 = scmp.eq.s32.totalorder %s170_s7, 0 }
  0x14   : > { %261 = sbr.rel (%p258_p10) target bundleno = 1659 (0x67b), region = 40 }
  0x15   : > { %s3935_s9 = scalar_select %p171_p11, %s3810_s20, %s173_s8  }
  0x17   : > { %6207 = sst [smem:[#allocation11_spill]] %s3935_s9 }
  0x1b   : > { %p312_p12 = scmp.lt.s32.totalorder %s3818_s22, 1  ;;  %p314_p13 = scmp.lt.s32.totalorder %s3814_s21, 1 }
  0x1c   : > { %s6208_s2 = sld [smem:[#allocation91_spill]]  ;;  %s6209_s7 = sand.u32 1, %s3806_s19  }
  0x1d   : > { %s313_s11 = scalar_select %p312_p12, %s3818_s22, 1 }
  0x1e   : > { %s315_s12 = scalar_select %p314_p13, %s3814_s21, 1 }
  0x1f   : > { %s3284_s13 = sshll.u32 %s313_s11, 1  ;;  %s3364_s14 = sshll.u32 %s313_s11, 8 }
  0x20   : > { %s3942_s15 = sadd.s32 %s3284_s13, %s315_s12  ;;  %s3960_s12 = scalar_lea.vmem %s6101_s3, %s3364_s14 }
  0x21   : > { %s325_s28 = scalar_lea.vmem %s6099_s1, %s3942_s15  ;;  %s3290_s13 = sshll.u32 %s3814_s21, 4 }
  0x22   : > { %s3947_s26 = scalar_lea.vmem %s6208_s2, %s3364_s14  ;;  %p339_p0 = scmp.lt.s32.totalorder %s3290_s13, 31 }
  0x23   : > { %s3291_s16 = sshll.u32 %s313_s11, 5  ;;  %s3970_s8 = scalar_lea.vmem [#allocation3], %s6209_s7 }
  0x24   : > { %s6519_s13 = smov (!%p339_p0, %s3290_s13), 31  ;;  %p3293_p1 = scmp.ne.s32.totalorder %s3814_s21, 0 }
  0x25   : > { %s342_s17 = sadd.s32 %s3291_s16, %s6519_s13  ;;  %v3832_v0 = vmov (!%p3293_p1), 0.0  }
  0x26   : > { %s3292_s2 = sshll.u32 %s342_s17, 3  ;;  %350 = sbr.rel (%p3293_p1) target bundleno = 54 (0x36), region = 44  ;;  %351 = vst [vmem:[#allocation2] sm:$0xff] (!%p3293_p1), %v3832_v0  ;;  %352 = vst [vmem:[#allocation2 + $0x8] sm:$0xff] (!%p3293_p1), %v3832_v0 }
  0x27   : > { %s3966_s27 = scalar_lea.vmem %s6102_s4, %s3292_s2  ;;  %353 = vst [vmem:[#allocation2 + $0x10] sm:$0xff] (!%p3293_p1), %v3832_v0  ;;  %354 = vst [vmem:[#allocation2 + $0x18] sm:$0xff] (!%p3293_p1), %v3832_v0 }
  0x28   : > { %355 = vst [vmem:[#allocation2 + $0x20] sm:$0xff] (!%p3293_p1), %v3832_v0  ;;  %356 = vst [vmem:[#allocation2 + $0x28] sm:$0xff] (!%p3293_p1), %v3832_v0 }
  0x29   : > { %357 = vst [vmem:[#allocation2 + $0x30] sm:$0xff] (!%p3293_p1), %v3832_v0  ;;  %358 = vst [vmem:[#allocation2 + $0x38] sm:$0xff] (!%p3293_p1), %v3832_v0 }
  0x2a   : > { %359 = vst [vmem:[#allocation2 + $0x40] sm:$0xff] (!%p3293_p1), %v3832_v0  ;;  %360 = vst [vmem:[#allocation2 + $0x48] sm:$0xff] (!%p3293_p1), %v3832_v0 }
  0x2b   : > { %361 = vst [vmem:[#allocation2 + $0x50] sm:$0xff] (!%p3293_p1), %v3832_v0  ;;  %362 = vst [vmem:[#allocation2 + $0x58] sm:$0xff] (!%p3293_p1), %v3832_v0 }
  0x2c   : > { %363 = vst [vmem:[#allocation2 + $0x60] sm:$0xff] (!%p3293_p1), %v3832_v0  ;;  %364 = vst [vmem:[#allocation2 + $0x68] sm:$0xff] (!%p3293_p1), %v3832_v0 }
  0x2d   : > { %365 = vst [vmem:[#allocation2 + $0x70] sm:$0xff] %v3832_v0  ;;  %366 = vst [vmem:[#allocation2 + $0x78] sm:$0xff] %v3832_v0 }
  0x2e   : > { %367 = vst [vmem:[#allocation2 + $0x80] sm:$0xff] %v3832_v0  ;;  %368 = vst [vmem:[#allocation2 + $0x88] sm:$0xff] %v3832_v0 }
  0x2f   : > { %369 = vst [vmem:[#allocation2 + $0x90] sm:$0xff] %v3832_v0  ;;  %370 = vst [vmem:[#allocation2 + $0x98] sm:$0xff] %v3832_v0 }
  0x30   : > { %371 = vst [vmem:[#allocation2 + $0xa0] sm:$0xff] %v3832_v0  ;;  %372 = vst [vmem:[#allocation2 + $0xa8] sm:$0xff] %v3832_v0 }
  0x31   : > { %373 = vst [vmem:[#allocation2 + $0xb0] sm:$0xff] %v3832_v0  ;;  %374 = vst [vmem:[#allocation2 + $0xb8] sm:$0xff] %v3832_v0 }
  0x32   : > { %375 = vst [vmem:[#allocation2 + $0xc0] sm:$0xff] %v3832_v0  ;;  %376 = vst [vmem:[#allocation2 + $0xc8] sm:$0xff] %v3832_v0 }
  0x33   : > { %377 = vst [vmem:[#allocation2 + $0xd0] sm:$0xff] %v3832_v0  ;;  %378 = vst [vmem:[#allocation2 + $0xd8] sm:$0xff] %v3832_v0 }
  0x34   : > { %379 = vst [vmem:[#allocation2 + $0xe0] sm:$0xff] %v3832_v0  ;;  %380 = vst [vmem:[#allocation2 + $0xe8] sm:$0xff] %v3832_v0 }
  0x35   : > { %381 = vst [vmem:[#allocation2 + $0xf0] sm:$0xff] %v3832_v0  ;;  %382 = vst [vmem:[#allocation2 + $0xf8] sm:$0xff] %v3832_v0 }
  0x36 PF: > { %v997_v1 = vld [vmem:[%s3966_s27 + $0x20] sm:$0xff]  ;;  %v998_v2 = vld [vmem:[%s3966_s27 + $0x28] sm:$0xff]  ;;  %v3833_v4 = vmov 0   ;;  %v999_v7 = vld [vmem:[%s3966_s27 + $0x30] sm:$0xff]  ;;  %s3327_s2 = sshll.u32 %s3814_s21, 7  ;;  %s6260_s9 = scalar_lea.vmem %s6098_s0, %s3942_s15 }
  0x37   : > { %v993_v3 = vld [vmem:[%s3966_s27] sm:$0xff]  ;;  %3545 = vset.pattern.permute.xlu1 %v3833_v4  ;;  %3534 = vset.pattern.permute.xlu0 %v3833_v4  ;;  %v3546_v5 = vpack.i.bf16 %v998_v2, %v997_v1  ;;  %v994_v6 = vld [vmem:[%s3966_s27 + $0x8] sm:$0xff]  ;;  %v1000_v8 = vld [vmem:[%s3966_s27 + $0x38] sm:$0xff]  ;;  %p3360_p2 = scmp.ne.s32.totalorder %s3814_s21, 1 }
  0x38   : > { %v3535_v9 = vpack.i.bf16 %v994_v6, %v993_v3  ;;  %v995_v10 = vld [vmem:[%s3966_s27 + $0x10] sm:$0xff]  ;;  %v996_v11 = vld [vmem:[%s3966_s27 + $0x18] sm:$0xff]  ;;  %v3551_v12 = vpack.i.bf16 %v1000_v8, %v999_v7  ;;  %v1001_v16 = vld [vmem:[%s3966_s27 + $0x40] sm:$0xff] }
  0x39   : > { %3547 = vperm.xlu1 %3545, %v3546_v5   ;;  %v3540_v13 = vpack.i.bf16 %v996_v11, %v995_v10  ;;  %v1003_v14 = vld [vmem:[%s3966_s27 + $0x50] sm:$0xff]  ;;  %v1004_v15 = vld [vmem:[%s3966_s27 + $0x58] sm:$0xff]  ;;  %v1002_v17 = vld [vmem:[%s3966_s27 + $0x48] sm:$0xff] }
  0x3a   : > { %3536 = vperm.xlu0 %3534, %v3535_v9   ;;  %v3986_v18 = vld [vmem:[%s3960_s12 + $0x8] sm:$0xff]  ;;  %v1007_v19 = vld [vmem:[%s3966_s27 + $0x70] sm:$0xff]  ;;  %v3991_v21 = vld [vmem:[%s3960_s12] sm:$0xff]  ;;  %v3561_v22 = vpack.i.bf16 %v1004_v15, %v1003_v14  ;;  %v3556_v27 = vpack.i.bf16 %v1002_v17, %v1001_v16 }
  0x3b   : > { %v448_v20 = vmul.f32 2.0, %v3986_v18  ;;  %v1008_v23 = vld [vmem:[%s3966_s27 + $0x78] sm:$0xff]  ;;  %v447_v24 = vmul.f32 2.0, %v3991_v21  ;;  %v3996_v25 = vld [vmem:[%s3960_s12 + $0x88] sm:$0xff]  ;;  %v3999_v26 = vld [vmem:[%s3960_s12 + $0x80] sm:$0xff] }
  0x3c   : > { %v1005_v28 = vld [vmem:[%s3966_s27 + $0x60] sm:$0xff]  ;;  %v384_v29 = vld [vmem:[%s3947_s26 + $0x8] sm:$0xff]  ;;  %v464_v31 = vmul.f32 2.0, %v3996_v25  ;;  %v463_v32 = vmul.f32 2.0, %v3999_v26  ;;  %v4006_v33 = vld [vmem:[%s3960_s12 + $0x18] sm:$0xff]  ;;  %v3571_v38 = vpack.i.bf16 %v1008_v23, %v1007_v19 }
  0x3d   : > { %3552 = vperm.xlu1 %3545, %v3551_v12   ;;  %v3295_v30 = vadd.f32 -1.0, %v448_v20  ;;  %v1006_v34 = vld [vmem:[%s3966_s27 + $0x68] sm:$0xff]  ;;  %v383_v35 = vld [vmem:[%s3947_s26] sm:$0xff]  ;;  %v3294_v36 = vadd.f32 -1.0, %v447_v24  ;;  %v4011_v37 = vld [vmem:[%s3960_s12 + $0x10] sm:$0xff]  ;;  %v450_v41 = vmul.f32 2.0, %v4006_v33 }
  0x3e   : > { %3541 = vperm.xlu0 %3534, %v3540_v13   ;;  %v3311_v40 = vadd.f32 -1.0, %v464_v31  ;;  %v3566_v42 = vpack.i.bf16 %v1006_v34, %v1005_v28  ;;  %v400_v44 = vld [vmem:[%s3947_s26 + $0x88] sm:$0xff]  ;;  %v3310_v45 = vadd.f32 -1.0, %v463_v32  ;;  %v449_v46 = vmul.f32 2.0, %v4011_v37  ;;  %v4021_v47 = vld [vmem:[%s3960_s12 + $0x98] sm:$0xff]  ;;  %v399_v48 = vld [vmem:[%s3947_s26 + $0x80] sm:$0xff] }
  0x3f   : > { %v4013_v39 = vmul.f32 %v3295_v30, %v384_v29  ;;  %v4016_v43 = vmul.f32 %v3294_v36, %v383_v35  ;;  %v4025_v49 = vld [vmem:[%s3960_s12 + $0x90] sm:$0xff]  ;;  %v3297_v52 = vadd.f32 -1.0, %v450_v41  ;;  %v466_v53 = vmul.f32 2.0, %v4021_v47  ;;  %v386_v56 = vld [vmem:[%s3947_s26 + $0x18] sm:$0xff]  ;;  %v4037_v59 = vld [vmem:[%s3960_s12 + $0x28] sm:$0xff] }
  0x40   : > { %v4028_v51 = vmul.f32 %v3311_v40, %v400_v44  ;;  %v4032_v55 = vmul.f32 %v3310_v45, %v399_v48  ;;  %v3296_v57 = vadd.f32 -1.0, %v449_v46  ;;  %v465_v58 = vmul.f32 2.0, %v4025_v49  ;;  %6214 = vst [vmem:[#allocation16_spill] sm:$0xff] %v4037_v59  ;;  %v385_v60 = vld [vmem:[%s3947_s26 + $0x10] sm:$0xff]  ;;  %v4041_v61 = vld [vmem:[%s3960_s12 + $0x20] sm:$0xff]  ;;  %v402_v4 = vld [vmem:[%s3947_s26 + $0x98] sm:$0xff] }
  0x41   : > { %3562 = vperm.xlu1 %3545, %v3561_v22   ;;  %6210 = vst [vmem:[#allocation12_spill] sm:$0xff] %v4013_v39  ;;  %6211 = vst [vmem:[#allocation13_spill] sm:$0xff] %v4016_v43  ;;  %v6125_v50 = vsub.f32 1.0, %v4013_v39  ;;  %v6123_v54 = vsub.f32 1.0, %v4016_v43  ;;  %v4046_v63 = vmul.f32 %v3297_v52, %v386_v56  ;;  %v3313_v0 = vadd.f32 -1.0, %v466_v53  ;;  %v4057_v7 = vld [vmem:[%s3960_s12 + $0xa8] sm:$0xff] }
  0x42   : > { %3557 = vperm.xlu0 %3534, %v3556_v27   ;;  %6212 = vst [vmem:[#allocation14_spill] sm:$0xff] %v4028_v51  ;;  %6213 = vst [vmem:[#allocation15_spill] sm:$0xff] %v4032_v55  ;;  %v6112_v62 = vsub.f32 1.0, %v4028_v51  ;;  %v452_v1 = vmul.f32 2.0, %v4037_v59  ;;  %v6113_v2 = vsub.f32 1.0, %v4032_v55  ;;  %v4052_v3 = vmul.f32 %v3296_v57, %v385_v60  ;;  %v401_v8 = vld [vmem:[%s3947_s26 + $0x90] sm:$0xff] }
  0x43   : > { %6215 = vst [vmem:[#allocation17_spill] sm:$0xff] %v4046_v63  ;;  %v3312_v5 = vadd.f32 -1.0, %v465_v58  ;;  %v451_v6 = vmul.f32 2.0, %v4041_v61  ;;  %v4061_v9 = vld [vmem:[%s3960_s12 + $0xa0] sm:$0xff]  ;;  %v6120_v10 = vsub.f32 1.0, %v4046_v63  ;;  %v4066_v11 = vmul.f32 %v3313_v0, %v402_v4  ;;  %v388_v16 = vld [vmem:[%s3947_s26 + $0x28] sm:$0xff] }
  0x44   : > { %6216 = vst [vmem:[#allocation18_spill] sm:$0xff] %v4052_v3  ;;  %v3299_v12 = vadd.f32 -1.0, %v452_v1  ;;  %v468_v13 = vmul.f32 2.0, %v4057_v7  ;;  %v6121_v14 = vsub.f32 1.0, %v4052_v3  ;;  %v467_v19 = vmul.f32 2.0, %v4061_v9  ;;  %v4077_v20 = vld [vmem:[%s3960_s12 + $0x38] sm:$0xff] }
  0x45   : > { %3572 = vperm.xlu1 %3545, %v3571_v38   ;;  %6217 = vst [vmem:[#allocation19_spill] sm:$0xff] %v4066_v11  ;;  %v4072_v15 = vmul.f32 %v3312_v5, %v401_v8  ;;  %v3298_v17 = vadd.f32 -1.0, %v451_v6  ;;  %6219 = vst [vmem:[#allocation21_spill] sm:$0xff] %v4077_v20  ;;  %v387_v22 = vld [vmem:[%s3947_s26 + $0x20] sm:$0xff]  ;;  %v4081_v23 = vld [vmem:[%s3960_s12 + $0x30] sm:$0xff]  ;;  %v6110_v24 = vsub.f32 1.0, %v4066_v11 }
  0x46   : > { %3567 = vperm.xlu0 %3534, %v3566_v42   ;;  %6220 = vst [vmem:[#allocation22_spill] sm:$0xff] %v4081_v23  ;;  %v4086_v27 = vmul.f32 %v3299_v12, %v388_v16  ;;  %v3315_v28 = vadd.f32 -1.0, %v468_v13  ;;  %v454_v29 = vmul.f32 2.0, %v4077_v20  ;;  %v404_v32 = vld [vmem:[%s3947_s26 + $0xa8] sm:$0xff]  ;;  %v3314_v34 = vadd.f32 -1.0, %v467_v19  ;;  %v4097_v36 = vld [vmem:[%s3960_s12 + $0xb8] sm:$0xff] }
  0x47   : > { %6218 = vst [vmem:[#allocation20_spill] sm:$0xff] %v4072_v15  ;;  %v6111_v30 = vsub.f32 1.0, %v4072_v15  ;;  %v4092_v31 = vmul.f32 %v3298_v17, %v387_v22  ;;  %v453_v35 = vmul.f32 2.0, %v4081_v23  ;;  %6223 = vst [vmem:[#allocation25_spill] sm:$0xff] %v4097_v36  ;;  %v403_v38 = vld [vmem:[%s3947_s26 + $0xa0] sm:$0xff]  ;;  %v4101_v40 = vld [vmem:[%s3960_s12 + $0xb0] sm:$0xff] }
  0x48   : > { %6221 = vst [vmem:[#allocation23_spill] sm:$0xff] %v4086_v27  ;;  %6224 = vst [vmem:[#allocation26_spill] sm:$0xff] %v4101_v40  ;;  %v6117_v41 = vsub.f32 1.0, %v4086_v27  ;;  %v4106_v42 = vmul.f32 %v3315_v28, %v404_v32  ;;  %v3301_v44 = vadd.f32 -1.0, %v454_v29  ;;  %v470_v45 = vmul.f32 2.0, %v4097_v36  ;;  %v390_v52 = vld [vmem:[%s3947_s26 + $0x38] sm:$0xff] }
  0x49   : > { %632 = vperm.xlu1 %3545, %v6125_v50   ;;  %6222 = vst [vmem:[#allocation24_spill] sm:$0xff] %v4092_v31  ;;  %v6119_v46 = vsub.f32 1.0, %v4092_v31  ;;  %v4112_v48 = vmul.f32 %v3314_v34, %v403_v38  ;;  %v3300_v53 = vadd.f32 -1.0, %v453_v35  ;;  %v469_v56 = vmul.f32 2.0, %v4101_v40  ;;  %v4117_v57 = vld [vmem:[%s3960_s12 + $0x48] sm:$0xff]  ;;  %v389_v58 = vld [vmem:[%s3947_s26 + $0x30] sm:$0xff] }
  0x4a   : > { %627 = vperm.xlu0 %3534, %v6123_v54   ;;  %6225 = vst [vmem:[#allocation27_spill] sm:$0xff] %v4106_v42  ;;  %6227 = vst [vmem:[#allocation29_spill] sm:$0xff] %v4117_v57  ;;  %v4121_v60 = vld [vmem:[%s3960_s12 + $0x40] sm:$0xff]  ;;  %v6108_v0 = vsub.f32 1.0, %v4106_v42  ;;  %v4126_v1 = vmul.f32 %v3301_v44, %v390_v52  ;;  %v3317_v4 = vadd.f32 -1.0, %v470_v45  ;;  %v456_v5 = vmul.f32 2.0, %v4117_v57 }
  0x4b   : > { %6226 = vst [vmem:[#allocation28_spill] sm:$0xff] %v4112_v48  ;;  %6228 = vst [vmem:[#allocation30_spill] sm:$0xff] %v4121_v60  ;;  %v6109_v6 = vsub.f32 1.0, %v4112_v48  ;;  %v4132_v8 = vmul.f32 %v3300_v53, %v389_v58  ;;  %v406_v12 = vld [vmem:[%s3947_s26 + $0xb8] sm:$0xff]  ;;  %v3316_v13 = vadd.f32 -1.0, %v469_v56  ;;  %v455_v16 = vmul.f32 2.0, %v4121_v60 }
  0x4c   : > { %6229 = vst [vmem:[#allocation31_spill] sm:$0xff] %v4126_v1  ;;  %v4137_v17 = vld [vmem:[%s3960_s12 + $0xc8] sm:$0xff]  ;;  %v405_v19 = vld [vmem:[%s3947_s26 + $0xb0] sm:$0xff]  ;;  %v4141_v22 = vld [vmem:[%s3960_s12 + $0xc0] sm:$0xff]  ;;  %v6114_v28 = vsub.f32 1.0, %v4126_v1  ;;  %v4146_v29 = vmul.f32 %v3317_v4, %v406_v12  ;;  %v3303_v32 = vadd.f32 -1.0, %v456_v5 }
  0x4d   : > { %712 = vperm.xlu1 %3545, %v6112_v62   ;;  %6230 = vst [vmem:[#allocation32_spill] sm:$0xff] %v4132_v8  ;;  %6231 = vst [vmem:[#allocation33_spill] sm:$0xff] %v4137_v17  ;;  %v472_v34 = vmul.f32 2.0, %v4137_v17  ;;  %v6115_v35 = vsub.f32 1.0, %v4132_v8  ;;  %v4152_v38 = vmul.f32 %v3316_v13, %v405_v19  ;;  %v392_v44 = vld [vmem:[%s3947_s26 + $0x48] sm:$0xff]  ;;  %v3302_v45 = vadd.f32 -1.0, %v455_v16 }
  0x4e   : > { %707 = vperm.xlu0 %3534, %v6113_v2   ;;  %6232 = vst [vmem:[#allocation34_spill] sm:$0xff] %v4141_v22  ;;  %6233 = vst [vmem:[#allocation35_spill] sm:$0xff] %v4146_v29  ;;  %v471_v52 = vmul.f32 2.0, %v4141_v22  ;;  %v4157_v53 = vld [vmem:[%s3960_s12 + $0x58] sm:$0xff]  ;;  %v391_v56 = vld [vmem:[%s3947_s26 + $0x40] sm:$0xff]  ;;  %v6116_v4 = vsub.f32 1.0, %v4146_v29  ;;  %v4166_v5 = vmul.f32 %v3303_v32, %v392_v44 }
  0x4f   : > { %6234 = vst [vmem:[#allocation36_spill] sm:$0xff] %v4152_v38  ;;  %v4161_v58 = vld [vmem:[%s3960_s12 + $0x50] sm:$0xff]  ;;  %v3319_v12 = vadd.f32 -1.0, %v472_v34  ;;  %v458_v13 = vmul.f32 2.0, %v4157_v53  ;;  %v6118_v16 = vsub.f32 1.0, %v4152_v38  ;;  %v4172_v19 = vmul.f32 %v3302_v45, %v391_v56  ;;  %v407_v32 = vld [vmem:[%s3947_s26 + $0xc0] sm:$0xff] }
  0x50   : > { %6235 = vst [vmem:[#allocation37_spill] sm:$0xff] %v4166_v5  ;;  %v4181_v34 = vld [vmem:[%s3960_s12 + $0xd0] sm:$0xff]  ;;  %v6122_v44 = vsub.f32 1.0, %v4166_v5  ;;  %v4217_v54 = vld [vmem:[%s3960_s12 + $0xe8] sm:$0xff]  ;;  %v4257_v11 = vld [vmem:[%s3960_s12 + $0xf8] sm:$0xff] }
  0x51   : > { %642 = vperm.xlu1 %3545, %v6120_v10   ;;  %6236 = vst [vmem:[#allocation38_spill] sm:$0xff] %v4172_v19  ;;  %6238 = vst [vmem:[#allocation40_spill] sm:$0xff] %v4181_v34  ;;  %v3305_v45 = vadd.f32 -1.0, %v458_v13  ;;  %v6124_v56 = vsub.f32 1.0, %v4172_v19  ;;  %v410_v10 = vld [vmem:[%s3947_s26 + $0xd8] sm:$0xff]  ;;  %v396_v29 = vld [vmem:[%s3947_s26 + $0x68] sm:$0xff] }
  0x52   : > { %637 = vperm.xlu0 %3534, %v6121_v14   ;;  %6243 = vst [vmem:[#allocation45_spill] sm:$0xff] %v4217_v54  ;;  %v412_v42 = vld [vmem:[%s3947_s26 + $0xe8] sm:$0xff]  ;;  %6251 = vst [vmem:[#allocation51_spill] sm:$0xff] %v4257_v11  ;;  %v398_v51 = vld [vmem:[%s3947_s26 + $0x78] sm:$0xff] }
  0x55   : > { %722 = vperm.xlu1 %3545, %v6110_v24   ;;  %v457_v24 = vmul.f32 2.0, %v4161_v58 }
  0x56   : > { %717 = vperm.xlu0 %3534, %v6111_v30   ;;  %v4177_v30 = vld [vmem:[%s3960_s12 + $0xd8] sm:$0xff] }
  0x57   : > { %6237 = vst [vmem:[#allocation39_spill] sm:$0xff] %v4177_v30 }
  0x59   : > { %652 = vperm.xlu1 %3545, %v6117_v41   ;;  %v4197_v41 = vld [vmem:[%s3960_s12 + $0x68] sm:$0xff] }
  0x5a   : > { %647 = vperm.xlu0 %3534, %v6119_v46  }
  0x5d   : > { %732 = vperm.xlu1 %3545, %v6108_v0   ;;  %v408_v0 = vld [vmem:[%s3947_s26 + $0xc8] sm:$0xff] }
  0x5e   : > { %727 = vperm.xlu0 %3534, %v6109_v6   ;;  %v3318_v6 = vadd.f32 -1.0, %v471_v52  ;;  %v4186_v62 = vmul.f32 %v3319_v12, %v408_v0  ;;  %v474_v52 = vmul.f32 2.0, %v4177_v30  ;;  %v393_v0 = vld [vmem:[%s3947_s26 + $0x50] sm:$0xff]  ;;  %v4201_v12 = vld [vmem:[%s3960_s12 + $0x60] sm:$0xff] }
  0x60   : > { %6239 = vst [vmem:[#allocation41_spill] sm:$0xff] %v4186_v62  ;;  %v4192_v2 = vmul.f32 %v3318_v6, %v407_v32  ;;  %v6128_v13 = vsub.f32 1.0, %v4186_v62  ;;  %v3321_v6 = vadd.f32 -1.0, %v474_v52  ;;  %v4237_v52 = vld [vmem:[%s3960_s12 + $0x78] sm:$0xff] }
  0x61   : > { %662 = vperm.xlu1 %3545, %v6114_v28   ;;  %v394_v28 = vld [vmem:[%s3947_s26 + $0x58] sm:$0xff] }
  0x62   : > { %657 = vperm.xlu0 %3534, %v6115_v35   ;;  %6240 = vst [vmem:[#allocation42_spill] sm:$0xff] %v4192_v2  ;;  %v3304_v35 = vadd.f32 -1.0, %v457_v24  ;;  %v460_v24 = vmul.f32 2.0, %v4197_v41  ;;  %v6129_v32 = vsub.f32 1.0, %v4192_v2 }
  0x64   : > { %v4212_v46 = vmul.f32 %v3304_v35, %v393_v0  ;;  %v3307_v35 = vadd.f32 -1.0, %v460_v24 }
  0x65   : > { %742 = vperm.xlu1 %3545, %v6116_v4   ;;  %v473_v4 = vmul.f32 2.0, %v4181_v34 }
  0x66   : > { %737 = vperm.xlu0 %3534, %v6118_v16   ;;  %v4206_v16 = vmul.f32 %v3305_v45, %v394_v28  ;;  %6242 = vst [vmem:[#allocation44_spill] sm:$0xff] %v4212_v46  ;;  %v409_v28 = vld [vmem:[%s3947_s26 + $0xd0] sm:$0xff]  ;;  %v4221_v45 = vld [vmem:[%s3960_s12 + $0xe0] sm:$0xff]  ;;  %v4246_v0 = vmul.f32 %v3307_v35, %v396_v29 }
  0x67   : > { %v3320_v14 = vadd.f32 -1.0, %v473_v4  ;;  %6244 = vst [vmem:[#allocation46_spill] sm:$0xff] %v4221_v45  ;;  %v476_v4 = vmul.f32 2.0, %v4217_v54  ;;  %v411_v29 = vld [vmem:[%s3947_s26 + $0xe0] sm:$0xff]  ;;  %v4261_v35 = vld [vmem:[%s3960_s12 + $0xf0] sm:$0xff] }
  0x68   : > { %6241 = vst [vmem:[#allocation43_spill] sm:$0xff] %v4206_v16  ;;  %v6247_v24 = vsub.f32 1.0, %v4206_v16  ;;  %6248 = vst [vmem:[#allocation49_spill] sm:$0xff] %v4246_v0 }
  0x69   : > { %672 = vperm.xlu1 %3545, %v6122_v44   ;;  %v459_v44 = vmul.f32 2.0, %v4201_v12  ;;  %v4232_v50 = vmul.f32 %v3320_v14, %v409_v28  ;;  %v3323_v14 = vadd.f32 -1.0, %v476_v4  ;;  %v6249_v28 = vsub.f32 1.0, %v4212_v46  ;;  %6252 = vst [vmem:[#allocation52_spill] sm:$0xff] %v4261_v35 }
  0x6a   : > { %667 = vperm.xlu0 %3534, %v6124_v56   ;;  %v4226_v56 = vmul.f32 %v3321_v6, %v410_v10  ;;  %v395_v10 = vld [vmem:[%s3947_s26 + $0x60] sm:$0xff]  ;;  %v4241_v6 = vld [vmem:[%s3960_s12 + $0x70] sm:$0xff]  ;;  %v6141_v4 = vsub.f32 1.0, %v4246_v0 }
  0x6b   : > { %6246 = vst [vmem:[#allocation48_spill] sm:$0xff] %v4232_v50  ;;  %v3306_v38 = vadd.f32 -1.0, %v459_v44  ;;  %v462_v44 = vmul.f32 2.0, %v4237_v52 }
  0x6c   : > { %6245 = vst [vmem:[#allocation47_spill] sm:$0xff] %v4226_v56 }
  0x6d   : > { %752 = vperm.xlu1 %3545, %v6128_v13   ;;  %v475_v13 = vmul.f32 2.0, %v4221_v45  ;;  %v4252_v2 = vmul.f32 %v3306_v38, %v395_v10  ;;  %v3309_v62 = vadd.f32 -1.0, %v462_v44  ;;  %v478_v38 = vmul.f32 2.0, %v4257_v11 }
  0x6e   : > { %747 = vperm.xlu0 %3534, %v6129_v32   ;;  %v6138_v32 = vsub.f32 1.0, %v4226_v56  ;;  %v397_v56 = vld [vmem:[%s3947_s26 + $0x70] sm:$0xff] }
  0x6f   : > { %6250 = vst [vmem:[#allocation50_spill] sm:$0xff] %v4252_v2  ;;  %v3322_v48 = vadd.f32 -1.0, %v475_v13  ;;  %v6254_v13 = vsub.f32 1.0, %v4232_v50  ;;  %v6149_v10 = vsub.f32 1.0, %v4252_v2  ;;  %v3325_v44 = vadd.f32 -1.0, %v478_v38  ;;  %v413_v50 = vld [vmem:[%s3947_s26 + $0xf0] sm:$0xff] }
  0x70   : > { %v581_v38 = vlaneseq }
  0x71   : > { %682 = vperm.xlu1 %3545, %v6247_v24   ;;  %v461_v24 = vmul.f32 2.0, %v4241_v6  ;;  %v4272_v15 = vmul.f32 %v3322_v48, %v411_v29 }
  0x72   : > { %677 = vperm.xlu0 %3534, %v6249_v28   ;;  %v4266_v28 = vmul.f32 %v3323_v14, %v412_v42  ;;  %v4280_v14 = vmul.f32 %v3309_v62, %v398_v51 }
  0x73   : > { %6255 = vst [vmem:[#allocation54_spill] sm:$0xff] %v4272_v15  ;;  %v3308_v55 = vadd.f32 -1.0, %v461_v24  ;;  %v6146_v48 = vsub.f32 1.0, %v4272_v15  ;;  %v414_v24 = vld [vmem:[%s3947_s26 + $0xf8] sm:$0xff] }
  0x74   : > { %6253 = vst [vmem:[#allocation53_spill] sm:$0xff] %v4266_v28  ;;  %v6143_v42 = vsub.f32 1.0, %v4266_v28  ;;  %6256 = vst [vmem:[#allocation55_spill] sm:$0xff] %v4280_v14  ;;  %v4292_v0 = vmul.f32 %v3325_v44, %v414_v24  ;;  %v4306_v44 = vshrl.u32 %v581_v38, 7  ;;  %v4308_v24 = vand.u32 127, %v581_v38 }
  0x75   : > { %762 = vperm.xlu1 %3545, %v6138_v32   ;;  %v477_v32 = vmul.f32 2.0, %v4261_v35  ;;  %v4285_v29 = vmul.f32 %v3308_v55, %v397_v56 }
  0x76   : > { %757 = vperm.xlu0 %3534, %v6254_v13   ;;  %6258 = vst [vmem:[#allocation57_spill] sm:$0xff] %v4292_v0  ;;  %v6144_v55 = vsub.f32 1.0, %v4292_v0  ;;  %v4328_v38 = vadd.s32 232, %v4306_v44  ;;  %vm1010_vm8 = vcmp.eq.s32.totalorder %v4308_v24, 1  ;;  %vm1009_vm9 = vcmp.eq.s32.totalorder %v4308_v24, 0 }
  0x77   : > { %6257 = vst [vmem:[#allocation56_spill] sm:$0xff] %v4285_v29  ;;  %v3324_v13 = vadd.f32 -1.0, %v477_v32  ;;  %v6148_v51 = vsub.f32 1.0, %v4285_v29  ;;  %v617_v32 = vstv %s3327_s2  ;;  %v575_v29 = vld [vmem:[%s6260_s9] sm:$0x1] }
  0x79   : > { %692 = vperm.xlu1 %3545, %v6141_v4   ;;  %v6147_v4 = vsub.f32 1.0, %v4280_v14  ;;  %v4297_v62 = vmul.f32 %v3324_v13, %v413_v50  ;;  %v4315_v50 = vadd.s32 %v617_v32, %v4308_v24  ;;  %v4318_v13 = vadd.s32 104, %v4306_v44 }
  0x7a   : > { %687 = vperm.xlu0 %3534, %v6149_v10   ;;  %v4338_v32 = vadd.s32 120, %v4306_v44  ;;  %v587_v24 = vadd.s32 40, %v4306_v44 }
  0x7b   : > { %6259 = vst [vmem:[#allocation58_spill] sm:$0xff] %v4297_v62  ;;  %v6145_v56 = vsub.f32 1.0, %v4297_v62  ;;  %vm849_vm10 = vcmp.le.s32.totalorder %v4315_v50, %v4306_v44 }
  0x7d   : > { %772 = vperm.xlu1 %3545, %v6143_v42   ;;  %v4321_v42 = vadd.s32 96, %v4306_v44 }
  0x7e   : > { %767 = vperm.xlu0 %3534, %v6146_v48   ;;  %v4348_v48 = vadd.s32 248, %v4306_v44 }
  0x81   : > { %702 = vperm.xlu1 %3545, %v6147_v4   ;;  %v4351_v4 = vadd.s32 240, %v4306_v44 }
  0x82   : > { %697 = vperm.xlu0 %3534, %v6148_v51   ;;  %v576_v51 = vld [vmem:[%s325_s28] sm:$0x1] }
  0x83   : > { %v577_v10 = vmul.f32 2.0, %v576_v51 }
  0x85   : > { %782 = vperm.xlu1 %3545, %v6144_v55   ;;  %v4331_v55 = vadd.s32 224, %v4306_v44  ;;  %v3326_v62 = vadd.f32 -1.0, %v577_v10 }
  0x86   : > { %777 = vperm.xlu0 %3534, %v6145_v56   ;;  %v4341_v56 = vadd.s32 112, %v4306_v44 }
  0x87   : > { %v579_v5 = vmul.f32 %v3326_v62, %v575_v29 }
  0x89   : > { %v580_v62 = vsub.f32 1.0, %v579_v5 }
  0xb8   : > { %v3548_v0 = vpop.permute.xlu1 %3547 }
  0xb9   : > { %v3550_v28 = vunpack.i.h.bf16 %v3548_v0  ;;  %v3549_v15 = vunpack.i.l.bf16 %v3548_v0  ;;  %v3537_v14 = vpop.permute.xlu0 %3536 }
  0xba   : > { %v3539_v2 = vunpack.i.h.bf16 %v3537_v14  ;;  %v3538_v16 = vunpack.i.l.bf16 %v3537_v14 }
  0xbb   : > { %v1095_v46 = vsel %vm1010_vm8, %v3549_v15, 0.0  ;;  %v1096_v19 = vsel %vm1010_vm8, %v3550_v28, 0.0 }
  0xbc   : > { %v1091_v10 = vsel %vm1010_vm8, %v3538_v16, 0.0  ;;  %v1092_v0 = vsel %vm1010_vm8, %v3539_v2, 0.0  ;;  %v3553_v51 = vpop.permute.xlu1 %3552 }
  0xbd   : > { %v1107_v1 = vsel %vm1009_vm9, 1.0, %v1091_v10  ;;  %v1108_v14 = vsel %vm1009_vm9, 1.0, %v1092_v0  ;;  %v3555_v8 = vunpack.i.h.bf16 %v3553_v51  ;;  %v3542_v27 = vpop.permute.xlu0 %3541  ;;  %v3554_v31 = vunpack.i.l.bf16 %v3553_v51 }
  0xbe   : > { %v1123_v15 = vpack.c.bf16 %v1108_v14, %v1107_v1  ;;  %v3544_v63 = vunpack.i.h.bf16 %v3542_v27  ;;  %v3543_v16 = vunpack.i.l.bf16 %v3542_v27  ;;  %v622_v10 = vsub.s32 0, %v4306_v44 }
  0xbf   : > { %v1111_v0 = vsel %vm1009_vm9, 1.0, %v1095_v46  ;;  %v1112_v1 = vsel %vm1009_vm9, 1.0, %v1096_v19  ;;  %v1098_v5 = vsel %vm1010_vm8, %v3555_v8, 0.0 }
  0xc0   : > { %v1093_v2 = vsel %vm1010_vm8, %v3543_v16, 0.0  ;;  %v1094_v29 = vsel %vm1010_vm8, %v3544_v63, 0.0  ;;  %3390 = vmatprep.subr.bf16.mxu0 %v1123_v15  ;;  %3438 = vmatprep.subr.bf16.mxu1 %v1123_v15  ;;  %v3563_v28 = vpop.permute.xlu1 %3562  ;;  %v1097_v63 = vsel %vm1010_vm8, %v3554_v31, 0.0  ;;  %v1125_v43 = vpack.c.bf16 %v1112_v1, %v1111_v0 }
  0xc1   : > { %v1109_v27 = vsel %vm1009_vm9, 1.0, %v1093_v2  ;;  %v1110_v51 = vsel %vm1009_vm9, 1.0, %v1094_v29  ;;  %v3558_v14 = vpop.permute.xlu0 %3557  ;;  %3391 = vmatpush3.bf16.msra.mxu0 %v1123_v15  ;;  %3446 = vmatpush3.bf16.msra.mxu1 %v1123_v15  ;;  %v583_v2 = vadd.s32 8, %v4306_v44  ;;  %v1113_v29 = vsel %vm1009_vm9, 1.0, %v1097_v63 }
  0xc2   : > { %v1124_v16 = vpack.c.bf16 %v1110_v51, %v1109_v27  ;;  %v3560_v46 = vunpack.i.h.bf16 %v3558_v14  ;;  %v3559_v3 = vunpack.i.l.bf16 %v3558_v14  ;;  %v1114_v15 = vsel %vm1009_vm9, 1.0, %v1098_v5 }
  0xc3   : > { %v3565_v31 = vunpack.i.h.bf16 %v3563_v28  ;;  %v3564_v39 = vunpack.i.l.bf16 %v3563_v28  ;;  %v4409_v1 = vrot.slane %v580_v62, %v622_v10  ;;  %v1126_v27 = vpack.c.bf16 %v1114_v15, %v1113_v29 }
  0xc4   : > { %3392 = vmatprep.subr.bf16.mxu0 %v1124_v16  ;;  %3439 = vmatprep.subr.bf16.mxu1 %v1124_v16  ;;  %v4398_v19 = vpop.permute.xlu1 %3572  ;;  %v1099_v8 = vsel %vm1010_vm8, %v3559_v3, 0.0  ;;  %v1100_v0 = vsel %vm1010_vm8, %v3560_v46, 0.0  ;;  %vm850_vm11 = vcmp.le.s32.totalorder %v4315_v50, %v583_v2  ;;  %v585_v46 = vadd.s32 24, %v4306_v44 }
  0xc5   : > { %v3568_v11 = vpop.permute.xlu0 %3567  ;;  %3393 = vmatpush3.bf16.msra.mxu0 %v1124_v16  ;;  %3447 = vmatpush3.bf16.msra.mxu1 %v1124_v16  ;;  %v1101_v28 = vsel %vm1010_vm8, %v3564_v39, 0.0  ;;  %v1102_v3 = vsel %vm1010_vm8, %v3565_v31, 0.0  ;;  %v1115_v14 = vsel %vm1009_vm9, 1.0, %v1099_v8  ;;  %v1116_v62 = vsel %vm1009_vm9, 1.0, %v1100_v0 }
  0xc6   : > { %3394 = vmatprep.subr.bf16.mxu0 %v1125_v43  ;;  %3440 = vmatprep.subr.bf16.mxu1 %v1125_v43  ;;  %v3570_v63 = vunpack.i.h.bf16 %v3568_v11  ;;  %v3569_v5 = vunpack.i.l.bf16 %v3568_v11  ;;  %v1127_v16 = vpack.c.bf16 %v1116_v62, %v1115_v14  ;;  %v599_v29 = vadd.s32 136, %v4306_v44 }
  0xc7   : > { %v1117_v2 = vsel %vm1009_vm9, 1.0, %v1101_v28  ;;  %v1118_v15 = vsel %vm1009_vm9, 1.0, %v1102_v3  ;;  %v584_v0 = vadd.s32 16, %v4306_v44  ;;  %v3575_v14 = vunpack.i.h.bf16 %v4398_v19 }
  0xc8   : > { %v633_v51 = vpop.permute.xlu1 %632  ;;  %v3574_v62 = vunpack.i.l.bf16 %v4398_v19  ;;  %v1103_v28 = vsel %vm1010_vm8, %v3569_v5, 0.0  ;;  %v1104_v3 = vsel %vm1010_vm8, %v3570_v63, 0.0  ;;  %v1128_v19 = vpack.c.bf16 %v1118_v15, %v1117_v2 }
  0xc9   : > { %3395 = vmatpush3.bf16.msra.mxu0 %v1125_v43  ;;  %3448 = vmatpush3.bf16.msra.mxu1 %v1125_v43  ;;  %v628_v10 = vpop.permute.xlu0 %627  ;;  %vm818_vm12 = vcmp.eq.f32.partialorder %v4409_v1, %v633_v51  ;;  %vm786_vm14 = vcmp.gt.f32.partialorder %v4409_v1, %v633_v51  ;;  %v598_v43 = vadd.s32 128, %v4306_v44  ;;  %vm852_vm5 = vcmp.le.s32.totalorder %v4315_v50, %v585_v46 }
  0xca   : > { %vm785_vm13 = vcmp.gt.f32.partialorder %v4409_v1, %v628_v10  ;;  %3396 = vmatprep.subr.bf16.mxu0 %v1126_v27  ;;  %3441 = vmatprep.subr.bf16.mxu1 %v1126_v27  ;;  %vm817_vm15 = vcmp.eq.f32.partialorder %v4409_v1, %v628_v10  ;;  %vm4428_vm7 = vmand %vm818_vm12, %vm850_vm11  ;;  %vm866_vm4 = vcmp.le.s32.totalorder %v4315_v50, %v599_v29  ;;  %v1119_v51 = vsel %vm1009_vm9, 1.0, %v1103_v28 }
  0xcb   : > { %vm881_vm6 = vmand %vm817_vm15, %vm849_vm10  ;;  %v1120_v63 = vsel %vm1009_vm9, 1.0, %v1104_v3  ;;  %v601_v39 = vadd.s32 152, %v4306_v44  ;;  %v1105_v2 = vsel %vm1010_vm8, %v3574_v62, 0.0  ;;  %v1106_v15 = vsel %vm1010_vm8, %v3575_v14, 0.0 }
  0xcc   : > { %v4433_v11 = vpop.permute.xlu1 %712  ;;  %vm4446_vm11 = vmor %vm785_vm13, %vm881_vm6  ;;  %vm865_vm13 = vcmp.le.s32.totalorder %v4315_v50, %v598_v43  ;;  %v600_v8 = vadd.s32 144, %v4306_v44  ;;  %v1122_v14 = vsel %vm1009_vm9, 1.0, %v1106_v15  ;;  %v607_v43 = vadd.s32 200, %v4306_v44 }
  0xcd   : > { %3397 = vmatpush3.bf16.msra.mxu0 %v1126_v27  ;;  %3449 = vmatpush3.bf16.msra.mxu1 %v1126_v27  ;;  %v708_v31 = vpop.permute.xlu0 %707  ;;  %vm914_vm6 = vmor %vm786_vm14, %vm4428_vm7  ;;  %vm834_vm15 = vcmp.eq.f32.partialorder %v4409_v1, %v4433_v11  ;;  %v3834_v27 = vmov 1.0|1.0   ;;  %vm851_vm14 = vcmp.le.s32.totalorder %v4315_v50, %v584_v0  ;;  %v1129_v0 = vpack.c.bf16 %v1120_v63, %v1119_v51 }
  0xce   : > { %3398 = vmatprep.subr.bf16.mxu0 %v1127_v16  ;;  %3442 = vmatprep.subr.bf16.mxu1 %v1127_v16  ;;  %vm833_vm10 = vcmp.eq.f32.partialorder %v4409_v1, %v708_v31  ;;  %vm3328_vm12 = vmpackc.low %vm914_vm6, %vm4446_vm11  ;;  %vm802_vm8 = vcmp.gt.f32.partialorder %v4409_v1, %v4433_v11  ;;  %v586_v51 = vadd.s32 32, %v4306_v44  ;;  %v593_v28 = vadd.s32 88, %v4306_v44 }
  0xcf   : > { %3406 = vmatprep.mubr.msk.bf16.mxu0 %vm3328_vm12, %v3834_v27  ;;  %vm897_vm6 = vmand %vm833_vm10, %vm865_vm13  ;;  %vm801_vm12 = vcmp.gt.f32.partialorder %v4409_v1, %v708_v31  ;;  %v1121_v31 = vsel %vm1009_vm9, 1.0, %v1105_v2  ;;  %v6277_v2 = vmov 0 }
  0xd0   : > { %v643_v10 = vpop.permute.xlu1 %642  ;;  %vm4492_vm3 = vmand %vm834_vm15, %vm866_vm4  ;;  %v1130_v3 = vpack.c.bf16 %v1122_v14, %v1121_v31 }
  0xd1   : > { %3399 = vmatpush3.bf16.msra.mxu0 %v1127_v16  ;;  %3450 = vmatpush3.bf16.msra.mxu1 %v1127_v16  ;;  %vm820_vm7 = vcmp.eq.f32.partialorder %v4409_v1, %v643_v10  ;;  %v638_v5 = vpop.permute.xlu0 %637  ;;  %vm4515_vm13 = vmor %vm801_vm12, %vm897_vm6  ;;  %vm788_vm9 = vcmp.gt.f32.partialorder %v4409_v1, %v643_v10  ;;  %v603_v10 = vadd.s32 168, %v4306_v44  ;;  %v602_v16 = vadd.s32 160, %v4306_v44 }
  0xd2   : > { %vm819_vm11 = vcmp.eq.f32.partialorder %v4409_v1, %v638_v5  ;;  %3400 = vmatprep.subr.bf16.mxu0 %v1128_v19  ;;  %3443 = vmatprep.subr.bf16.mxu1 %v1128_v19  ;;  %vm4503_vm10 = vmand %vm820_vm7, %vm852_vm5  ;;  %vm868_vm5 = vcmp.le.s32.totalorder %v4315_v50, %v601_v39  ;;  %vm787_vm7 = vcmp.gt.f32.partialorder %v4409_v1, %v638_v5 }
  0xd3   : > { %vm4511_vm4 = vmand %vm819_vm11, %vm851_vm14  ;;  %vm867_vm11 = vcmp.le.s32.totalorder %v4315_v50, %v600_v8 }
  0xd4   : > { %v723_v29 = vpop.permute.xlu1 %722  ;;  %vm930_vm14 = vmor %vm802_vm8, %vm4492_vm3 }
  0xd5   : > { %3401 = vmatpush3.bf16.msra.mxu0 %v1128_v19  ;;  %3451 = vmatpush3.bf16.msra.mxu1 %v1128_v19  ;;  %v718_v46 = vpop.permute.xlu0 %717  ;;  %vm836_vm15 = vcmp.eq.f32.partialorder %v4409_v1, %v723_v29  ;;  %vm3344_vm6 = vmpackc.low %vm930_vm14, %vm4515_vm13  ;;  %vm804_vm12 = vcmp.gt.f32.partialorder %v4409_v1, %v723_v29  ;;  %v589_v29 = vadd.s32 56, %v4306_v44 }
  0xd6   : > { %3402 = vmatprep.subr.bf16.mxu0 %v1129_v0  ;;  %3444 = vmatprep.subr.bf16.mxu1 %v1129_v0  ;;  %vm835_vm2 = vcmp.eq.f32.partialorder %v4409_v1, %v718_v46  ;;  %vm900_vm3 = vmand %vm836_vm15, %vm868_vm5  ;;  %vm803_vm8 = vcmp.gt.f32.partialorder %v4409_v1, %v718_v46  ;;  %vm854_vm5 = vcmp.le.s32.totalorder %v4315_v50, %v587_v24  ;;  %v588_v46 = vadd.s32 48, %v4306_v44 }
  0xd7   : > { %3422 = vmatprep.mubr.msk.bf16.mxu1 %vm3344_vm6, %v3834_v27  ;;  %vm4545_vm13 = vmor %vm788_vm9, %vm4503_vm10  ;;  %vm853_vm6 = vcmp.le.s32.totalorder %v4315_v50, %v586_v51 }
  0xd8   : > { %v653_v19 = vpop.permute.xlu1 %652  ;;  %vm4553_vm14 = vmor %vm787_vm7, %vm4511_vm4 }
  0xd9   : > { %3403 = vmatpush3.bf16.msra.mxu0 %v1129_v0  ;;  %v648_v11 = vpop.permute.xlu0 %647  ;;  %3452 = vmatpush3.bf16.msra.mxu1 %v1129_v0  ;;  %vm822_vm15 = vcmp.eq.f32.partialorder %v4409_v1, %v653_v19  ;;  %vm4562_vm10 = vmor %vm804_vm12, %vm900_vm3  ;;  %vm790_vm9 = vcmp.gt.f32.partialorder %v4409_v1, %v653_v19  ;;  %v6281_v0 = vmov 0  ;;  %v605_v19 = vadd.s32 184, %v4306_v44 }
  0xda   : > { %3404 = vmatprep.subr.bf16.mxu0 %v1130_v3  ;;  %v6278_v2 = vsel %vm4562_vm10, 4294967295, %v6277_v2  ;;  %vm899_vm4 = vmand %vm835_vm2, %vm867_vm11  ;;  %3445 = vmatprep.subr.bf16.mxu1 %v1130_v3  ;;  %vm821_vm1 = vcmp.eq.f32.partialorder %v4409_v1, %v648_v11  ;;  %vm789_vm3 = vcmp.gt.f32.partialorder %v4409_v1, %v648_v11  ;;  %vm870_vm11 = vcmp.le.s32.totalorder %v4315_v50, %v603_v10  ;;  %v1148_v10 = vld [vmem:[#allocation2 + $0x88] sm:$0xff] }
  0xdb   : > { %vm4571_vm7 = vmor %vm803_vm8, %vm899_vm4  ;;  %v604_v11 = vadd.s32 176, %v4306_v44 }
  0xdc   : > { %v733_v15 = vpop.permute.xlu1 %732  ;;  %vm886_vm12 = vmand %vm822_vm15, %vm854_vm5  ;;  %vm869_vm5 = vcmp.le.s32.totalorder %v4315_v50, %v602_v16 }
  0xdd   : > { %3405 = vmatpush3.bf16.msra.mxu0 %v1130_v3  ;;  %v728_v8 = vpop.permute.xlu0 %727  ;;  %vm4579_vm2 = vmor %vm790_vm9, %vm886_vm12  ;;  %3453 = vmatpush3.bf16.msra.mxu1 %v1130_v3  ;;  %vm838_vm8 = vcmp.eq.f32.partialorder %v4409_v1, %v733_v15  ;;  %vm806_vm0 = vcmp.gt.f32.partialorder %v4409_v1, %v733_v15  ;;  %v590_v15 = vadd.s32 64, %v4306_v44 }
  0xde   : > { %v6282_v0 = vsel %vm4579_vm2, 4294967295, %v6281_v0  ;;  %vm885_vm4 = vmand %vm821_vm1, %vm853_vm6  ;;  %vm837_vm15 = vcmp.eq.f32.partialorder %v4409_v1, %v728_v8  ;;  %vm805_vm12 = vcmp.gt.f32.partialorder %v4409_v1, %v728_v8 }
  0xdf   : > { %vm4586_vm10 = vmor %vm789_vm3, %vm885_vm4  ;;  %vm856_vm3 = vcmp.le.s32.totalorder %v4315_v50, %v589_v29 }
  0xe0   : > { %v663_v31 = vpop.permute.xlu1 %662  ;;  %vm902_vm9 = vmand %vm838_vm8, %vm870_vm11  ;;  %vm6289_vm8 = vnez %v6278_v2  ;;  %v591_v2 = vadd.s32 72, %v4306_v44 }
  0xe1   : > { %v658_v14 = vpop.permute.xlu0 %657  ;;  %vm4594_vm2 = vmor %vm806_vm0, %vm902_vm9  ;;  %vm824_vm4 = vcmp.eq.f32.partialorder %v4409_v1, %v663_v31  ;;  %vm792_vm11 = vcmp.gt.f32.partialorder %v4409_v1, %v663_v31  ;;  %vm855_vm9 = vcmp.le.s32.totalorder %v4315_v50, %v588_v46  ;;  %v606_v31 = vadd.s32 192, %v4306_v44 }
  0xe2   : > { %vm901_vm1 = vmand %vm837_vm15, %vm869_vm5 }
  0xe3   : > { %vm4599_vm6 = vmor %vm805_vm12, %vm901_vm1  ;;  %vm823_vm12 = vcmp.eq.f32.partialorder %v4409_v1, %v658_v14 }
  0xe4   : > { %v743_v24 = vpop.permute.xlu1 %742  ;;  %vm3330_vm0 = vmpackc.low %vm4545_vm13, %vm4553_vm14  ;;  %vm791_vm14 = vcmp.gt.f32.partialorder %v4409_v1, %v658_v14 }
  0xe5   : > { %v738_v3 = vpop.permute.xlu0 %737  ;;  %3407 = vmatmul.mubr.msk.bf16.vlgmr.msra.gmra.mrb[0].mxu0 %vm3330_vm0, %v3834_v27  ;;  %vm3346_vm5 = vmpackc.low %vm6289_vm8, %vm4571_vm7  ;;  %vm6292_vm7 = vnez %v6282_v0  ;;  %vm840_vm0 = vcmp.eq.f32.partialorder %v4409_v1, %v743_v24  ;;  %vm808_vm8 = vcmp.gt.f32.partialorder %v4409_v1, %v743_v24  ;;  %v592_v24 = vadd.s32 80, %v4306_v44 }
  0xe6   : > { %3423 = vmatmul.mubr.msk.bf16.vlgmr.msra.gmra.mrb[0].mxu1 %vm3346_vm5, %v3834_v27  ;;  %vm888_vm15 = vmand %vm824_vm4, %vm856_vm3  ;;  %vm872_vm4 = vcmp.le.s32.totalorder %v4315_v50, %v605_v19  ;;  %vm871_vm5 = vcmp.le.s32.totalorder %v4315_v50, %v604_v11 }
  0xe7   : > { %vm4619_vm13 = vmor %vm792_vm11, %vm888_vm15  ;;  %vm839_vm15 = vcmp.eq.f32.partialorder %v4409_v1, %v738_v3 }
  0xe8   : > { %v673_v63 = vpop.permute.xlu1 %672  ;;  %vm3332_vm1 = vmpackc.low %vm6292_vm7, %vm4586_vm10 }
  0xe9   : > { %v668_v39 = vpop.permute.xlu0 %667  ;;  %3410 = vmatprep.mubr.msk.bf16.mxu0 %vm3332_vm1, %v3834_v27  ;;  %vm887_vm3 = vmand %vm823_vm12, %vm855_vm9  ;;  %vm807_vm12 = vcmp.gt.f32.partialorder %v4409_v1, %v738_v3 }
  0xea   : > { %vm4632_vm11 = vmor %vm791_vm14, %vm887_vm3  ;;  %vm794_vm3 = vcmp.gt.f32.partialorder %v4409_v1, %v673_v63 }
  0xeb   : > { %vm3348_vm10 = vmpackc.low %vm4594_vm2, %vm4599_vm6  ;;  %vm858_vm2 = vcmp.le.s32.totalorder %v4315_v50, %v591_v2  ;;  %vm826_vm6 = vcmp.eq.f32.partialorder %v4409_v1, %v673_v63  ;;  %v609_v63 = vadd.s32 216, %v4306_v44 }
  0xec   : > { %v753_v5 = vpop.permute.xlu1 %752  ;;  %3426 = vmatprep.mubr.msk.bf16.mxu1 %vm3348_vm10, %v3834_v27  ;;  %vm904_vm9 = vmand %vm840_vm0, %vm872_vm4  ;;  %vm857_vm0 = vcmp.le.s32.totalorder %v4315_v50, %v590_v15 }
  0xed   : > { %v748_v16 = vpop.permute.xlu0 %747  ;;  %vm4647_vm14 = vmor %vm808_vm8, %vm904_vm9  ;;  %vm825_vm8 = vcmp.eq.f32.partialorder %v4409_v1, %v668_v39 }
  0xee   : > { %vm903_vm7 = vmand %vm839_vm15, %vm871_vm5  ;;  %vm793_vm5 = vcmp.gt.f32.partialorder %v4409_v1, %v668_v39  ;;  %v608_v39 = vadd.s32 208, %v4306_v44 }
  0xef   : > { %vm4653_vm1 = vmor %vm807_vm12, %vm903_vm7  ;;  %vm810_vm7 = vcmp.gt.f32.partialorder %v4409_v1, %v753_v5 }
  0xf0   : > { %vm3334_vm4 = vmpackc.low %vm4619_vm13, %vm4632_vm11  ;;  %v683_v29 = vpop.permute.xlu1 %682  ;;  %vm874_vm13 = vcmp.le.s32.totalorder %v4315_v50, %v607_v43  ;;  %vm842_vm11 = vcmp.eq.f32.partialorder %v4409_v1, %v753_v5  ;;  %v1137_v43 = vld [vmem:[#allocation2 + $0x30] sm:$0xff] }
  0xf1   : > { %3411 = vmatmul.mubr.msk.bf16.gmra.mrb[4].mxu0 %vm3334_vm4, %v3834_v27  ;;  %vm890_vm10 = vmand %vm826_vm6, %vm858_vm2  ;;  %v678_v62 = vpop.permute.xlu0 %677  ;;  %vm873_vm6 = vcmp.le.s32.totalorder %v4315_v50, %v606_v31 }
  0xf2   : > { %vm4668_vm15 = vmor %vm794_vm3, %vm890_vm10  ;;  %vm841_vm3 = vcmp.eq.f32.partialorder %v4409_v1, %v748_v16 }
  0xf3   : > { %vm889_vm9 = vmand %vm825_vm8, %vm857_vm0  ;;  %vm809_vm0 = vcmp.gt.f32.partialorder %v4409_v1, %v748_v16 }
  0xf4   : > { %vm4674_vm12 = vmor %vm793_vm5, %vm889_vm9  ;;  %v763_v3 = vpop.permute.xlu1 %762  ;;  %vm860_vm5 = vcmp.le.s32.totalorder %v4315_v50, %v593_v28  ;;  %vm796_vm9 = vcmp.gt.f32.partialorder %v4409_v1, %v683_v29  ;;  %v1147_v28 = vld [vmem:[#allocation2 + $0x80] sm:$0xff] }
  0xf5   : > { %vm3350_vm2 = vmpackc.low %vm4647_vm14, %vm4653_vm1  ;;  %vm828_vm14 = vcmp.eq.f32.partialorder %v4409_v1, %v683_v29  ;;  %v758_v51 = vpop.permute.xlu0 %757  ;;  %v1135_v29 = vld [vmem:[#allocation2 + $0x20] sm:$0xff] }
  0xf6   : > { %3427 = vmatmul.mubr.msk.bf16.gmra.mrb[4].mxu1 %vm3350_vm2, %v3834_v27  ;;  %vm906_vm4 = vmand %vm842_vm11, %vm874_vm13  ;;  %vm859_vm11 = vcmp.le.s32.totalorder %v4315_v50, %v592_v24 }
  0xf7   : > { %vm4689_vm8 = vmor %vm810_vm7, %vm906_vm4  ;;  %vm827_vm7 = vcmp.eq.f32.partialorder %v4409_v1, %v678_v62 }
  0xf8   : > { %vm905_vm10 = vmand %vm841_vm3, %vm873_vm6  ;;  %vm795_vm6 = vcmp.gt.f32.partialorder %v4409_v1, %v678_v62  ;;  %v693_v2 = vpop.permute.xlu1 %692 }
  0xf9   : > { %vm4695_vm1 = vmor %vm809_vm0, %vm905_vm10  ;;  %vm876_vm0 = vcmp.le.s32.totalorder %v4315_v50, %v609_v63  ;;  %vm812_vm10 = vcmp.gt.f32.partialorder %v4409_v1, %v763_v3  ;;  %v688_v15 = vpop.permute.xlu0 %687 }
  0xfa   : > { %vm3336_vm13 = vmpackc.low %vm4668_vm15, %vm4674_vm12  ;;  %vm844_vm15 = vcmp.eq.f32.partialorder %v4409_v1, %v763_v3 }
  0xfb   : > { %3414 = vmatprep.mubr.msk.bf16.mxu0 %vm3336_vm13, %v3834_v27  ;;  %vm892_vm2 = vmand %vm828_vm14, %vm860_vm5  ;;  %vm875_vm14 = vcmp.le.s32.totalorder %v4315_v50, %v608_v39 }
  0xfc   : > { %vm4710_vm3 = vmor %vm796_vm9, %vm892_vm2  ;;  %vm843_vm9 = vcmp.eq.f32.partialorder %v4409_v1, %v758_v51  ;;  %v773_v16 = vpop.permute.xlu1 %772 }
  0xfd   : > { %vm891_vm4 = vmand %vm827_vm7, %vm859_vm11  ;;  %vm811_vm11 = vcmp.gt.f32.partialorder %v4409_v1, %v758_v51  ;;  %v768_v0 = vpop.permute.xlu0 %767 }
  0xfe   : > { %vm4716_vm12 = vmor %vm795_vm6, %vm891_vm4  ;;  %vm830_vm6 = vcmp.eq.f32.partialorder %v4409_v1, %v693_v2 }
  0xff   : > { %vm3352_vm5 = vmpackc.low %vm4689_vm8, %vm4695_vm1  ;;  %vm798_vm8 = vcmp.gt.f32.partialorder %v4409_v1, %v693_v2 }
 0x100   : > { %3430 = vmatprep.mubr.msk.bf16.mxu1 %vm3352_vm5, %v3834_v27  ;;  %vm908_vm13 = vmand %vm844_vm15, %vm876_vm0  ;;  %vm829_vm0 = vcmp.eq.f32.partialorder %v4409_v1, %v688_v15  ;;  %vm6315_vm15 = vcmp.le.s32.totalorder %v4315_v50, %v4318_v13  ;;  %vm797_vm5 = vcmp.gt.f32.partialorder %v4409_v1, %v688_v15  ;;  %v703_v13 = vpop.permute.xlu1 %702 }
 0x101   : > { %vm4729_vm7 = vmor %vm812_vm10, %vm908_vm13 }
 0x102   : > { %vm907_vm2 = vmand %vm843_vm9, %vm875_vm14  ;;  %vm6318_vm9 = vcmp.le.s32.totalorder %v4315_v50, %v4321_v42  ;;  %v698_v42 = vpop.permute.xlu0 %697 }
 0x103   : > { %vm4734_vm4 = vmor %vm811_vm11, %vm907_vm2  ;;  %vm814_vm11 = vcmp.gt.f32.partialorder %v4409_v1, %v773_v16 }
 0x104   : > { %vm3338_vm1 = vmpackc.low %vm4710_vm3, %vm4716_vm12  ;;  %vm846_vm3 = vcmp.eq.f32.partialorder %v4409_v1, %v773_v16 }
 0x105   : > { %3415 = vmatmul.mubr.msk.bf16.gmra.mrb[8].mxu0 %vm3338_vm1, %v3834_v27  ;;  %vm894_vm10 = vmand %vm830_vm6, %vm6315_vm15  ;;  %vm845_vm6 = vcmp.eq.f32.partialorder %v4409_v1, %v768_v0 }
 0x106   : > { %vm4749_vm14 = vmor %vm798_vm8, %vm894_vm10  ;;  %vm6321_vm8 = vcmp.le.s32.totalorder %v4315_v50, %v4328_v38  ;;  %vm6324_vm10 = vcmp.le.s32.totalorder %v4315_v50, %v4331_v55  ;;  %v783_v38 = vpop.permute.xlu1 %782  ;;  %v778_v62 = vpop.permute.xlu0 %777 }
 0x107   : > { %vm893_vm13 = vmand %vm829_vm0, %vm6318_vm9  ;;  %vm813_vm0 = vcmp.gt.f32.partialorder %v4409_v1, %v768_v0  ;;  %vm800_vm9 = vcmp.gt.f32.partialorder %v4409_v1, %v703_v13 }
 0x108   : > { %vm4757_vm12 = vmor %vm797_vm5, %vm893_vm13 }
 0x109   : > { %vm3354_vm2 = vmpackc.low %vm4729_vm7, %vm4734_vm4  ;;  %vm832_vm7 = vcmp.eq.f32.partialorder %v4409_v1, %v703_v13 }
 0x10a   : > { %3431 = vmatmul.mubr.msk.bf16.gmra.mrb[8].mxu1 %vm3354_vm2, %v3834_v27  ;;  %vm910_vm1 = vmand %vm846_vm3, %vm6321_vm8  ;;  %vm831_vm3 = vcmp.eq.f32.partialorder %v4409_v1, %v698_v42 }
 0x10b   : > { %vm4772_vm15 = vmor %vm814_vm11, %vm910_vm1  ;;  %vm6327_vm11 = vcmp.le.s32.totalorder %v4315_v50, %v4338_v32  ;;  %vm6330_vm1 = vcmp.le.s32.totalorder %v4315_v50, %v4341_v56  ;;  %v1133_v56 = vld [vmem:[#allocation2 + $0x10] sm:$0xff] }
 0x10c   : > { %vm909_vm5 = vmand %vm845_vm6, %vm6324_vm10  ;;  %vm799_vm6 = vcmp.gt.f32.partialorder %v4409_v1, %v698_v42  ;;  %vm816_vm10 = vcmp.gt.f32.partialorder %v4409_v1, %v783_v38  ;;  %v1149_v32 = vld [vmem:[#allocation2 + $0x90] sm:$0xff]  ;;  %v1138_v42 = vld [vmem:[#allocation2 + $0x38] sm:$0xff] }
 0x10d   : > { %vm4780_vm4 = vmor %vm813_vm0, %vm909_vm5 }
 0x10e   : > { %vm3340_vm13 = vmpackc.low %vm4749_vm14, %vm4757_vm12  ;;  %vm848_vm12 = vcmp.eq.f32.partialorder %v4409_v1, %v783_v38  ;;  %v1136_v38 = vld [vmem:[#allocation2 + $0x28] sm:$0xff] }
 0x10f   : > { %3418 = vmatprep.mubr.msk.bf16.mxu0 %vm3340_vm13, %v3834_v27  ;;  %vm896_vm2 = vmand %vm832_vm7, %vm6327_vm11  ;;  %vm847_vm7 = vcmp.eq.f32.partialorder %v4409_v1, %v778_v62 }
 0x110   : > { %vm4795_vm8 = vmor %vm800_vm9, %vm896_vm2  ;;  %vm6331_vm9 = vcmp.le.s32.totalorder %v4315_v50, %v4348_v48  ;;  %vm6332_vm2 = vcmp.le.s32.totalorder %v4315_v50, %v4351_v4  ;;  %v1131_v48 = vld [vmem:[#allocation2] sm:$0xff]  ;;  %v1150_v4 = vld [vmem:[#allocation2 + $0x98] sm:$0xff] }
 0x111   : > { %vm895_vm14 = vmand %vm831_vm3, %vm6330_vm1  ;;  %vm815_vm3 = vcmp.gt.f32.partialorder %v4409_v1, %v778_v62  ;;  %v1134_v1 = vld [vmem:[#allocation2 + $0x18] sm:$0xff]  ;;  %v1132_v50 = vld [vmem:[#allocation2 + $0x8] sm:$0xff] }
 0x112   : > { %vm927_vm0 = vmor %vm799_vm6, %vm895_vm14 }
 0x113   : > { %vm3356_vm5 = vmpackc.low %vm4772_vm15, %vm4780_vm4 }
 0x114   : > { %3434 = vmatprep.mubr.msk.bf16.mxu1 %vm3356_vm5, %v3834_v27  ;;  %vm912_vm13 = vmand %vm848_vm12, %vm6331_vm9 }
 0x115   : > { %vm944_vm11 = vmor %vm816_vm10, %vm912_vm13 }
 0x116   : > { %vm911_vm6 = vmand %vm847_vm7, %vm6332_vm2 }
 0x117   : > { %vm943_vm1 = vmor %vm815_vm3, %vm911_vm6 }
 0x118   : > { %vm3358_vm14 = vmpackc.low %vm944_vm11, %vm943_vm1 }
 0x119   : > { %vm3342_vm15 = vmpackc.low %vm4795_vm8, %vm927_vm0  ;;  %3435 = vmatmul.mubr.msk.bf16.gmra.mrb[12].mxu1 %vm3358_vm14, %v3834_v27 }
 0x11a   : > { %3419 = vmatmul.mubr.msk.bf16.gmra.mrb[12].mxu0 %vm3342_vm15, %v3834_v27 }
 0x1b8   : > { %v3408_v46 = vpop.f32.mrb[0].mxu0 }
 0x1b9   : > { %v1326_v24 = vadd.f32 %v3408_v46, %v1133_v56  ;;  %v3424_v3 = vpop.f32.mrb[0].mxu1  ;;  %v1197_v19 = vpop.f32.mrb[1].mxu0 }
 0x1ba   : > { %v1342_v51 = vadd.f32 %v3424_v3, %v1149_v32  ;;  %v1324_v11 = vadd.f32 %v1197_v19, %v1131_v48  ;;  %v1261_v63 = vpop.f32.mrb[1].mxu1  ;;  %v3409_v39 = vpop.f32.mrb[2].mxu0  ;;  %v1153_v32 = vld [vmem:[#allocation2 + $0xb0] sm:$0xff] }
 0x1bb   : > { %1358 = vst [vmem:[#allocation2 + $0x10] sm:$0xff] %v1326_v24  ;;  %v1340_v2 = vadd.f32 %v1261_v63, %v1147_v28  ;;  %v1327_v5 = vadd.f32 %v3409_v39, %v1134_v1  ;;  %v3425_v27 = vpop.f32.mrb[2].mxu1  ;;  %v1200_v15 = vpop.f32.mrb[3].mxu0  ;;  %v1151_v28 = vld [vmem:[#allocation2 + $0xa0] sm:$0xff]  ;;  %v1154_v24 = vld [vmem:[#allocation2 + $0xb8] sm:$0xff] }
 0x1bc   : > { %1374 = vst [vmem:[#allocation2 + $0x90] sm:$0xff] %v1342_v51  ;;  %1356 = vst [vmem:[#allocation2] sm:$0xff] %v1324_v11  ;;  %v1343_v44 = vadd.f32 %v3425_v27, %v1150_v4  ;;  %v1325_v16 = vadd.f32 %v1200_v15, %v1132_v50  ;;  %v1264_v8 = vpop.f32.mrb[3].mxu1  ;;  %v1152_v4 = vld [vmem:[#allocation2 + $0xa8] sm:$0xff]  ;;  %v1142_v27 = vld [vmem:[#allocation2 + $0x58] sm:$0xff] }
 0x1bd   : > { %1372 = vst [vmem:[#allocation2 + $0x80] sm:$0xff] %v1340_v2  ;;  %1359 = vst [vmem:[#allocation2 + $0x18] sm:$0xff] %v1327_v5  ;;  %v1341_v0 = vadd.f32 %v1264_v8, %v1148_v10  ;;  %v1141_v10 = vld [vmem:[#allocation2 + $0x50] sm:$0xff]  ;;  %v1139_v2 = vld [vmem:[#allocation2 + $0x40] sm:$0xff] }
 0x1be   : > { %1375 = vst [vmem:[#allocation2 + $0x98] sm:$0xff] %v1343_v44  ;;  %1357 = vst [vmem:[#allocation2 + $0x8] sm:$0xff] %v1325_v16  ;;  %v1140_v16 = vld [vmem:[#allocation2 + $0x48] sm:$0xff] }
 0x1bf   : > { %1373 = vst [vmem:[#allocation2 + $0x88] sm:$0xff] %v1341_v0 }
 0x1c4   : > { %v3412_v13 = vpop.f32.mrb[4].mxu0 }
 0x1c5   : > { %v1330_v31 = vadd.f32 %v3412_v13, %v1137_v43  ;;  %v1213_v14 = vpop.f32.mrb[5].mxu0  ;;  %v1157_v13 = vld [vmem:[#allocation2 + $0xd0] sm:$0xff] }
 0x1c6   : > { %v1328_v55 = vadd.f32 %v1213_v14, %v1135_v29  ;;  %v3413_v62 = vpop.f32.mrb[6].mxu0 }
 0x1c7   : > { %1362 = vst [vmem:[#allocation2 + $0x30] sm:$0xff] %v1330_v31  ;;  %v1331_v56 = vadd.f32 %v3413_v62, %v1138_v42  ;;  %v1216_v48 = vpop.f32.mrb[7].mxu0  ;;  %v1155_v31 = vld [vmem:[#allocation2 + $0xc0] sm:$0xff] }
 0x1c8   : > { %1360 = vst [vmem:[#allocation2 + $0x20] sm:$0xff] %v1328_v55  ;;  %v1329_v46 = vadd.f32 %v1216_v48, %v1136_v38  ;;  %v1158_v38 = vld [vmem:[#allocation2 + $0xd8] sm:$0xff] }
 0x1c9   : > { %1363 = vst [vmem:[#allocation2 + $0x38] sm:$0xff] %v1331_v56  ;;  %v3428_v1 = vpop.f32.mrb[4].mxu1  ;;  %v1156_v56 = vld [vmem:[#allocation2 + $0xc8] sm:$0xff] }
 0x1ca   : > { %v1346_v3 = vadd.f32 %v3428_v1, %v1153_v32  ;;  %1361 = vst [vmem:[#allocation2 + $0x28] sm:$0xff] %v1329_v46  ;;  %v1277_v19 = vpop.f32.mrb[5].mxu1 }
 0x1cb   : > { %v1344_v50 = vadd.f32 %v1277_v19, %v1151_v28  ;;  %v3429_v51 = vpop.f32.mrb[6].mxu1  ;;  %v1159_v19 = vld [vmem:[#allocation2 + $0xe0] sm:$0xff] }
 0x1cc   : > { %1378 = vst [vmem:[#allocation2 + $0xb0] sm:$0xff] %v1346_v3  ;;  %v1347_v11 = vadd.f32 %v3429_v51, %v1154_v24  ;;  %v1280_v63 = vpop.f32.mrb[7].mxu1  ;;  %v1161_v24 = vld [vmem:[#allocation2 + $0xf0] sm:$0xff]  ;;  %v1162_v51 = vld [vmem:[#allocation2 + $0xf8] sm:$0xff] }
 0x1cd   : > { %1376 = vst [vmem:[#allocation2 + $0xa0] sm:$0xff] %v1344_v50  ;;  %v1345_v39 = vadd.f32 %v1280_v63, %v1152_v4  ;;  %v1145_v3 = vld [vmem:[#allocation2 + $0x70] sm:$0xff]  ;;  %v1143_v4 = vld [vmem:[#allocation2 + $0x60] sm:$0xff]  ;;  %v1146_v63 = vld [vmem:[#allocation2 + $0x78] sm:$0xff] }
 0x1ce   : > { %1379 = vst [vmem:[#allocation2 + $0xb8] sm:$0xff] %v1347_v11 }
 0x1cf   : > { %1377 = vst [vmem:[#allocation2 + $0xa8] sm:$0xff] %v1345_v39 }
 0x1d8   : > { %v3416_v5 = vpop.f32.mrb[8].mxu0 }
 0x1d9   : > { %v1334_v15 = vadd.f32 %v3416_v5, %v1141_v10  ;;  %v1229_v44 = vpop.f32.mrb[9].mxu0 }
 0x1da   : > { %v1332_v8 = vadd.f32 %v1229_v44, %v1139_v2  ;;  %v3417_v0 = vpop.f32.mrb[10].mxu0  ;;  %v1160_v2 = vld [vmem:[#allocation2 + $0xe8] sm:$0xff] }
 0x1db   : > { %1366 = vst [vmem:[#allocation2 + $0x50] sm:$0xff] %v1334_v15  ;;  %v1335_v43 = vadd.f32 %v3417_v0, %v1142_v27  ;;  %v1232_v29 = vpop.f32.mrb[11].mxu0  ;;  %v1144_v15 = vld [vmem:[#allocation2 + $0x68] sm:$0xff] }
 0x1dc   : > { %1364 = vst [vmem:[#allocation2 + $0x40] sm:$0xff] %v1332_v8  ;;  %v1333_v42 = vadd.f32 %v1232_v29, %v1140_v16 }
 0x1dd   : > { %1367 = vst [vmem:[#allocation2 + $0x58] sm:$0xff] %v1335_v43  ;;  %v3432_v14 = vpop.f32.mrb[8].mxu1 }
 0x1de   : > { %1365 = vst [vmem:[#allocation2 + $0x48] sm:$0xff] %v1333_v42  ;;  %v1350_v55 = vadd.f32 %v3432_v14, %v1157_v13  ;;  %v1293_v62 = vpop.f32.mrb[9].mxu1 }
 0x1df   : > { %v1348_v32 = vadd.f32 %v1293_v62, %v1155_v31  ;;  %v3433_v48 = vpop.f32.mrb[10].mxu1 }
 0x1e0   : > { %1382 = vst [vmem:[#allocation2 + $0xd0] sm:$0xff] %v1350_v55  ;;  %v1351_v46 = vadd.f32 %v3433_v48, %v1158_v38  ;;  %v1296_v28 = vpop.f32.mrb[11].mxu1 }
 0x1e1   : > { %1380 = vst [vmem:[#allocation2 + $0xc0] sm:$0xff] %v1348_v32  ;;  %v1349_v1 = vadd.f32 %v1296_v28, %v1156_v56 }
 0x1e2   : > { %1383 = vst [vmem:[#allocation2 + $0xd8] sm:$0xff] %v1351_v46 }
 0x1e3   : > { %1381 = vst [vmem:[#allocation2 + $0xc8] sm:$0xff] %v1349_v1 }
 0x1ec   : > { %v3436_v50 = vpop.f32.mrb[12].mxu1 }
 0x1ed   : > { %v3420_v11 = vpop.f32.mrb[12].mxu0  ;;  %v1354_v39 = vadd.f32 %v3436_v50, %v1161_v24  ;;  %v1309_v10 = vpop.f32.mrb[13].mxu1  ;;  %1391 = sbr.rel (%p3360_p2) target bundleno = 1634 (0x662), region = 48 }
 0x1ee   : > { %v1338_v5 = vadd.f32 %v3420_v11, %v1145_v3  ;;  %v1245_v27 = vpop.f32.mrb[13].mxu0  ;;  %v1352_v44 = vadd.f32 %v1309_v10, %v1159_v19  ;;  %v3437_v16 = vpop.f32.mrb[14].mxu1 }
 0x1ef   : > { %v1336_v8 = vadd.f32 %v1245_v27, %v1143_v4  ;;  %v3421_v0 = vpop.f32.mrb[14].mxu0  ;;  %1386 = vst [vmem:[#allocation2 + $0xf0] sm:$0xff] %v1354_v39  ;;  %v1355_v43 = vadd.f32 %v3437_v16, %v1162_v51  ;;  %v1312_v29 = vpop.f32.mrb[15].mxu1 }
 0x1f0   : > { %1370 = vst [vmem:[#allocation2 + $0x70] sm:$0xff] %v1338_v5  ;;  %v1339_v13 = vadd.f32 %v3421_v0, %v1146_v63  ;;  %v1248_v42 = vpop.f32.mrb[15].mxu0  ;;  %1384 = vst [vmem:[#allocation2 + $0xe0] sm:$0xff] %v1352_v44  ;;  %v1353_v31 = vadd.f32 %v1312_v29, %v1160_v2 }
 0x1f1   : > { %1368 = vst [vmem:[#allocation2 + $0x60] sm:$0xff] %v1336_v8  ;;  %v1337_v14 = vadd.f32 %v1248_v42, %v1144_v15  ;;  %1387 = vst [vmem:[#allocation2 + $0xf8] sm:$0xff] %v1355_v43 }
 0x1f2   : > { %1371 = vst [vmem:[#allocation2 + $0x78] sm:$0xff] %v1339_v13  ;;  %1385 = vst [vmem:[#allocation2 + $0xe8] sm:$0xff] %v1353_v31 }
 0x1f3   : > { %1369 = vst [vmem:[#allocation2 + $0x68] sm:$0xff] %v1337_v14 }
 0x1f4   : > { %v4822_v38 = vld [vmem:[#allocation2] sm:$0xff]  ;;  %vm1584_vm4 = vcmask 7168   ;;  %s3835_s28 = smov 127   ;;  %v4836_v1 = vld [vmem:[#allocation2 + $0x8] sm:$0xff]  ;;  %v4844_v3 = vld [vmem:[#allocation2 + $0x50] sm:$0xff]  ;;  %s3836_s21 = smov 1  }
 0x1f5   : > { %6333 = vst [vmem:[#allocation59_spill] sm:$0xff] %v4822_v38  ;;  %1456 = vrot.lane.b32.xlu0 %v4822_v38, %s3835_s28  ;;  %v1585_v55 = vsel %vm1584_vm4, %v3991_v21, 0.0  ;;  %v1586_v62 = vsel %vm1584_vm4, %v3986_v18, 0.0  ;;  %v1588_v56 = vsel %vm1584_vm4, %v4011_v37, 0.0  ;;  %v4832_v32 = vld [vmem:[#allocation2 + $0x40] sm:$0xff]  ;;  %v1590_v46 = vsel %vm1584_vm4, %v4006_v33, 0.0  ;;  %1458 = vrot.lane.b32.xlu1 %v4836_v1, %s3835_s28 }
 0x1f6   : > { %6334 = vst [vmem:[#allocation60_spill] sm:$0xff] %v4832_v32  ;;  %v1587_v48 = vadd.f32 %v1586_v62, %v1585_v55  ;;  %v1592_v24 = vsel %vm1584_vm4, %v4041_v61, 0.0  ;;  %v4846_v4 = vld [vmem:[#allocation2 + $0x10] sm:$0xff]  ;;  %v1594_v50 = vsel %vm1584_vm4, %v4037_v59, 0.0  ;;  %v1596_v11 = vsel %vm1584_vm4, %v4081_v23, 0.0  ;;  %v4858_v10 = vld [vmem:[#allocation2 + $0x18] sm:$0xff] }
 0x1f7   : > { %v1598_v2 = vsel %vm1584_vm4, %v4077_v20, 0.0  ;;  %v1600_v27 = vsel %vm1584_vm4, %v4121_v60, 0.0  ;;  %v4868_v15 = vld [vmem:[#allocation2 + $0x70] sm:$0xff]  ;;  %v4870_v16 = vld [vmem:[#allocation2 + $0x20] sm:$0xff]  ;;  %v1602_v8 = vsel %vm1584_vm4, %v4117_v57, 0.0  ;;  %v1604_v43 = vsel %vm1584_vm4, %v4161_v58, 0.0 }
 0x1f8   : > { %v1589_v28 = vadd.f32 %v1588_v56, %v1587_v48  ;;  %v4856_v63 = vld [vmem:[#allocation2 + $0x60] sm:$0xff]  ;;  %v4882_v42 = vld [vmem:[#allocation2 + $0x28] sm:$0xff]  ;;  %v1606_v31 = vsel %vm1584_vm4, %v4157_v53, 0.0  ;;  %v1608_v55 = vsel %vm1584_vm4, %v4201_v12, 0.0  ;;  %v4892_v62 = vld [vmem:[#allocation2 + $0x90] sm:$0xff] }
 0x1f9   : > { %1472 = vrot.lane.b32.xlu0 %v4832_v32, %s3835_s28  ;;  %1460 = vrot.lane.b32.xlu1 %v4846_v4, %s3835_s28  ;;  %v4880_v29 = vld [vmem:[#allocation2 + $0x80] sm:$0xff]  ;;  %v4894_v48 = vld [vmem:[#allocation2 + $0x30] sm:$0xff] }
 0x1fa   : > { %v1591_v19 = vadd.f32 %v1590_v46, %v1589_v28  ;;  %v1610_v46 = vsel %vm1584_vm4, %v4197_v41, 0.0 }
 0x1fc   : > { %v1593_v51 = vadd.f32 %v1592_v24, %v1591_v19  ;;  %v1612_v24 = vsel %vm1584_vm4, %v4241_v6, 0.0  ;;  %v4904_v19 = vld [vmem:[#allocation2 + $0xa0] sm:$0xff] }
 0x1fd   : > { %1476 = vrot.lane.b32.xlu0 %v4844_v3, %s3835_s28  ;;  %1462 = vrot.lane.b32.xlu1 %v4858_v10, %s3835_s28 }
 0x1fe   : > { %v1595_v39 = vadd.f32 %v1594_v50, %v1593_v51  ;;  %v4906_v51 = vld [vmem:[#allocation2 + $0x38] sm:$0xff] }
 0x1ff   : > { %6335 = vst [vmem:[#allocation61_spill] sm:$0xff] %v4906_v51 }
 0x200   : > { %v1597_v5 = vadd.f32 %v1596_v11, %v1595_v39  ;;  %v1614_v11 = vsel %vm1584_vm4, %v4237_v52, 0.0 }
 0x201   : > { %1480 = vrot.lane.b32.xlu0 %v4856_v63, %s3835_s28  ;;  %1464 = vrot.lane.b32.xlu1 %v4870_v16, %s3835_s28 }
 0x202   : > { %v1599_v44 = vadd.f32 %v1598_v2, %v1597_v5  ;;  %v1616_v2 = vsel %vm1584_vm4, %v3999_v26, 0.0  ;;  %v4916_v5 = vld [vmem:[#allocation2 + $0xb0] sm:$0xff] }
 0x203   : > { %6336 = vst [vmem:[#allocation62_spill] sm:$0xff] %v4916_v5 }
 0x204   : > { %v1601_v0 = vadd.f32 %v1600_v27, %v1599_v44  ;;  %v4918_v44 = vld [vmem:[#allocation2 + $0x48] sm:$0xff] }
 0x205   : > { %1484 = vrot.lane.b32.xlu0 %v4868_v15, %s3835_s28  ;;  %1466 = vrot.lane.b32.xlu1 %v4882_v42, %s3835_s28  ;;  %6337 = vst [vmem:[#allocation63_spill] sm:$0xff] %v4918_v44 }
 0x206   : > { %v1603_v13 = vadd.f32 %v1602_v8, %v1601_v0  ;;  %v1618_v8 = vsel %vm1584_vm4, %v3996_v25, 0.0 }
 0x208   : > { %v1605_v14 = vadd.f32 %v1604_v43, %v1603_v13  ;;  %v1620_v43 = vsel %vm1584_vm4, %v4025_v49, 0.0  ;;  %v4928_v13 = vld [vmem:[#allocation2 + $0xc0] sm:$0xff] }
 0x209   : > { %1488 = vrot.lane.b32.xlu0 %v4880_v29, %s3835_s28  ;;  %1468 = vrot.lane.b32.xlu1 %v4894_v48, %s3835_s28  ;;  %6338 = vst [vmem:[#allocation64_spill] sm:$0xff] %v4928_v13 }
 0x20a   : > { %v1607_v56 = vadd.f32 %v1606_v31, %v1605_v14  ;;  %v4930_v14 = vld [vmem:[#allocation2 + $0x58] sm:$0xff] }
 0x20c   : > { %v1609_v28 = vadd.f32 %v1608_v55, %v1607_v56  ;;  %v1622_v55 = vsel %vm1584_vm4, %v4021_v47, 0.0 }
 0x20d   : > { %1492 = vrot.lane.b32.xlu0 %v4892_v62, %s3835_s28  ;;  %1470 = vrot.lane.b32.xlu1 %v4906_v51, %s3835_s28 }
 0x20e   : > { %v1611_v50 = vadd.f32 %v1610_v46, %v1609_v28  ;;  %v1624_v46 = vsel %vm1584_vm4, %v4061_v9, 0.0  ;;  %v4940_v28 = vld [vmem:[#allocation2 + $0xd0] sm:$0xff] }
 0x20f   : > { %6339 = vst [vmem:[#allocation65_spill] sm:$0xff] %v4940_v28 }
 0x210   : > { %v1613_v39 = vadd.f32 %v1612_v24, %v1611_v50  ;;  %v4942_v50 = vld [vmem:[#allocation2 + $0x68] sm:$0xff] }
 0x211   : > { %1496 = vrot.lane.b32.xlu0 %v4904_v19, %s3835_s28  ;;  %1474 = vrot.lane.b32.xlu1 %v4918_v44, %s3835_s28 }
 0x212   : > { %v1615_v27 = vadd.f32 %v1614_v11, %v1613_v39  ;;  %v1626_v11 = vsel %vm1584_vm4, %v4057_v7, 0.0 }
 0x214   : > { %v1617_v0 = vadd.f32 %v1616_v2, %v1615_v27  ;;  %v1628_v2 = vsel %vm1584_vm4, %v4101_v40, 0.0 }
 0x215   : > { %1500 = vrot.lane.b32.xlu0 %v4916_v5, %s3835_s28  ;;  %1478 = vrot.lane.b32.xlu1 %v4930_v14, %s3835_s28 }
 0x216   : > { %v1619_v31 = vadd.f32 %v1618_v8, %v1617_v0  ;;  %v4952_v8 = vld [vmem:[#allocation2 + $0x78] sm:$0xff]  ;;  %v1630_v0 = vsel %vm1584_vm4, %v4097_v36, 0.0 }
 0x218   : > { %v1621_v56 = vadd.f32 %v1620_v43, %v1619_v31  ;;  %v1632_v31 = vsel %vm1584_vm4, %v4141_v22, 0.0 }
 0x219   : > { %1504 = vrot.lane.b32.xlu0 %v4928_v13, %s3835_s28  ;;  %1482 = vrot.lane.b32.xlu1 %v4942_v50, %s3835_s28  ;;  %v1642_v13 = vsel %vm1584_vm4, %v4217_v54, 0.0 }
 0x21a   : > { %v1623_v24 = vadd.f32 %v1622_v55, %v1621_v56  ;;  %v4960_v56 = vld [vmem:[#allocation2 + $0x88] sm:$0xff] }
 0x21c   : > { %v1625_v39 = vadd.f32 %v1624_v46, %v1623_v24  ;;  %v1634_v46 = vsel %vm1584_vm4, %v4137_v17, 0.0 }
 0x21d   : > { %1508 = vrot.lane.b32.xlu0 %v4940_v28, %s3835_s28  ;;  %1486 = vrot.lane.b32.xlu1 %v4952_v8, %s3835_s28 }
 0x21e   : > { %v1627_v27 = vadd.f32 %v1626_v11, %v1625_v39  ;;  %v1636_v11 = vsel %vm1584_vm4, %v4181_v34, 0.0 }
 0x220   : > { %v1629_v43 = vadd.f32 %v1628_v2, %v1627_v27  ;;  %v4968_v2 = vld [vmem:[#allocation2 + $0x98] sm:$0xff]  ;;  %v1638_v27 = vsel %vm1584_vm4, %v4177_v30, 0.0 }
 0x221   : > { %1490 = vrot.lane.b32.xlu1 %v4960_v56, %s3835_s28 }
 0x222   : > { %v1631_v55 = vadd.f32 %v1630_v0, %v1629_v43  ;;  %v1640_v0 = vsel %vm1584_vm4, %v4221_v45, 0.0 }
 0x224   : > { %v1633_v24 = vadd.f32 %v1632_v31, %v1631_v55  ;;  %v4976_v31 = vld [vmem:[#allocation2 + $0xa8] sm:$0xff] }
 0x225   : > { %1494 = vrot.lane.b32.xlu1 %v4968_v2, %s3835_s28 }
 0x226   : > { %v1635_v39 = vadd.f32 %v1634_v46, %v1633_v24  ;;  %v4982_v46 = vld [vmem:[#allocation2 + $0xb8] sm:$0xff] }
 0x227   : > { %6340 = vst [vmem:[#allocation66_spill] sm:$0xff] %v4982_v46 }
 0x228   : > { %v1637_v28 = vadd.f32 %v1636_v11, %v1635_v39  ;;  %v1644_v11 = vsel %vm1584_vm4, %v4261_v35, 0.0  ;;  %v4988_v39 = vld [vmem:[#allocation2 + $0xc8] sm:$0xff] }
 0x229   : > { %1498 = vrot.lane.b32.xlu1 %v4976_v31, %s3835_s28  ;;  %6341 = vst [vmem:[#allocation67_spill] sm:$0xff] %v4988_v39 }
 0x22a   : > { %v1639_v43 = vadd.f32 %v1638_v27, %v1637_v28  ;;  %v6342_v27 = vld [vmem:[#allocation51_spill] sm:$0xff] }
 0x22c   : > { %v1641_v55 = vadd.f32 %v1640_v0, %v1639_v43  ;;  %v1646_v0 = vsel %vm1584_vm4, %v6342_v27, 0.0  ;;  %v4994_v43 = vld [vmem:[#allocation2 + $0xd8] sm:$0xff] }
 0x22d   : > { %1502 = vrot.lane.b32.xlu1 %v4982_v46, %s3835_s28  ;;  %6343 = vst [vmem:[#allocation68_spill] sm:$0xff] %v4994_v43 }
 0x22e   : > { %v1643_v24 = vadd.f32 %v1642_v13, %v1641_v55  ;;  %v4998_v13 = vld [vmem:[#allocation2 + $0xe8] sm:$0xff]  ;;  %v5002_v55 = vld [vmem:[#allocation2 + $0xf8] sm:$0xff] }
 0x22f   : > { %6344 = vst [vmem:[#allocation69_spill] sm:$0xff] %v4998_v13  ;;  %6345 = vst [vmem:[#allocation70_spill] sm:$0xff] %v5002_v55 }
 0x230   : > { %v1645_v28 = vadd.f32 %v1644_v11, %v1643_v24  ;;  %v5012_v24 = vld [vmem:[#allocation2 + $0xe0] sm:$0xff] }
 0x231   : > { %1506 = vrot.lane.b32.xlu1 %v4988_v39, %s3835_s28 }
 0x232   : > { %v1647_v5 = vadd.f32 %v1646_v0, %v1645_v28 }
 0x235   : > { %1510 = vrot.lane.b32.xlu1 %v4994_v43, %s3835_s28 }
 0x239   : > { %1514 = vrot.lane.b32.xlu1 %v4998_v13, %s3835_s28 }
 0x23c   : > { %1648 = vadd.xlane.f32.xlu0 %v1647_v5  ;;  %v5016_v5 = vld [vmem:[#allocation2 + $0xf0] sm:$0xff] }
 0x23d   : > { %1518 = vrot.lane.b32.xlu1 %v5002_v55, %s3835_s28 }
 0x241   : > { %1978 = vrot.lane.b32.xlu1 %v3991_v21, %s3836_s21 }
 0x245   : > { %2036 = vrot.lane.b32.xlu1 %v4217_v54, %s3836_s21 }
 0x249   : > { %2040 = vrot.lane.b32.xlu1 %v6342_v27, %s3836_s21 }
 0x252   : > { %1512 = vrot.lane.b32.xlu0 %v5012_v24, %s3835_s28 }
 0x256   : > { %1516 = vrot.lane.b32.xlu0 %v5016_v5, %s3835_s28 }
 0x25a   : > { %1980 = vrot.lane.b32.xlu0 %v3986_v18, %s3836_s21 }
 0x25e   : > { %1982 = vrot.lane.b32.xlu0 %v4011_v37, %s3836_s21 }
 0x262   : > { %1984 = vrot.lane.b32.xlu0 %v4006_v33, %s3836_s21 }
 0x266   : > { %1986 = vrot.lane.b32.xlu0 %v4041_v61, %s3836_s21 }
 0x267   : > { %v1457_v11 = vpop.permute.xlu0 %1456 }
 0x26a   : > { %1988 = vrot.lane.b32.xlu0 %v4037_v59, %s3836_s21 }
 0x26b   : > { %v5048_v28 = vpop.permute.xlu0 %1472 }
 0x26c   : > { %6346 = vst [vmem:[#allocation71_spill] sm:$0xff] %v5048_v28 }
 0x26e   : > { %1990 = vrot.lane.b32.xlu0 %v4081_v23, %s3836_s21 }
 0x26f   : > { %v5052_v0 = vpop.permute.xlu0 %1476 }
 0x272   : > { %1992 = vrot.lane.b32.xlu0 %v4077_v20, %s3836_s21 }
 0x273   : > { %v5058_v55 = vpop.permute.xlu0 %1480 }
 0x276   : > { %1994 = vrot.lane.b32.xlu0 %v4121_v60, %s3836_s21  ;;  %v1459_v60 = vpop.permute.xlu1 %1458 }
 0x277   : > { %v5062_v27 = vpop.permute.xlu0 %1484 }
 0x27a   : > { %1996 = vrot.lane.b32.xlu0 %v4117_v57, %s3836_s21  ;;  %v1461_v59 = vpop.permute.xlu1 %1460 }
 0x27b   : > { %v5068_v13 = vpop.permute.xlu0 %1488 }
 0x27e   : > { %1998 = vrot.lane.b32.xlu0 %v4161_v58, %s3836_s21 }
 0x27f   : > { %v5072_v54 = vpop.permute.xlu0 %1492 }
 0x282   : > { %2000 = vrot.lane.b32.xlu0 %v4157_v53, %s3836_s21 }
 0x283   : > { %v5078_v43 = vpop.permute.xlu0 %1496 }
 0x286   : > { %2002 = vrot.lane.b32.xlu0 %v4201_v12, %s3836_s21 }
 0x287   : > { %v5082_v39 = vpop.permute.xlu0 %1500 }
 0x288   : > { %6347 = vst [vmem:[#allocation72_spill] sm:$0xff] %v5082_v39 }
 0x28a   : > { %2004 = vrot.lane.b32.xlu0 %v4197_v41, %s3836_s21 }
 0x28b   : > { %v5088_v46 = vpop.permute.xlu0 %1504 }
 0x28c   : > { %6348 = vst [vmem:[#allocation73_spill] sm:$0xff] %v5088_v46 }
 0x28e   : > { %2006 = vrot.lane.b32.xlu0 %v4241_v6, %s3836_s21 }
 0x292   : > { %2008 = vrot.lane.b32.xlu0 %v4237_v52, %s3836_s21 }
 0x296   : > { %2010 = vrot.lane.b32.xlu0 %v3999_v26, %s3836_s21 }
 0x29a   : > { %2012 = vrot.lane.b32.xlu0 %v3996_v25, %s3836_s21 }
 0x29e   : > { %2014 = vrot.lane.b32.xlu0 %v4025_v49, %s3836_s21 }
 0x2a2   : > { %2016 = vrot.lane.b32.xlu0 %v4021_v47, %s3836_s21 }
 0x2a6   : > { %2018 = vrot.lane.b32.xlu0 %v4061_v9, %s3836_s21 }
 0x2aa   : > { %2020 = vrot.lane.b32.xlu0 %v4057_v7, %s3836_s21 }
 0x2ae   : > { %2022 = vrot.lane.b32.xlu0 %v4101_v40, %s3836_s21  ;;  %v5092_v40 = vpop.permute.xlu0 %1508 }
 0x2af   : > { %6349 = vst [vmem:[#allocation74_spill] sm:$0xff] %v5092_v40 }
 0x2b2   : > { %2024 = vrot.lane.b32.xlu0 %v4097_v36, %s3836_s21 }
 0x2b6   : > { %2026 = vrot.lane.b32.xlu0 %v4141_v22, %s3836_s21 }
 0x2ba   : > { %2028 = vrot.lane.b32.xlu0 %v4137_v17, %s3836_s21 }
 0x2be   : > { %2030 = vrot.lane.b32.xlu0 %v4181_v34, %s3836_s21 }
 0x2c2   : > { %2032 = vrot.lane.b32.xlu0 %v4177_v30, %s3836_s21 }
 0x2c6   : > { %2034 = vrot.lane.b32.xlu0 %v4221_v45, %s3836_s21  ;;  %v1463_v45 = vpop.permute.xlu1 %1462 }
 0x2c9   : > { %v1649_v36 = vpop.xlane.xlu0 %1648 }
 0x2ca   : > { %v1650_v22 = vrot.slane %v1649_v36, 4  ;;  %2038 = vrot.lane.b32.xlu0 %v4261_v35, %s3836_s21  ;;  %v1465_v32 = vpop.permute.xlu1 %1464 }
 0x2cc   : > { %v1651_v39 = vadd.f32 %v1650_v22, %v1649_v36 }
 0x2cd   : > { %v1513_v17 = vpop.permute.xlu0 %1512 }
 0x2ce   : > { %v1652_v57 = vrot.slane %v1651_v39, 2  ;;  %v5106_v36 = vpop.permute.xlu1 %1466 }
 0x2d0   : > { %v1653_v34 = vadd.f32 %v1652_v57, %v1651_v39 }
 0x2d1   : > { %v1517_v20 = vpop.permute.xlu0 %1516 }
 0x2d2   : > { %v1654_v46 = vrot.slane %v1653_v34, 1  ;;  %v5110_v57 = vpop.permute.xlu1 %1468 }
 0x2d4   : > { %v1655_v23 = vadd.f32 %v1654_v46, %v1653_v34 }
 0x2d5   : > { %v5098_v30 = vpop.permute.xlu0 %1980 }
 0x2d6   : > { %6350 = vst [vmem:[#allocation75_spill] sm:$0xff] %v5098_v30  ;;  %3454 = vpush %v1655_v23  ;;  %v5114_v34 = vpop.permute.xlu1 %1470 }
 0x2d7   : > { %6356 = vst [vmem:[#allocation81_spill] sm:$0xff] %v5114_v34 }
 0x2d9   : > { %v5100_v40 = vpop.permute.xlu0 %1982 }
 0x2da   : > { %6351 = vst [vmem:[#allocation76_spill] sm:$0xff] %v5100_v40  ;;  %v5118_v23 = vpop.permute.xlu1 %1474  ;;  %v1552_v40 = vsub.f32 %v4822_v38, %v1457_v11  ;;  %v5142_v11 = vsub.f32 %v5016_v5, %v1517_v20  ;;  %v2107_v38 = vsub.f32 1.0, %v3986_v18  ;;  %v2116_v18 = vsub.f32 1.0, %v4161_v58 }
 0x2db   : > { %6358 = vst [vmem:[#allocation83_spill] sm:$0xff] %v5118_v23  ;;  %v1554_v23 = vsub.f32 %v4846_v4, %v1461_v59  ;;  %v1555_v59 = vsub.f32 %v4858_v10, %v1463_v45  ;;  %v2118_v45 = vsub.f32 1.0, %v4201_v12  ;;  %v2120_v10 = vsub.f32 1.0, %v4241_v6 }
 0x2dc   : > { %6363 = vst [vmem:[#allocation88_spill] sm:$0xff] %v5142_v11  ;;  %v5165_v5 = vsub.f32 %v4870_v16, %v1465_v32  ;;  %v2117_v12 = vsub.f32 1.0, %v4157_v53  ;;  %v2119_v6 = vsub.f32 1.0, %v4197_v41 }
 0x2dd   : > { %v5102_v44 = vpop.permute.xlu0 %1984 }
 0x2de   : > { %6352 = vst [vmem:[#allocation77_spill] sm:$0xff] %v5102_v44  ;;  %v1479_v44 = vpop.permute.xlu1 %1478 }
 0x2df   : > { %v1563_v41 = vsub.f32 %v4930_v14, %v1479_v44  ;;  %v5202_v14 = vsub.f32 %v4880_v29, %v5068_v13 }
 0x2e1   : > { %v5104_v28 = vpop.permute.xlu0 %1986 }
 0x2e2   : > { %6353 = vst [vmem:[#allocation78_spill] sm:$0xff] %v5104_v28  ;;  %v1483_v28 = vpop.permute.xlu1 %1482 }
 0x2e5   : > { %v5108_v22 = vpop.permute.xlu0 %1988 }
 0x2e6   : > { %6354 = vst [vmem:[#allocation79_spill] sm:$0xff] %v5108_v22  ;;  %v1553_v22 = vsub.f32 %v4836_v1, %v1459_v60  ;;  %v5139_v1 = vsub.f32 %v5012_v24, %v1513_v17  ;;  %v2110_v24 = vsub.f32 1.0, %v4041_v61 }
 0x2e8   : > { %v2142_v53 = vsub.f32 %v5165_v5, %v2110_v24 }
 0x2e9   : > { %v5112_v39 = vpop.permute.xlu0 %1990 }
 0x2ea   : > { %6355 = vst [vmem:[#allocation80_spill] sm:$0xff] %v5112_v39 }
 0x2ed   : > { %v5116_v46 = vpop.permute.xlu0 %1992 }
 0x2ee   : > { %6357 = vst [vmem:[#allocation82_spill] sm:$0xff] %v5116_v46 }
 0x2f1   : > { %v5120_v30 = vpop.permute.xlu0 %1994 }
 0x2f2   : > { %6359 = vst [vmem:[#allocation84_spill] sm:$0xff] %v5120_v30  ;;  %v1487_v30 = vpop.permute.xlu1 %1486 }
 0x2f5   : > { %v5122_v35 = vpop.permute.xlu0 %1996 }
 0x2f6   : > { %6360 = vst [vmem:[#allocation85_spill] sm:$0xff] %v5122_v35  ;;  %v1491_v17 = vpop.permute.xlu1 %1490 }
 0x2f9   : > { %v5126_v51 = vpop.permute.xlu0 %1998 }
 0x2fa   : > { %6361 = vst [vmem:[#allocation86_spill] sm:$0xff] %v5126_v51  ;;  %v2106_v51 = vsub.f32 1.0, %v3991_v21 }
 0x2fd   : > { %v5135_v35 = vpop.permute.xlu0 %2000 }
 0x2fe   : > { %6362 = vst [vmem:[#allocation87_spill] sm:$0xff] %v5135_v35 }
 0x307   : > { %s3455_s10 = spop %3454 }
 0x308   : > { %v5128_v39 = vstv %s3455_s10 }
 0x309   : > { %v1690_v34 = vadd.f32 %v5128_v39, %v1552_v40  ;;  %v1691_v46 = vadd.f32 %v5128_v39, %v1553_v22  ;;  %v1692_v60 = vadd.f32 %v5128_v39, %v1554_v23  ;;  %v5152_v35 = vadd.f32 %v5128_v39, %v5139_v1 }
 0x30a   : > { %v5156_v20 = vadd.f32 %v5128_v39, %v5142_v11  ;;  %v1693_v21 = vadd.f32 %v5128_v39, %v1555_v59 }
 0x30b   : > { %1756 = vrot.lane.b32.xlu0 %v1691_v46, %s3836_s21  ;;  %1754 = vrot.lane.b32.xlu1 %v1690_v34, %s3836_s21  ;;  %v2108_v34 = vsub.f32 1.0, %v4011_v37  ;;  %v2109_v46 = vsub.f32 1.0, %v4006_v33  ;;  %6364 = vst [vmem:[#allocation89_spill] sm:$0xff] %v5152_v35  ;;  %v2122_v37 = vsub.f32 1.0, %v3999_v26  ;;  %v2139_v33 = vsub.f32 %v1553_v22, %v2107_v38 }
 0x30c   : > { %6365 = vst [vmem:[#allocation90_spill] sm:$0xff] %v5156_v20  ;;  %v2138_v20 = vsub.f32 %v1552_v40, %v2106_v51  ;;  %v2124_v35 = vsub.f32 1.0, %v4025_v49  ;;  %v2121_v26 = vsub.f32 1.0, %v4237_v52  ;;  %v1562_v38 = vsub.f32 %v4844_v3, %v5052_v0  ;;  %v1495_v52 = vpop.permute.xlu1 %1494 }
 0x30d   : > { %v2140_v58 = vsub.f32 %v1554_v23, %v2108_v34  ;;  %v2141_v11 = vsub.f32 %v1555_v59, %v2109_v46  ;;  %v2171_v61 = vadd.f32 %v2139_v33, %v5128_v39  ;;  %v5182_v51 = vsub.f32 %v4856_v63, %v5058_v55 }
 0x30e   : > { %v2170_v22 = vadd.f32 %v2138_v20, %v5128_v39  ;;  %v5187_v23 = vsub.f32 %v4942_v50, %v1483_v28  ;;  %v5190_v3 = vsub.f32 %v4952_v8, %v1487_v30  ;;  %v2126_v63 = vsub.f32 1.0, %v4061_v9 }
 0x30f   : > { %1758 = vrot.lane.b32.xlu0 %v1692_v60, %s3836_s21  ;;  %v5167_v60 = vpop.permute.xlu0 %2002  ;;  %v2173_v32 = vadd.f32 %v2141_v11, %v5128_v39  ;;  %v2172_v40 = vadd.f32 %v2140_v58, %v5128_v39  ;;  %vm2203_vm8 = vcmp.eq.f32.partialorder %v2171_v61, 0.0  ;;  %v5194_v11 = vsub.f32 %v4868_v15, %v5062_v27 }
 0x310   : > { %v2235_v0 = vsel %vm2203_vm8, 1.0, %v2171_v61  ;;  %vm2202_vm12 = vcmp.eq.f32.partialorder %v2170_v22, 0.0  ;;  %v2123_v30 = vsub.f32 1.0, %v3996_v25  ;;  %v2174_v15 = vadd.f32 %v2142_v53, %v5128_v39  ;;  %v1499_v20 = vpop.permute.xlu1 %1498 }
 0x311   : > { %2364 = vrot.lane.b32.xlu1 %v2235_v0, %s3836_s21  ;;  %vm2205_vm0 = vcmp.eq.f32.partialorder %v2173_v32, 0.0  ;;  %v2234_v44 = vsel %vm2202_vm12, 1.0, %v2170_v22  ;;  %vm2204_vm10 = vcmp.eq.f32.partialorder %v2172_v40, 0.0  ;;  %v2148_v50 = vsub.f32 %v1562_v38, %v2116_v18 }
 0x312   : > { %v2149_v8 = vsub.f32 %v1563_v41, %v2117_v12  ;;  %v2125_v9 = vsub.f32 1.0, %v4021_v47  ;;  %v2127_v27 = vsub.f32 1.0, %v4057_v7  ;;  %v2150_v28 = vsub.f32 %v5182_v51, %v2118_v45 }
 0x313   : > { %1760 = vrot.lane.b32.xlu0 %v1693_v21, %s3836_s21  ;;  %v5197_v55 = vpop.permute.xlu0 %2004  ;;  %v2151_v59 = vsub.f32 %v5187_v23, %v2119_v6  ;;  %v2153_v29 = vsub.f32 %v5190_v3, %v2121_v26  ;;  %v2237_v13 = vsel %vm2205_vm0, 1.0, %v2173_v32  ;;  %v2152_v25 = vsub.f32 %v5194_v11, %v2120_v10 }
 0x314   : > { %v5214_v34 = vsub.f32 %v4960_v56, %v1491_v17  ;;  %v5217_v46 = vsub.f32 %v4968_v2, %v1495_v52  ;;  %v2236_v47 = vsel %vm2204_vm10, 1.0, %v2172_v40  ;;  %v2154_v7 = vsub.f32 %v5202_v14, %v2122_v37 }
 0x315   : > { %2368 = vrot.lane.b32.xlu1 %v2237_v13, %s3836_s21  ;;  %v5223_v21 = vsub.f32 %v4892_v62, %v5072_v54  ;;  %v5226_v18 = vsub.f32 %v4976_v31, %v1499_v20  ;;  %vm2206_vm5 = vcmp.eq.f32.partialorder %v2174_v15, 0.0  ;;  %v1700_v56 = vadd.f32 %v5128_v39, %v1562_v38 }
 0x316   : > { %v5233_v17 = vadd.f32 %v2148_v50, %v5128_v39  ;;  %v5236_v45 = vadd.f32 %v2149_v8, %v5128_v39  ;;  %v5239_v10 = vadd.f32 %v2150_v28, %v5128_v39  ;;  %v1572_v54 = vsub.f32 %v4904_v19, %v5078_v43 }
 0x317   : > { %2362 = vrot.lane.b32.xlu0 %v2234_v44, %s3836_s21  ;;  %v5230_v2 = vpop.permute.xlu0 %2006  ;;  %v5244_v62 = vadd.f32 %v2151_v59, %v5128_v39  ;;  %v5247_v31 = vadd.f32 %v2152_v25, %v5128_v39  ;;  %v5250_v37 = vadd.f32 %v2153_v29, %v5128_v39  ;;  %v2155_v33 = vsub.f32 %v5214_v34, %v2123_v30 }
 0x318   : > { %v2157_v24 = vsub.f32 %v5217_v46, %v2125_v9  ;;  %v2238_v58 = vsel %vm2206_vm5, 1.0, %v2174_v15  ;;  %v5256_v12 = vadd.f32 %v2154_v7, %v5128_v39  ;;  %v2159_v19 = vsub.f32 %v5226_v18, %v2127_v27  ;;  %v6369_v15 = vld [vmem:[#allocation60_spill] sm:$0xff]  ;;  %v6370_v27 = vld [vmem:[#allocation83_spill] sm:$0xff] }
 0x319   : > { %1774 = vrot.lane.b32.xlu1 %v1700_v56, %s3836_s21  ;;  %v2156_v43 = vsub.f32 %v5223_v21, %v2124_v35  ;;  %v1701_v6 = vadd.f32 %v5128_v39, %v1563_v41  ;;  %v2158_v26 = vsub.f32 %v1572_v54, %v2126_v63  ;;  %v1694_v61 = vadd.f32 %v5128_v39, %v5165_v5  ;;  %v6366_v63 = vld [vmem:[#allocation81_spill] sm:$0xff] }
 0x31a   : > { %v5270_v32 = vadd.f32 %v2155_v33, %v5128_v39  ;;  %v5276_v49 = vadd.f32 %v2157_v24, %v5128_v39  ;;  %v1557_v35 = vsub.f32 %v4882_v42, %v5106_v36  ;;  %v5285_v40 = vadd.f32 %v2159_v19, %v5128_v39  ;;  %v6373_v24 = vld [vmem:[#allocation22_spill] sm:$0xff] }
 0x31b   : > { %2366 = vrot.lane.b32.xlu0 %v2236_v47, %s3836_s21  ;;  %v5266_v38 = vpop.permute.xlu0 %2008  ;;  %v5273_v22 = vadd.f32 %v2156_v43, %v5128_v39  ;;  %v5282_v5 = vadd.f32 %v2158_v26, %v5128_v39  ;;  %v1702_v53 = vadd.f32 %v5128_v39, %v5182_v51  ;;  %v1558_v52 = vsub.f32 %v4894_v48, %v5110_v57  ;;  %v6367_v51 = vld [vmem:[#allocation61_spill] sm:$0xff]  ;;  %v6372_v47 = vld [vmem:[#allocation16_spill] sm:$0xff] }
 0x31c   : > { %v1695_v41 = vadd.f32 %v5128_v39, %v1557_v35  ;;  %v1703_v42 = vadd.f32 %v5128_v39, %v5187_v23  ;;  %v1559_v44 = vsub.f32 %v6367_v51, %v6366_v63  ;;  %v1704_v30 = vadd.f32 %v5128_v39, %v5194_v11  ;;  %v6368_v23 = vld [vmem:[#allocation71_spill] sm:$0xff]  ;;  %v6374_v43 = vld [vmem:[#allocation21_spill] sm:$0xff] }
 0x31d   : > { %1776 = vrot.lane.b32.xlu1 %v1701_v6, %s3836_s21  ;;  %v1696_v0 = vadd.f32 %v5128_v39, %v1558_v52  ;;  %v1560_v50 = vsub.f32 %v6369_v15, %v6368_v23  ;;  %v1705_v8 = vadd.f32 %v5128_v39, %v5190_v3  ;;  %v6371_v11 = vld [vmem:[#allocation63_spill] sm:$0xff]  ;;  %v1706_v59 = vadd.f32 %v5128_v39, %v5202_v14  ;;  %v1503_v23 = vpop.permute.xlu1 %1502 }
 0x31e   : > { %v1697_v48 = vadd.f32 %v5128_v39, %v1559_v44  ;;  %v1561_v28 = vsub.f32 %v6371_v11, %v6370_v27  ;;  %v1707_v3 = vadd.f32 %v5128_v39, %v5214_v34  ;;  %v1708_v20 = vadd.f32 %v5128_v39, %v5223_v21 }
 0x31f   : > { %2370 = vrot.lane.b32.xlu0 %v2238_v58, %s3836_s21  ;;  %v5296_v36 = vpop.permute.xlu0 %2010  ;;  %v1698_v9 = vadd.f32 %v5128_v39, %v1560_v50  ;;  %v2111_v14 = vsub.f32 1.0, %v6372_v47  ;;  %v1709_v7 = vadd.f32 %v5128_v39, %v5217_v46  ;;  %v2112_v58 = vsub.f32 1.0, %v6373_v24 }
 0x320   : > { %v1699_v13 = vadd.f32 %v5128_v39, %v1561_v28  ;;  %v1710_v34 = vadd.f32 %v5128_v39, %v1572_v54  ;;  %v2113_v6 = vsub.f32 1.0, %v6374_v43  ;;  %v1711_v46 = vadd.f32 %v5128_v39, %v5226_v18 }
 0x321   : > { %1778 = vrot.lane.b32.xlu1 %v1702_v53, %s3836_s21  ;;  %v2143_v33 = vsub.f32 %v1557_v35, %v2111_v14  ;;  %v2144_v19 = vsub.f32 %v1558_v52, %v2112_v58  ;;  %v6375_v53 = vld [vmem:[#allocation30_spill] sm:$0xff]  ;;  %vm2212_vm2 = vcmp.eq.f32.partialorder %v5233_v17, 0.0  ;;  %vm2213_vm6 = vcmp.eq.f32.partialorder %v5236_v45, 0.0 }
 0x322   : > { %v2114_v54 = vsub.f32 1.0, %v6375_v53  ;;  %vm2214_vm1 = vcmp.eq.f32.partialorder %v5239_v10, 0.0  ;;  %vm2215_vm14 = vcmp.eq.f32.partialorder %v5244_v62, 0.0  ;;  %vm2216_vm15 = vcmp.eq.f32.partialorder %v5247_v31, 0.0  ;;  %v6379_v53 = vld [vmem:[#allocation62_spill] sm:$0xff] }
 0x323   : > { %1762 = vrot.lane.b32.xlu0 %v1694_v61, %s3836_s21  ;;  %v5306_v57 = vpop.permute.xlu0 %2012  ;;  %v2175_v26 = vadd.f32 %v2143_v33, %v5128_v39  ;;  %v2145_v61 = vsub.f32 %v1559_v44, %v2113_v6  ;;  %v2176_v35 = vadd.f32 %v2144_v19, %v5128_v39  ;;  %v2246_v14 = vsel %vm2214_vm1, 1.0, %v5239_v10 }
 0x324   : > { %v2146_v51 = vsub.f32 %v1560_v50, %v2114_v54  ;;  %v5365_v50 = vpop.permute.xlu1 %1506  ;;  %v2247_v33 = vsel %vm2215_vm14, 1.0, %v5244_v62  ;;  %v2248_v24 = vsel %vm2216_vm15, 1.0, %v5247_v31  ;;  %vm2217_vm8 = vcmp.eq.f32.partialorder %v5250_v37, 0.0 }
 0x325   : > { %1780 = vrot.lane.b32.xlu1 %v1703_v42, %s3836_s21  ;;  %vm2207_vm7 = vcmp.eq.f32.partialorder %v2175_v26, 0.0  ;;  %v6376_v42 = vld [vmem:[#allocation29_spill] sm:$0xff]  ;;  %vm2208_vm9 = vcmp.eq.f32.partialorder %v2176_v35, 0.0  ;;  %v2177_v63 = vadd.f32 %v2145_v61, %v5128_v39  ;;  %v2249_v10 = vsel %vm2217_vm8, 1.0, %v5250_v37  ;;  %v6377_v61 = vld [vmem:[#allocation26_spill] sm:$0xff] }
 0x326   : > { %v2239_v52 = vsel %vm2207_vm7, 1.0, %v2175_v26  ;;  %v2240_v18 = vsel %vm2208_vm9, 1.0, %v2176_v35  ;;  %vm2218_vm12 = vcmp.eq.f32.partialorder %v5256_v12, 0.0  ;;  %vm2219_vm0 = vcmp.eq.f32.partialorder %v5270_v32, 0.0  ;;  %v6378_v35 = vld [vmem:[#allocation72_spill] sm:$0xff] }
 0x327   : > { %1764 = vrot.lane.b32.xlu0 %v1695_v41, %s3836_s21  ;;  %v5321_v29 = vpop.permute.xlu0 %2014  ;;  %vm2209_vm13 = vcmp.eq.f32.partialorder %v2177_v63, 0.0  ;;  %v2250_v19 = vsel %vm2218_vm12, 1.0, %v5256_v12  ;;  %v2251_v43 = vsel %vm2219_vm0, 1.0, %v5270_v32  ;;  %vm2220_vm10 = vcmp.eq.f32.partialorder %v5273_v22, 0.0 }
 0x328   : > { %v2241_v15 = vsel %vm2209_vm13, 1.0, %v2177_v63  ;;  %v2252_v26 = vsel %vm2220_vm10, 1.0, %v5273_v22  ;;  %vm2221_vm5 = vcmp.eq.f32.partialorder %v5276_v49, 0.0  ;;  %v2128_v32 = vsub.f32 1.0, %v6377_v61  ;;  %v6381_v63 = vld [vmem:[#allocation66_spill] sm:$0xff] }
 0x329   : > { %1782 = vrot.lane.b32.xlu1 %v1704_v30, %s3836_s21  ;;  %v5428_v54 = vsub.f32 %v6379_v53, %v6378_v35  ;;  %v5433_v22 = vsub.f32 %v6381_v63, %v1503_v23  ;;  %vm2222_vm7 = vcmp.eq.f32.partialorder %v5282_v5, 0.0  ;;  %vm2223_vm9 = vcmp.eq.f32.partialorder %v5285_v40, 0.0  ;;  %v6382_v23 = vld [vmem:[#allocation34_spill] sm:$0xff] }
 0x32b   : > { %1766 = vrot.lane.b32.xlu0 %v1696_v0, %s3836_s21  ;;  %v5328_v25 = vpop.permute.xlu0 %2016  ;;  %v2115_v0 = vsub.f32 1.0, %v6376_v42  ;;  %v6380_v42 = vld [vmem:[#allocation25_spill] sm:$0xff] }
 0x32d   : > { %1784 = vrot.lane.b32.xlu1 %v1705_v8, %s3836_s21  ;;  %v2147_v44 = vsub.f32 %v1561_v28, %v2115_v0  ;;  %v2129_v0 = vsub.f32 1.0, %v6380_v42  ;;  %v6389_v42 = vld [vmem:[#allocation76_spill] sm:$0xff] }
 0x32f   : > { %1768 = vrot.lane.b32.xlu0 %v1697_v48, %s3836_s21  ;;  %v5337_v56 = vpop.permute.xlu0 %2018  ;;  %v2178_v48 = vadd.f32 %v2146_v51, %v5128_v39  ;;  %v2179_v8 = vadd.f32 %v2147_v44, %v5128_v39  ;;  %v2160_v51 = vsub.f32 %v5428_v54, %v2128_v32  ;;  %v2254_v44 = vsel %vm2222_vm7, 1.0, %v5282_v5 }
 0x331   : > { %1786 = vrot.lane.b32.xlu1 %v1706_v59, %s3836_s21  ;;  %vm2210_vm3 = vcmp.eq.f32.partialorder %v2178_v48, 0.0  ;;  %vm2211_vm11 = vcmp.eq.f32.partialorder %v2179_v8, 0.0  ;;  %v5372_v59 = vpop.permute.xlu1 %1510 }
 0x332   : > { %v2242_v27 = vsel %vm2210_vm3, 1.0, %v2178_v48  ;;  %v2243_v11 = vsel %vm2211_vm11, 1.0, %v2179_v8  ;;  %v2130_v8 = vsub.f32 1.0, %v6382_v23 }
 0x333   : > { %1770 = vrot.lane.b32.xlu0 %v1698_v9, %s3836_s21  ;;  %v5343_v21 = vpop.permute.xlu0 %2020 }
 0x335   : > { %1788 = vrot.lane.b32.xlu1 %v1707_v3, %s3836_s21  ;;  %v5380_v47 = vpop.permute.xlu1 %1514 }
 0x337   : > { %1772 = vrot.lane.b32.xlu0 %v1699_v13, %s3836_s21  ;;  %v5352_v41 = vpop.permute.xlu0 %2022  ;;  %v2244_v13 = vsel %vm2212_vm2, 1.0, %v5233_v17 }
 0x339   : > { %1790 = vrot.lane.b32.xlu1 %v1708_v20, %s3836_s21  ;;  %v2245_v20 = vsel %vm2213_vm6, 1.0, %v5236_v45  ;;  %v5389_v17 = vpop.permute.xlu1 %1518 }
 0x33b   : > { %v5357_v30 = vpop.permute.xlu0 %2024 }
 0x33d   : > { %1792 = vrot.lane.b32.xlu1 %v1709_v7, %s3836_s21  ;;  %v1979_v58 = vpop.permute.xlu1 %1978 }
 0x33f   : > { %v5363_v9 = vpop.permute.xlu0 %2026 }
 0x341   : > { %1794 = vrot.lane.b32.xlu1 %v1710_v34, %s3836_s21  ;;  %v5404_v62 = vpop.permute.xlu1 %2036 }
 0x343   : > { %v5368_v28 = vpop.permute.xlu0 %2028 }
 0x345   : > { %1796 = vrot.lane.b32.xlu1 %v1711_v46, %s3836_s21  ;;  %v5412_v6 = vpop.permute.xlu1 %2040 }
 0x347   : > { %v5377_v3 = vpop.permute.xlu0 %2030 }
 0x349   : > { %2372 = vrot.lane.b32.xlu1 %v2239_v52, %s3836_s21  ;;  %v2253_v52 = vsel %vm2221_vm5, 1.0, %v5276_v49  ;;  %v2192_v49 = vadd.f32 %v2160_v51, %v5128_v39  ;;  %v6390_v51 = vld [vmem:[#allocation40_spill] sm:$0xff] }
 0x34b   : > { %v5385_v7 = vpop.permute.xlu0 %2032  ;;  %vm2224_vm13 = vcmp.eq.f32.partialorder %v2192_v49, 0.0 }
 0x34c   : > { %v2256_v53 = vsel %vm2224_vm13, 1.0, %v2192_v49 }
 0x34d   : > { %2374 = vrot.lane.b32.xlu1 %v2240_v18, %s3836_s21 }
 0x34f   : > { %v5394_v45 = vpop.permute.xlu0 %2034 }
 0x351   : > { %2376 = vrot.lane.b32.xlu1 %v2241_v15, %s3836_s21  ;;  %v2161_v15 = vsub.f32 %v5433_v22, %v2129_v0  ;;  %v2076_v0 = vsub.f32 %v4846_v4, %v6389_v42  ;;  %v6398_v42 = vld [vmem:[#allocation46_spill] sm:$0xff] }
 0x353   : > { %v5400_v34 = vpop.permute.xlu0 %2038 }
 0x355   : > { %2378 = vrot.lane.b32.xlu1 %v2242_v27, %s3836_s21  ;;  %v6383_v27 = vld [vmem:[#allocation73_spill] sm:$0xff] }
 0x359   : > { %2380 = vrot.lane.b32.xlu1 %v2243_v11, %s3836_s21  ;;  %v6384_v11 = vld [vmem:[#allocation64_spill] sm:$0xff] }
 0x35d   : > { %2382 = vrot.lane.b32.xlu1 %v2244_v13, %s3836_s21  ;;  %v5448_v13 = vsub.f32 %v6384_v11, %v6383_v27  ;;  %v6394_v11 = vld [vmem:[#allocation39_spill] sm:$0xff] }
 0x35f   : > { %v2162_v32 = vsub.f32 %v5448_v13, %v2130_v8 }
 0x361   : > { %2384 = vrot.lane.b32.xlu1 %v2245_v20, %s3836_s21 }
 0x365   : > { %2386 = vrot.lane.b32.xlu1 %v2246_v14, %s3836_s21  ;;  %v6385_v14 = vld [vmem:[#allocation33_spill] sm:$0xff] }
 0x366   : > { %v2131_v5 = vsub.f32 1.0, %v6385_v14  ;;  %v2133_v14 = vsub.f32 1.0, %v6394_v11  ;;  %v6401_v11 = vld [vmem:[#allocation69_spill] sm:$0xff] }
 0x369   : > { %2388 = vrot.lane.b32.xlu1 %v2247_v33, %s3836_s21  ;;  %v2255_v33 = vsel %vm2223_vm9, 1.0, %v5285_v40 }
 0x36d   : > { %2390 = vrot.lane.b32.xlu1 %v2248_v24, %s3836_s21 }
 0x371   : > { %2392 = vrot.lane.b32.xlu1 %v2249_v10, %s3836_s21  ;;  %v6386_v10 = vld [vmem:[#allocation67_spill] sm:$0xff] }
 0x375   : > { %2394 = vrot.lane.b32.xlu1 %v2250_v19, %s3836_s21  ;;  %v5456_v19 = vsub.f32 %v6386_v10, %v5365_v50  ;;  %v2194_v50 = vadd.f32 %v2162_v32, %v5128_v39 }
 0x377   : > { %v2163_v40 = vsub.f32 %v5456_v19, %v2131_v5  ;;  %v6395_v5 = vld [vmem:[#allocation68_spill] sm:$0xff]  ;;  %vm2226_vm11 = vcmp.eq.f32.partialorder %v2194_v50, 0.0 }
 0x379   : > { %2396 = vrot.lane.b32.xlu1 %v2251_v43, %s3836_s21  ;;  %v2193_v43 = vadd.f32 %v2161_v15, %v5128_v39  ;;  %v6392_v15 = vld [vmem:[#allocation65_spill] sm:$0xff]  ;;  %v2195_v4 = vadd.f32 %v2163_v40, %v5128_v39 }
 0x37b   : > { %vm2225_vm3 = vcmp.eq.f32.partialorder %v2193_v43, 0.0  ;;  %vm2227_vm2 = vcmp.eq.f32.partialorder %v2195_v4, 0.0 }
 0x37c   : > { %v2257_v8 = vsel %vm2225_vm3, 1.0, %v2193_v43 }
 0x37d   : > { %v5409_v31 = vpop.permute.xlu0 %1756  ;;  %2398 = vrot.lane.b32.xlu1 %v2252_v26, %s3836_s21  ;;  %v5420_v12 = vpop.permute.xlu1 %1754  ;;  %v6387_v26 = vld [vmem:[#allocation59_spill] sm:$0xff] }
 0x37e   : > { %v2074_v61 = vsub.f32 %v6387_v26, %v1979_v58  ;;  %v2300_v26 = vsub.f32 %v5128_v39, %v2076_v0 }
 0x380   : > { %v2298_v63 = vsub.f32 %v5128_v39, %v2074_v61 }
 0x381   : > { %v5416_v37 = vpop.permute.xlu0 %1758  ;;  %2400 = vrot.lane.b32.xlu1 %v2253_v52, %s3836_s21 }
 0x383   : > { %v5438_v18 = vpop.permute.xlu1 %2364 }
 0x385   : > { %v5423_v46 = vpop.permute.xlu0 %1760  ;;  %2402 = vrot.lane.b32.xlu1 %v2254_v44, %s3836_s21  ;;  %v2132_v44 = vsub.f32 1.0, %v6390_v51 }
 0x387   : > { %v5450_v20 = vpop.permute.xlu1 %2368 }
 0x389   : > { %v2363_v48 = vpop.permute.xlu0 %2362  ;;  %2404 = vrot.lane.b32.xlu1 %v2255_v33, %s3836_s21  ;;  %v5480_v33 = vsub.f32 %v6395_v5, %v5372_v59 }
 0x38a   : > { %3576 = vrcp.f32 %v2363_v48  ;;  %v6391_v48 = vld [vmem:[#allocation74_spill] sm:$0xff] }
 0x38b   : > { %v5462_v35 = vpop.permute.xlu1 %1774  ;;  %v5473_v49 = vsub.f32 %v6392_v15, %v6391_v48  ;;  %v6400_v48 = vld [vmem:[#allocation45_spill] sm:$0xff]  ;;  %v2259_v15 = vsel %vm2227_vm2, 1.0, %v2195_v4  ;;  %v6403_v4 = vld [vmem:[#allocation52_spill] sm:$0xff] }
 0x38c   : > { %6388 = vst [vmem:[#allocation81_spill] sm:$0xff] %v5462_v35 }
 0x38d   : > { %v2367_v24 = vpop.permute.xlu0 %2366  ;;  %2406 = vrot.lane.b32.xlu1 %v2256_v53, %s3836_s21  ;;  %v2164_v43 = vsub.f32 %v5473_v49, %v2132_v44 }
 0x38e   : > { %3578 = vrcp.f32 %v2367_v24  ;;  %v6396_v24 = vld [vmem:[#allocation78_spill] sm:$0xff] }
 0x38f   : > { %v5475_v23 = vpop.permute.xlu1 %1776  ;;  %v2078_v10 = vsub.f32 %v4870_v16, %v6396_v24  ;;  %v2196_v16 = vadd.f32 %v2164_v43, %v5128_v39  ;;  %v6405_v43 = vld [vmem:[#allocation51_spill] sm:$0xff] }
 0x390   : > { %6393 = vst [vmem:[#allocation61_spill] sm:$0xff] %v5475_v23  ;;  %v5694_v23 = vld [vmem:[#allocation2 + $0x10] sm:$0xff] }
 0x391   : > { %v2371_v52 = vpop.permute.xlu0 %2370  ;;  %2408 = vrot.lane.b32.xlu1 %v2257_v8, %s3836_s21  ;;  %v2302_v40 = vsub.f32 %v5128_v39, %v2078_v10  ;;  %vm2228_vm6 = vcmp.eq.f32.partialorder %v2196_v16, 0.0  ;;  %vm2268_vm10 = vcmp.le.f32.partialorder %v5694_v23, 1.0 }
 0x392   : > { %3580 = vrcp.f32 %v2371_v52  ;;  %v2258_v52 = vsel %vm2226_vm11, 1.0, %v2194_v50  ;;  %v2135_v50 = vsub.f32 1.0, %v6400_v48 }
 0x393   : > { %v5488_v53 = vpop.permute.xlu1 %1778  ;;  %3582 = vrcp.f32 %v5438_v18 }
 0x394   : > { %v3577_v58 = vpop.eup %3576  ;;  %6397 = vst [vmem:[#allocation71_spill] sm:$0xff] %v5488_v53  ;;  %3584 = vrcp.f32 %v5450_v20  ;;  %v6412_v20 = vld [vmem:[#allocation77_spill] sm:$0xff]  ;;  %v5673_v53 = vld [vmem:[#allocation2 + $0xb8] sm:$0xff] }
 0x395   : > { %v2459_v27 = vmul.f32 %v3577_v58, %v2298_v63  ;;  %v2134_v63 = vsub.f32 1.0, %v6398_v42  ;;  %v2165_v58 = vsub.f32 %v5480_v33, %v2133_v14  ;;  %2410 = vrot.lane.b32.xlu1 %v2258_v52, %s3836_s21  ;;  %v5503_v14 = vsub.f32 %v6401_v11, %v5380_v47  ;;  %v6406_v42 = vld [vmem:[#allocation88_spill] sm:$0xff] }
 0x396   : > { %v2137_v52 = vsub.f32 1.0, %v6405_v43 }
 0x397   : > { %v2522_v61 = vsub.f32 1.0, %v2459_v27  ;;  %v5496_v44 = vpop.permute.xlu1 %1780  ;;  %v2166_v27 = vsub.f32 %v5139_v1, %v2134_v63  ;;  %v2197_v5 = vadd.f32 %v2165_v58, %v5128_v39  ;;  %v6407_v58 = vld [vmem:[#allocation70_spill] sm:$0xff] }
 0x398   : > { %v3579_v32 = vpop.eup %3578  ;;  %6399 = vst [vmem:[#allocation60_spill] sm:$0xff] %v5496_v44 }
 0x399   : > { %2586 = vrot.lane.b32.xlu0 %v2522_v61, %s3835_s28  ;;  %v2463_v59 = vmul.f32 %v3579_v32, %v2300_v26  ;;  %2412 = vrot.lane.b32.xlu1 %v2259_v15, %s3836_s21  ;;  %v2260_v26 = vsel %vm2228_vm6, 1.0, %v2196_v16  ;;  %v2136_v61 = vsub.f32 1.0, %v6403_v4  ;;  %v2167_v32 = vsub.f32 %v5503_v14, %v2135_v50  ;;  %v5541_v4 = vld [vmem:[#allocation2 + $0x18] sm:$0xff] }
 0x39a   : > { %vm2229_vm1 = vcmp.eq.f32.partialorder %v2197_v5, 0.0  ;;  %v2198_v1 = vadd.f32 %v2166_v27, %v5128_v39  ;;  %v5520_v16 = vsub.f32 %v6407_v58, %v5389_v17  ;;  %v6410_v27 = vld [vmem:[#allocation75_spill] sm:$0xff]  ;;  %vm2269_vm5 = vcmp.le.f32.partialorder %v5541_v4, 1.0 }
 0x39b   : > { %v2524_v0 = vsub.f32 1.0, %v2463_v59  ;;  %v5507_v10 = vpop.permute.xlu1 %1782  ;;  %v2261_v59 = vsel %vm2229_vm1, 1.0, %v2197_v5  ;;  %v2168_v63 = vsub.f32 %v6406_v42, %v2136_v61  ;;  %v2077_v61 = vsub.f32 %v5541_v4, %v6412_v20  ;;  %v6417_v20 = vld [vmem:[#allocation80_spill] sm:$0xff] }
 0x39c   : > { %v3581_v51 = vpop.eup %3580  ;;  %6402 = vst [vmem:[#allocation83_spill] sm:$0xff] %v5507_v10  ;;  %vm2230_vm14 = vcmp.eq.f32.partialorder %v2198_v1, 0.0  ;;  %v2169_v48 = vsub.f32 %v5520_v16, %v2137_v52  ;;  %v5651_v10 = vld [vmem:[#allocation2 + $0xa0] sm:$0xff] }
 0x39d   : > { %2590 = vrot.lane.b32.xlu0 %v2524_v0, %s3835_s28  ;;  %v2467_v8 = vmul.f32 %v3581_v51, %v2302_v40  ;;  %2414 = vrot.lane.b32.xlu1 %v2260_v26, %s3836_s21  ;;  %v2199_v40 = vadd.f32 %v2167_v32, %v5128_v39  ;;  %v2262_v51 = vsel %vm2230_vm14, 1.0, %v2198_v1  ;;  %v2200_v50 = vadd.f32 %v2168_v63, %v5128_v39 }
 0x39e   : > { %v2201_v11 = vadd.f32 %v2169_v48, %v5128_v39  ;;  %v2301_v42 = vsub.f32 %v5128_v39, %v2077_v61 }
 0x39f   : > { %v2526_v24 = vsub.f32 1.0, %v2467_v8  ;;  %v5514_v47 = vpop.permute.xlu1 %1784  ;;  %vm2231_vm15 = vcmp.eq.f32.partialorder %v2199_v40, 0.0  ;;  %v5533_v8 = vld [vmem:[#allocation2 + $0x8] sm:$0xff]  ;;  %vm2232_vm8 = vcmp.eq.f32.partialorder %v2200_v50, 0.0 }
 0x3a0   : > { %6404 = vst [vmem:[#allocation63_spill] sm:$0xff] %v5514_v47  ;;  %v2263_v15 = vsel %vm2231_vm15, 1.0, %v2199_v40  ;;  %v2075_v18 = vsub.f32 %v5533_v8, %v6410_v27  ;;  %v2264_v26 = vsel %vm2232_vm8, 1.0, %v2200_v50  ;;  %vm2233_vm12 = vcmp.eq.f32.partialorder %v2201_v11, 0.0  ;;  %v5557_v27 = vld [vmem:[#allocation2 + $0x28] sm:$0xff] }
 0x3a1   : > { %2594 = vrot.lane.b32.xlu0 %v2526_v24, %s3835_s28  ;;  %2416 = vrot.lane.b32.xlu1 %v2261_v59, %s3836_s21  ;;  %v3583_v24 = vpop.eup %3582  ;;  %v2265_v59 = vsel %vm2233_vm12, 1.0, %v2201_v11  ;;  %vm2267_vm9 = vcmp.le.f32.partialorder %v5533_v8, 1.0  ;;  %vm2271_vm13 = vcmp.le.f32.partialorder %v5557_v27, 1.0 }
 0x3a2   : > { %v2299_v32 = vsub.f32 %v5128_v39, %v2075_v18  ;;  %v3585_v52 = vpop.eup %3584  ;;  %v6416_v18 = vld [vmem:[#allocation79_spill] sm:$0xff] }
 0x3a3   : > { %v5525_v0 = vpop.permute.xlu1 %1786  ;;  %v2465_v40 = vmul.f32 %v3585_v52, %v2301_v42  ;;  %v2079_v11 = vsub.f32 %v5557_v27, %v6416_v18  ;;  %v5566_v42 = vld [vmem:[#allocation2 + $0x38] sm:$0xff] }
 0x3a4   : > { %6408 = vst [vmem:[#allocation72_spill] sm:$0xff] %v5525_v0  ;;  %v2461_v43 = vmul.f32 %v3583_v24, %v2299_v32  ;;  %v5629_v0 = vld [vmem:[#allocation2 + $0x88] sm:$0xff]  ;;  %vm2273_vm11 = vcmp.le.f32.partialorder %v5566_v42, 1.0 }
 0x3a5   : > { %2418 = vrot.lane.b32.xlu1 %v2262_v51, %s3836_s21  ;;  %v2525_v48 = vsub.f32 1.0, %v2465_v40  ;;  %v2303_v32 = vsub.f32 %v5128_v39, %v2079_v11  ;;  %v6419_v11 = vld [vmem:[#allocation84_spill] sm:$0xff] }
 0x3a6   : > { %v2523_v58 = vsub.f32 1.0, %v2461_v43 }
 0x3a7   : > { %v5531_v17 = vpop.permute.xlu1 %1788 }
 0x3a8   : > { %6409 = vst [vmem:[#allocation62_spill] sm:$0xff] %v5531_v17 }
 0x3a9   : > { %2420 = vrot.lane.b32.xlu1 %v2263_v15, %s3836_s21 }
 0x3ab   : > { %v5539_v5 = vpop.permute.xlu1 %1790 }
 0x3ac   : > { %6411 = vst [vmem:[#allocation66_spill] sm:$0xff] %v5539_v5 }
 0x3ad   : > { %2422 = vrot.lane.b32.xlu1 %v2264_v26, %s3836_s21  ;;  %v5561_v26 = vld [vmem:[#allocation2 + $0x30] sm:$0xff] }
 0x3ae   : > { %v2080_v61 = vsub.f32 %v5561_v26, %v6417_v20  ;;  %v5572_v20 = vld [vmem:[#allocation2 + $0x40] sm:$0xff]  ;;  %vm2272_vm3 = vcmp.le.f32.partialorder %v5561_v26, 1.0 }
 0x3af   : > { %v5547_v1 = vpop.permute.xlu1 %1792  ;;  %vm2274_vm2 = vcmp.le.f32.partialorder %v5572_v20, 1.0 }
 0x3b0   : > { %6413 = vst [vmem:[#allocation73_spill] sm:$0xff] %v5547_v1 }
 0x3b1   : > { %2424 = vrot.lane.b32.xlu1 %v2265_v59, %s3836_s21 }
 0x3b3   : > { %v5551_v63 = vpop.permute.xlu1 %1794 }
 0x3b4   : > { %6414 = vst [vmem:[#allocation64_spill] sm:$0xff] %v5551_v63 }
 0x3b5   : > { %2588 = vrot.lane.b32.xlu1 %v2523_v58, %s3835_s28  ;;  %v6418_v58 = vld [vmem:[#allocation82_spill] sm:$0xff] }
 0x3b6   : > { %v2081_v40 = vsub.f32 %v5566_v42, %v6418_v58  ;;  %v6420_v58 = vld [vmem:[#allocation85_spill] sm:$0xff] }
 0x3b7   : > { %v5554_v51 = vpop.permute.xlu1 %1796 }
 0x3b8   : > { %6415 = vst [vmem:[#allocation67_spill] sm:$0xff] %v5554_v51 }
 0x3b9   : > { %2592 = vrot.lane.b32.xlu1 %v2525_v48, %s3835_s28  ;;  %v2304_v48 = vsub.f32 %v5128_v39, %v2080_v61 }
 0x3bb   : > { %v2373_v50 = vpop.permute.xlu1 %2372 }
 0x3bc   : > { %3586 = vrcp.f32 %v2373_v50 }
 0x3bf   : > { %v2375_v15 = vpop.permute.xlu1 %2374 }
 0x3c0   : > { %3588 = vrcp.f32 %v2375_v15 }
 0x3c3   : > { %v2377_v24 = vpop.permute.xlu1 %2376 }
 0x3c4   : > { %3590 = vrcp.f32 %v2377_v24 }
 0x3c6   : > { %v3587_v43 = vpop.eup %3586 }
 0x3c7   : > { %v2379_v52 = vpop.permute.xlu1 %2378  ;;  %v2469_v59 = vmul.f32 %v3587_v43, %v2303_v32  ;;  %v2082_v32 = vsub.f32 %v5572_v20, %v6419_v11  ;;  %v2305_v43 = vsub.f32 %v5128_v39, %v2081_v40  ;;  %v6421_v11 = vld [vmem:[#allocation86_spill] sm:$0xff] }
 0x3c8   : > { %3592 = vrcp.f32 %v2379_v52 }
 0x3c9   : > { %v2527_v50 = vsub.f32 1.0, %v2469_v59  ;;  %v5578_v59 = vld [vmem:[#allocation2 + $0x48] sm:$0xff] }
 0x3ca   : > { %v3589_v15 = vpop.eup %3588  ;;  %vm2275_vm6 = vcmp.le.f32.partialorder %v5578_v59, 1.0 }
 0x3cb   : > { %v2381_v18 = vpop.permute.xlu1 %2380  ;;  %2596 = vrot.lane.b32.xlu1 %v2527_v50, %s3835_s28  ;;  %v2471_v24 = vmul.f32 %v3589_v15, %v2304_v48  ;;  %v2083_v48 = vsub.f32 %v5578_v59, %v6420_v58  ;;  %v2306_v50 = vsub.f32 %v5128_v39, %v2082_v32  ;;  %v6422_v58 = vld [vmem:[#allocation87_spill] sm:$0xff] }
 0x3cc   : > { %3594 = vrcp.f32 %v2381_v18 }
 0x3cd   : > { %v2528_v52 = vsub.f32 1.0, %v2471_v24  ;;  %v5584_v24 = vld [vmem:[#allocation2 + $0x50] sm:$0xff] }
 0x3ce   : > { %v3591_v51 = vpop.eup %3590  ;;  %vm2276_vm1 = vcmp.le.f32.partialorder %v5584_v24, 1.0 }
 0x3cf   : > { %v2383_v63 = vpop.permute.xlu1 %2382  ;;  %2598 = vrot.lane.b32.xlu0 %v2528_v52, %s3835_s28  ;;  %v2473_v61 = vmul.f32 %v3591_v51, %v2305_v43  ;;  %v2084_v51 = vsub.f32 %v5584_v24, %v6421_v11 }
 0x3d0   : > { %3596 = vrcp.f32 %v2383_v63  ;;  %v2307_v63 = vsub.f32 %v5128_v39, %v2083_v48 }
 0x3d1   : > { %v2529_v15 = vsub.f32 1.0, %v2473_v61  ;;  %v5590_v61 = vld [vmem:[#allocation2 + $0x58] sm:$0xff] }
 0x3d2   : > { %v3593_v18 = vpop.eup %3592  ;;  %vm2277_vm14 = vcmp.le.f32.partialorder %v5590_v61, 1.0 }
 0x3d3   : > { %v2385_v1 = vpop.permute.xlu1 %2384  ;;  %2600 = vrot.lane.b32.xlu1 %v2529_v15, %s3835_s28  ;;  %v2475_v40 = vmul.f32 %v3593_v18, %v2306_v50  ;;  %v2085_v50 = vsub.f32 %v5590_v61, %v6422_v58 }
 0x3d4   : > { %3598 = vrcp.f32 %v2385_v1  ;;  %v2308_v1 = vsub.f32 %v5128_v39, %v2084_v51 }
 0x3d5   : > { %v2530_v43 = vsub.f32 1.0, %v2475_v40  ;;  %v5596_v40 = vld [vmem:[#allocation2 + $0x60] sm:$0xff] }
 0x3d6   : > { %v3595_v52 = vpop.eup %3594  ;;  %v2086_v11 = vsub.f32 %v5596_v40, %v5167_v60  ;;  %vm2278_vm15 = vcmp.le.f32.partialorder %v5596_v40, 1.0 }
 0x3d7   : > { %v2387_v5 = vpop.permute.xlu1 %2386  ;;  %2602 = vrot.lane.b32.xlu0 %v2530_v43, %s3835_s28  ;;  %v2477_v32 = vmul.f32 %v3595_v52, %v2307_v63 }
 0x3d8   : > { %3600 = vrcp.f32 %v2387_v5  ;;  %v2309_v5 = vsub.f32 %v5128_v39, %v2085_v50 }
 0x3d9   : > { %v2531_v15 = vsub.f32 1.0, %v2477_v32  ;;  %v5602_v32 = vld [vmem:[#allocation2 + $0x68] sm:$0xff] }
 0x3da   : > { %v3597_v18 = vpop.eup %3596  ;;  %v2087_v58 = vsub.f32 %v5602_v32, %v5197_v55  ;;  %vm2279_vm8 = vcmp.le.f32.partialorder %v5602_v32, 1.0 }
 0x3db   : > { %v2389_v17 = vpop.permute.xlu1 %2388  ;;  %2604 = vrot.lane.b32.xlu1 %v2531_v15, %s3835_s28  ;;  %v2479_v48 = vmul.f32 %v3597_v18, %v2308_v1 }
 0x3dc   : > { %3602 = vrcp.f32 %v2389_v17  ;;  %v2310_v17 = vsub.f32 %v5128_v39, %v2086_v11  ;;  %v2311_v50 = vsub.f32 %v5128_v39, %v2087_v58 }
 0x3dd   : > { %v2532_v63 = vsub.f32 1.0, %v2479_v48  ;;  %v5609_v48 = vld [vmem:[#allocation2 + $0x70] sm:$0xff] }
 0x3de   : > { %v3599_v43 = vpop.eup %3598  ;;  %vm2280_vm12 = vcmp.le.f32.partialorder %v5609_v48, 1.0 }
 0x3df   : > { %v2391_v52 = vpop.permute.xlu1 %2390  ;;  %2606 = vrot.lane.b32.xlu0 %v2532_v63, %s3835_s28  ;;  %v2481_v51 = vmul.f32 %v3599_v43, %v2309_v5  ;;  %v2088_v5 = vsub.f32 %v5609_v48, %v5230_v2 }
 0x3e0   : > { %3604 = vrcp.f32 %v2391_v52 }
 0x3e1   : > { %v2533_v1 = vsub.f32 1.0, %v2481_v51  ;;  %v2312_v11 = vsub.f32 %v5128_v39, %v2088_v5  ;;  %v5615_v51 = vld [vmem:[#allocation2 + $0x78] sm:$0xff] }
 0x3e2   : > { %v3601_v15 = vpop.eup %3600 }
 0x3e3   : > { %v2393_v18 = vpop.permute.xlu1 %2392  ;;  %2608 = vrot.lane.b32.xlu1 %v2533_v1, %s3835_s28  ;;  %v2483_v60 = vmul.f32 %v3601_v15, %v2310_v17  ;;  %v2089_v17 = vsub.f32 %v5615_v51, %v5266_v38  ;;  %v5619_v15 = vpop.permute.xlu0 %1762 }
 0x3e4   : > { %3606 = vrcp.f32 %v2393_v18 }
 0x3e5   : > { %v2534_v63 = vsub.f32 1.0, %v2483_v60  ;;  %v2313_v60 = vsub.f32 %v5128_v39, %v2089_v17 }
 0x3e6   : > { %v3603_v43 = vpop.eup %3602 }
 0x3e7   : > { %v2395_v52 = vpop.permute.xlu1 %2394  ;;  %2610 = vrot.lane.b32.xlu0 %v2534_v63, %s3835_s28  ;;  %v2485_v55 = vmul.f32 %v3603_v43, %v2311_v50  ;;  %v5623_v50 = vld [vmem:[#allocation2 + $0x80] sm:$0xff]  ;;  %v5633_v17 = vpop.permute.xlu0 %1764 }
 0x3e8   : > { %3608 = vrcp.f32 %v2395_v52  ;;  %v2090_v5 = vsub.f32 %v5623_v50, %v5296_v36 }
 0x3e9   : > { %v2535_v58 = vsub.f32 1.0, %v2485_v55 }
 0x3ea   : > { %v3605_v1 = vpop.eup %3604  ;;  %v2314_v55 = vsub.f32 %v5128_v39, %v2090_v5 }
 0x3eb   : > { %v2397_v18 = vpop.permute.xlu1 %2396  ;;  %2612 = vrot.lane.b32.xlu1 %v2535_v58, %s3835_s28  ;;  %v2487_v2 = vmul.f32 %v3605_v1, %v2312_v11  ;;  %v2091_v11 = vsub.f32 %v5629_v0, %v5306_v57 }
 0x3ec   : > { %3610 = vrcp.f32 %v2397_v18 }
 0x3ed   : > { %v2536_v63 = vsub.f32 1.0, %v2487_v2  ;;  %v2315_v2 = vsub.f32 %v5128_v39, %v2091_v11 }
 0x3ee   : > { %v3607_v43 = vpop.eup %3606 }
 0x3ef   : > { %v2399_v52 = vpop.permute.xlu1 %2398  ;;  %2614 = vrot.lane.b32.xlu0 %v2536_v63, %s3835_s28  ;;  %v2489_v38 = vmul.f32 %v3607_v43, %v2313_v60  ;;  %v5637_v60 = vld [vmem:[#allocation2 + $0x90] sm:$0xff] }
 0x3f0   : > { %3612 = vrcp.f32 %v2399_v52  ;;  %v2092_v5 = vsub.f32 %v5637_v60, %v5321_v29  ;;  %v5641_v52 = vpop.permute.xlu0 %1766 }
 0x3f1   : > { %v2537_v58 = vsub.f32 1.0, %v2489_v38 }
 0x3f2   : > { %v3609_v1 = vpop.eup %3608 }
 0x3f3   : > { %v2401_v18 = vpop.permute.xlu1 %2400  ;;  %2616 = vrot.lane.b32.xlu1 %v2537_v58, %s3835_s28  ;;  %v2491_v36 = vmul.f32 %v3609_v1, %v2314_v55  ;;  %v2316_v58 = vsub.f32 %v5128_v39, %v2092_v5  ;;  %v5645_v55 = vld [vmem:[#allocation2 + $0x98] sm:$0xff] }
 0x3f4   : > { %3614 = vrcp.f32 %v2401_v18  ;;  %v2093_v11 = vsub.f32 %v5645_v55, %v5328_v25  ;;  %v5655_v5 = vpop.permute.xlu0 %1768 }
 0x3f5   : > { %v2538_v63 = vsub.f32 1.0, %v2491_v36 }
 0x3f6   : > { %v3611_v43 = vpop.eup %3610  ;;  %v2317_v36 = vsub.f32 %v5128_v39, %v2093_v11 }
 0x3f7   : > { %v2403_v57 = vpop.permute.xlu1 %2402  ;;  %2618 = vrot.lane.b32.xlu0 %v2538_v63, %s3835_s28  ;;  %v2493_v38 = vmul.f32 %v3611_v43, %v2315_v2  ;;  %v2094_v2 = vsub.f32 %v5651_v10, %v5337_v56 }
 0x3f8   : > { %3616 = vrcp.f32 %v2403_v57 }
 0x3f9   : > { %v2539_v1 = vsub.f32 1.0, %v2493_v38  ;;  %v2318_v38 = vsub.f32 %v5128_v39, %v2094_v2 }
 0x3fa   : > { %v3613_v18 = vpop.eup %3612 }
 0x3fb   : > { %v2405_v47 = vpop.permute.xlu1 %2404  ;;  %2620 = vrot.lane.b32.xlu1 %v2539_v1, %s3835_s28  ;;  %v2495_v29 = vmul.f32 %v3613_v18, %v2316_v58  ;;  %v5659_v58 = vld [vmem:[#allocation2 + $0xa8] sm:$0xff]  ;;  %v5663_v18 = vpop.permute.xlu0 %1770 }
 0x3fc   : > { %3618 = vrcp.f32 %v2405_v47  ;;  %v2095_v47 = vsub.f32 %v5659_v58, %v5343_v21 }
 0x3fd   : > { %v2540_v63 = vsub.f32 1.0, %v2495_v29 }
 0x3fe   : > { %v3615_v43 = vpop.eup %3614 }
 0x3ff   : > { %v2407_v57 = vpop.permute.xlu1 %2406  ;;  %2622 = vrot.lane.b32.xlu0 %v2540_v63, %s3835_s28  ;;  %v2497_v25 = vmul.f32 %v3615_v43, %v2317_v36  ;;  %v2319_v63 = vsub.f32 %v5128_v39, %v2095_v47  ;;  %v5667_v36 = vld [vmem:[#allocation2 + $0xb0] sm:$0xff]  ;;  %v5677_v47 = vpop.permute.xlu0 %1772 }
 0x400   : > { %3620 = vrcp.f32 %v2407_v57  ;;  %v2096_v2 = vsub.f32 %v5667_v36, %v5352_v41  ;;  %6423 = vst [vmem:[#allocation59_spill] sm:$0xff] %v5677_v47 }
 0x401   : > { %v2541_v11 = vsub.f32 1.0, %v2497_v25 }
 0x402   : > { %v3617_v1 = vpop.eup %3616  ;;  %v2320_v25 = vsub.f32 %v5128_v39, %v2096_v2 }
 0x403   : > { %v2409_v56 = vpop.permute.xlu1 %2408  ;;  %2624 = vrot.lane.b32.xlu1 %v2541_v11, %s3835_s28  ;;  %v2499_v29 = vmul.f32 %v3617_v1, %v2318_v38  ;;  %v2097_v38 = vsub.f32 %v5673_v53, %v5357_v30  ;;  %v5685_v30 = vld [vmem:[#allocation2] sm:$0xff] }
 0x404   : > { %3622 = vrcp.f32 %v2409_v56  ;;  %vm2266_vm0 = vcmp.le.f32.partialorder %v5685_v30, 1.0 }
 0x405   : > { %v2542_v43 = vsub.f32 1.0, %v2499_v29  ;;  %v2321_v29 = vsub.f32 %v5128_v39, %v2097_v38  ;;  %v5690_v38 = vld [vmem:[#allocation2 + $0xc8] sm:$0xff] }
 0x406   : > { %v3619_v57 = vpop.eup %3618 }
 0x407   : > { %v2411_v44 = vpop.permute.xlu1 %2410  ;;  %2626 = vrot.lane.b32.xlu0 %v2542_v43, %s3835_s28  ;;  %v2501_v21 = vmul.f32 %v3619_v57, %v2319_v63  ;;  %v5681_v63 = vld [vmem:[#allocation2 + $0xc0] sm:$0xff] }
 0x408   : > { %3624 = vrcp.f32 %v2411_v44  ;;  %v2098_v44 = vsub.f32 %v5681_v63, %v5363_v9 }
 0x409   : > { %v2543_v11 = vsub.f32 1.0, %v2501_v21 }
 0x40a   : > { %v3621_v1 = vpop.eup %3620 }
 0x40b   : > { %v2413_v56 = vpop.permute.xlu1 %2412  ;;  %2628 = vrot.lane.b32.xlu1 %v2543_v11, %s3835_s28  ;;  %v2503_v41 = vmul.f32 %v3621_v1, %v2320_v25  ;;  %v2587_v2 = vpop.permute.xlu0 %2586  ;;  %v2322_v25 = vsub.f32 %v5128_v39, %v2098_v44  ;;  %v2099_v1 = vsub.f32 %v5690_v38, %v5368_v28 }
 0x40c   : > { %3626 = vrcp.f32 %v2413_v56 }
 0x40d   : > { %v2544_v43 = vsub.f32 1.0, %v2503_v41  ;;  %v2682_v41 = vsel %vm2266_vm0, 0.0, %v2587_v2  ;;  %v2323_v44 = vsub.f32 %v5128_v39, %v2099_v1  ;;  %vm2281_vm0 = vcmp.le.f32.partialorder %v5615_v51, 1.0 }
 0x40e   : > { %v3623_v57 = vpop.eup %3622 }
 0x40f   : > { %v2415_v21 = vpop.permute.xlu1 %2414  ;;  %2630 = vrot.lane.b32.xlu0 %v2544_v43, %s3835_s28  ;;  %v2505_v11 = vmul.f32 %v3623_v57, %v2321_v29  ;;  %v2591_v35 = vpop.permute.xlu0 %2590  ;;  %v5700_v43 = vld [vmem:[#allocation2 + $0xd0] sm:$0xff] }
 0x410   : > { %3628 = vrcp.f32 %v2415_v21  ;;  %v2100_v28 = vsub.f32 %v5700_v43, %v5377_v3  ;;  %v2684_v21 = vsel %vm2268_vm10, 0.0, %v2591_v35  ;;  %vm2282_vm10 = vcmp.le.f32.partialorder %v5623_v50, 1.0 }
 0x411   : > { %v2545_v9 = vsub.f32 1.0, %v2505_v11 }
 0x412   : > { %v3625_v56 = vpop.eup %3624 }
 0x413   : > { %v2417_v47 = vpop.permute.xlu1 %2416  ;;  %2632 = vrot.lane.b32.xlu1 %v2545_v9, %s3835_s28  ;;  %2746 = vrot.lane.b32.xlu0 %v2682_v41, %s3836_s21  ;;  %v2507_v29 = vmul.f32 %v3625_v56, %v2322_v25  ;;  %v2324_v25 = vsub.f32 %v5128_v39, %v2100_v28 }
 0x414   : > { %3630 = vrcp.f32 %v2417_v47  ;;  %v5707_v47 = vld [vmem:[#allocation2 + $0xd8] sm:$0xff] }
 0x415   : > { %v2546_v2 = vsub.f32 1.0, %v2507_v29  ;;  %v2101_v1 = vsub.f32 %v5707_v47, %v5385_v7 }
 0x416   : > { %v3627_v57 = vpop.eup %3626 }
 0x417   : > { %v2419_v11 = vpop.permute.xlu1 %2418  ;;  %2634 = vrot.lane.b32.xlu1 %v2546_v2, %s3835_s28  ;;  %2750 = vrot.lane.b32.xlu0 %v2684_v21, %s3836_s21  ;;  %v2509_v9 = vmul.f32 %v3627_v57, %v2323_v44  ;;  %v2325_v29 = vsub.f32 %v5128_v39, %v2101_v1  ;;  %v5713_v2 = vld [vmem:[#allocation2 + $0xe0] sm:$0xff] }
 0x418   : > { %3632 = vrcp.f32 %v2419_v11  ;;  %v2102_v44 = vsub.f32 %v5713_v2, %v5394_v45  ;;  %v5718_v11 = vld [vmem:[#allocation2 + $0xe8] sm:$0xff] }
 0x419   : > { %v2547_v56 = vsub.f32 1.0, %v2509_v9  ;;  %v2103_v9 = vsub.f32 %v5718_v11, %v5404_v62 }
 0x41a   : > { %v3629_v41 = vpop.eup %3628 }
 0x41b   : > { %v2421_v3 = vpop.permute.xlu1 %2420  ;;  %2636 = vrot.lane.b32.xlu1 %v2547_v56, %s3835_s28  ;;  %v2511_v35 = vmul.f32 %v3629_v41, %v2324_v25  ;;  %v2326_v25 = vsub.f32 %v5128_v39, %v2102_v44  ;;  %v5730_v44 = vld [vmem:[#allocation2 + $0xf8] sm:$0xff] }
 0x41c   : > { %3634 = vrcp.f32 %v2421_v3  ;;  %v2327_v3 = vsub.f32 %v5128_v39, %v2103_v9 }
 0x41d   : > { %v2548_v28 = vsub.f32 1.0, %v2511_v35  ;;  %v5725_v35 = vld [vmem:[#allocation2 + $0xf0] sm:$0xff] }
 0x41e   : > { %v3631_v57 = vpop.eup %3630 }
 0x41f   : > { %v2423_v21 = vpop.permute.xlu1 %2422  ;;  %2638 = vrot.lane.b32.xlu1 %v2548_v28, %s3835_s28  ;;  %v2513_v7 = vmul.f32 %v3631_v57, %v2325_v29  ;;  %v2104_v29 = vsub.f32 %v5725_v35, %v5400_v34 }
 0x420   : > { %3636 = vrcp.f32 %v2423_v21 }
 0x421   : > { %v2549_v1 = vsub.f32 1.0, %v2513_v7  ;;  %v2105_v7 = vsub.f32 %v5730_v44, %v5412_v6 }
 0x422   : > { %v3633_v56 = vpop.eup %3632 }
 0x423   : > { %v2425_v41 = vpop.permute.xlu1 %2424  ;;  %2640 = vrot.lane.b32.xlu1 %v2549_v1, %s3835_s28  ;;  %v2515_v45 = vmul.f32 %v3633_v56, %v2326_v25  ;;  %v2328_v25 = vsub.f32 %v5128_v39, %v2104_v29 }
 0x424   : > { %3638 = vrcp.f32 %v2425_v41 }
 0x425   : > { %v2550_v28 = vsub.f32 1.0, %v2515_v45  ;;  %v2329_v45 = vsub.f32 %v5128_v39, %v2105_v7  ;;  %3640 = vrcp.f32 %v5420_v12 }
 0x426   : > { %v3635_v57 = vpop.eup %3634  ;;  %3642 = vrcp.f32 %v5416_v37  ;;  %v1658_v37 = vsub.f32 %v5128_v39, %v5685_v30  ;;  %v1659_v30 = vsub.f32 %v5128_v39, %v5533_v8  ;;  %v1661_v8 = vsub.f32 %v5128_v39, %v5541_v4 }
 0x427   : > { %v2589_v21 = vpop.permute.xlu1 %2588  ;;  %2642 = vrot.lane.b32.xlu1 %v2550_v28, %s3835_s28  ;;  %v2517_v62 = vmul.f32 %v3635_v57, %v2327_v3  ;;  %v5738_v28 = vld [vmem:[#allocation2 + $0x20] sm:$0xff]  ;;  %v2595_v3 = vpop.permute.xlu0 %2594  ;;  %3644 = vrcp.f32 %v5409_v31 }
 0x428   : > { %vm2270_vm7 = vcmp.le.f32.partialorder %v5738_v28, 1.0  ;;  %v2683_v7 = vsel %vm2267_vm9, 0.0, %v2589_v21  ;;  %v1714_v21 = vadd.f32 %v5128_v39, %v5448_v13  ;;  %v1716_v13 = vadd.f32 %v5128_v39, %v5473_v49 }
 0x429   : > { %v2551_v9 = vsub.f32 1.0, %v2517_v62  ;;  %v2686_v62 = vsel %vm2270_vm7, 0.0, %v2595_v3  ;;  %vm2284_vm7 = vcmp.le.f32.partialorder %v5637_v60, 1.0  ;;  %vm2285_vm9 = vcmp.le.f32.partialorder %v5645_v55, 1.0 }
 0x42a   : > { %v3637_v1 = vpop.eup %3636  ;;  %3646 = vrcp.f32 %v5619_v15 }
 0x42b   : > { %v2593_v56 = vpop.permute.xlu1 %2592  ;;  %2644 = vrot.lane.b32.xlu1 %v2551_v9, %s3835_s28  ;;  %v2519_v34 = vmul.f32 %v3637_v1, %v2328_v25  ;;  %v1712_v25 = vadd.f32 %v5128_v39, %v5428_v54  ;;  %v1713_v1 = vadd.f32 %v5128_v39, %v5433_v22  ;;  %v1715_v22 = vadd.f32 %v5128_v39, %v5456_v19 }
 0x42c   : > { %v2685_v41 = vsel %vm2269_vm5, 0.0, %v2593_v56  ;;  %v1717_v19 = vadd.f32 %v5128_v39, %v5480_v33  ;;  %v1719_v33 = vadd.f32 %v5128_v39, %v5503_v14  ;;  %v1721_v14 = vadd.f32 %v5128_v39, %v5520_v16 }
 0x42d   : > { %2752 = vrot.lane.b32.xlu0 %v2685_v41, %s3836_s21  ;;  %v2552_v6 = vsub.f32 1.0, %v2519_v34  ;;  %vm2283_vm5 = vcmp.le.f32.partialorder %v5629_v0, 1.0  ;;  %3648 = vrcp.f32 %v5423_v46 }
 0x42e   : > { %v3639_v29 = vpop.eup %3638  ;;  %3650 = vrcp.f32 %v5633_v17 }
 0x42f   : > { %2646 = vrot.lane.b32.xlu1 %v2552_v6, %s3835_s28  ;;  %v2521_v57 = vmul.f32 %v3639_v29, %v2329_v45  ;;  %3652 = vrcp.f32 %v5641_v52 }
 0x430   : > { %3654 = vrcp.f32 %v5655_v5 }
 0x431   : > { %2754 = vrot.lane.b32.xlu0 %v2686_v62, %s3836_s21  ;;  %v2553_v9 = vsub.f32 1.0, %v2521_v57  ;;  %3656 = vrcp.f32 %v5663_v18 }
 0x433   : > { %2648 = vrot.lane.b32.xlu1 %v2553_v9, %s3835_s28 }
 0x437   : > { %2748 = vrot.lane.b32.xlu1 %v2683_v7, %s3836_s21  ;;  %v6424_v7 = vld [vmem:[#allocation89_spill] sm:$0xff] }
 0x43b   : > { %1798 = vrot.lane.b32.xlu1 %v1712_v25, %s3836_s21 }
 0x43d   : > { %v2597_v56 = vpop.permute.xlu1 %2596 }
 0x43e   : > { %v2687_v34 = vsel %vm2271_vm13, 0.0, %v2597_v56  ;;  %vm2286_vm13 = vcmp.le.f32.partialorder %v5651_v10, 1.0 }
 0x43f   : > { %1800 = vrot.lane.b32.xlu1 %v1713_v1, %s3836_s21  ;;  %2756 = vrot.lane.b32.xlu0 %v2687_v34, %s3836_s21 }
 0x441   : > { %v2599_v41 = vpop.permute.xlu0 %2598 }
 0x442   : > { %v2688_v54 = vsel %vm2272_vm3, 0.0, %v2599_v41  ;;  %vm2287_vm3 = vcmp.le.f32.partialorder %v5659_v58, 1.0 }
 0x443   : > { %1802 = vrot.lane.b32.xlu1 %v1714_v21, %s3836_s21  ;;  %2758 = vrot.lane.b32.xlu0 %v2688_v54, %s3836_s21  ;;  %v6425_v21 = vld [vmem:[#allocation90_spill] sm:$0xff] }
 0x445   : > { %v2601_v45 = vpop.permute.xlu1 %2600 }
 0x446   : > { %v2689_v3 = vsel %vm2273_vm11, 0.0, %v2601_v45  ;;  %vm2288_vm11 = vcmp.le.f32.partialorder %v5667_v36, 1.0 }
 0x447   : > { %1804 = vrot.lane.b32.xlu1 %v1715_v22, %s3836_s21  ;;  %2760 = vrot.lane.b32.xlu0 %v2689_v3, %s3836_s21 }
 0x449   : > { %v2603_v6 = vpop.permute.xlu0 %2602 }
 0x44a   : > { %v2690_v29 = vsel %vm2274_vm2, 0.0, %v2603_v6  ;;  %vm2289_vm2 = vcmp.le.f32.partialorder %v5673_v53, 1.0 }
 0x44b   : > { %1806 = vrot.lane.b32.xlu1 %v1716_v13, %s3836_s21  ;;  %2762 = vrot.lane.b32.xlu0 %v2690_v29, %s3836_s21 }
 0x44d   : > { %v2605_v57 = vpop.permute.xlu1 %2604 }
 0x44e   : > { %v2691_v62 = vsel %vm2275_vm6, 0.0, %v2605_v57  ;;  %vm2290_vm6 = vcmp.le.f32.partialorder %v5681_v63, 1.0 }
 0x44f   : > { %1808 = vrot.lane.b32.xlu1 %v1717_v19, %s3836_s21  ;;  %2764 = vrot.lane.b32.xlu0 %v2691_v62, %s3836_s21 }
 0x451   : > { %v2607_v49 = vpop.permute.xlu0 %2606 }
 0x452   : > { %v2692_v9 = vsel %vm2276_vm1, 0.0, %v2607_v49  ;;  %vm2291_vm1 = vcmp.le.f32.partialorder %v5690_v38, 1.0 }
 0x453   : > { %1810 = vrot.lane.b32.xlu1 %v6424_v7, %s3836_s21  ;;  %2766 = vrot.lane.b32.xlu0 %v2692_v9, %s3836_s21 }
 0x455   : > { %v2609_v25 = vpop.permute.xlu1 %2608 }
 0x456   : > { %v2693_v1 = vsel %vm2277_vm14, 0.0, %v2609_v25  ;;  %vm2292_vm14 = vcmp.le.f32.partialorder %v5700_v43, 1.0 }
 0x457   : > { %1812 = vrot.lane.b32.xlu1 %v1719_v33, %s3836_s21  ;;  %2768 = vrot.lane.b32.xlu0 %v2693_v1, %s3836_s21 }
 0x459   : > { %v2611_v56 = vpop.permute.xlu0 %2610 }
 0x45a   : > { %v2694_v34 = vsel %vm2278_vm15, 0.0, %v2611_v56  ;;  %vm2293_vm15 = vcmp.le.f32.partialorder %v5707_v47, 1.0 }
 0x45b   : > { %1814 = vrot.lane.b32.xlu1 %v6425_v21, %s3836_s21  ;;  %2770 = vrot.lane.b32.xlu0 %v2694_v34, %s3836_s21 }
 0x45d   : > { %v2613_v41 = vpop.permute.xlu1 %2612 }
 0x45e   : > { %v2695_v54 = vsel %vm2279_vm8, 0.0, %v2613_v41  ;;  %vm2294_vm8 = vcmp.le.f32.partialorder %v5713_v2, 1.0 }
 0x45f   : > { %1816 = vrot.lane.b32.xlu1 %v1721_v14, %s3836_s21  ;;  %2772 = vrot.lane.b32.xlu0 %v2695_v54, %s3836_s21 }
 0x461   : > { %v2615_v22 = vpop.permute.xlu0 %2614 }
 0x462   : > { %v2696_v45 = vsel %vm2280_vm12, 0.0, %v2615_v22  ;;  %vm2295_vm12 = vcmp.le.f32.partialorder %v5718_v11, 1.0 }
 0x463   : > { %2774 = vrot.lane.b32.xlu0 %v2696_v45, %s3836_s21 }
 0x465   : > { %v2617_v3 = vpop.permute.xlu1 %2616 }
 0x466   : > { %v2697_v13 = vsel %vm2281_vm0, 0.0, %v2617_v3  ;;  %vm2296_vm0 = vcmp.le.f32.partialorder %v5725_v35, 1.0 }
 0x467   : > { %2776 = vrot.lane.b32.xlu0 %v2697_v13, %s3836_s21 }
 0x469   : > { %v2619_v16 = vpop.permute.xlu0 %2618 }
 0x46a   : > { %v2698_v6 = vsel %vm2282_vm10, 0.0, %v2619_v16  ;;  %vm2297_vm10 = vcmp.le.f32.partialorder %v5730_v44, 1.0 }
 0x46b   : > { %2778 = vrot.lane.b32.xlu0 %v2698_v6, %s3836_s21 }
 0x46d   : > { %v2621_v29 = vpop.permute.xlu1 %2620 }
 0x46e   : > { %v2699_v19 = vsel %vm2283_vm5, 0.0, %v2621_v29 }
 0x46f   : > { %2780 = vrot.lane.b32.xlu0 %v2699_v19, %s3836_s21 }
 0x471   : > { %v2623_v57 = vpop.permute.xlu0 %2622 }
 0x472   : > { %v2700_v62 = vsel %vm2284_vm7, 0.0, %v2623_v57  ;;  %v3641_v57 = vpop.eup %3640 }
 0x473   : > { %2782 = vrot.lane.b32.xlu0 %v2700_v62, %s3836_s21  ;;  %v3643_v15 = vpop.eup %3642 }
 0x474   : > { %v3645_v46 = vpop.eup %3644 }
 0x475   : > { %v2625_v49 = vpop.permute.xlu1 %2624 }
 0x476   : > { %v2701_v9 = vsel %vm2285_vm9, 0.0, %v2625_v49  ;;  %v1851_v49 = vmul.f32 %v3641_v57, %v1658_v37 }
 0x477   : > { %2784 = vrot.lane.b32.xlu0 %v2701_v9, %s3836_s21 }
 0x479   : > { %v2627_v7 = vpop.permute.xlu0 %2626 }
 0x47a   : > { %v2702_v33 = vsel %vm2286_vm13, 0.0, %v2627_v7  ;;  %v1660_v7 = vsub.f32 %v5128_v39, %v5694_v23  ;;  %v1662_v23 = vsub.f32 %v5128_v39, %v5738_v28 }
 0x47b   : > { %2786 = vrot.lane.b32.xlu0 %v2702_v33, %s3836_s21 }
 0x47c   : > { %v1855_v17 = vmul.f32 %v3643_v15, %v1660_v7  ;;  %v6426_v15 = vld [vmem:[#allocation59_spill] sm:$0xff] }
 0x47d   : > { %v2629_v25 = vpop.permute.xlu1 %2628  ;;  %3658 = vrcp.f32 %v6426_v15  ;;  %v6432_v15 = vld [vmem:[#allocation63_spill] sm:$0xff] }
 0x47e   : > { %v2703_v1 = vsel %vm2287_vm3, 0.0, %v2629_v25  ;;  %v1916_v52 = vsub.f32 1.0, %v1855_v17 }
 0x47f   : > { %2788 = vrot.lane.b32.xlu0 %v2703_v1, %s3836_s21  ;;  %v1914_v1 = vsub.f32 1.0, %v1851_v49  ;;  %v1664_v49 = vsub.f32 %v5128_v39, %v5561_v26 }
 0x481   : > { %v2631_v56 = vpop.permute.xlu0 %2630 }
 0x482   : > { %v2704_v34 = vsel %vm2288_vm11, 0.0, %v2631_v56  ;;  %v3647_v56 = vpop.eup %3646 }
 0x483   : > { %2790 = vrot.lane.b32.xlu0 %v2704_v34, %s3836_s21 }
 0x485   : > { %v2633_v21 = vpop.permute.xlu1 %2632  ;;  %v2747_v19 = vpop.permute.xlu0 %2746 }
 0x486   : > { %v2705_v14 = vsel %vm2289_vm2, 0.0, %v2633_v21  ;;  %v1853_v21 = vmul.f32 %v3645_v46, %v1659_v30 }
 0x487   : > { %2792 = vrot.lane.b32.xlu0 %v2705_v14, %s3836_s21  ;;  %v3649_v14 = vpop.eup %3648 }
 0x489   : > { %v2635_v41 = vpop.permute.xlu1 %2634  ;;  %v2751_v9 = vpop.permute.xlu0 %2750 }
 0x48a   : > { %v2706_v54 = vsel %vm2290_vm6, 0.0, %v2635_v41  ;;  %v2842_v41 = vsub.f32 %v1914_v1, %v2747_v19 }
 0x48b   : > { %2794 = vrot.lane.b32.xlu0 %v2706_v54, %s3836_s21 }
 0x48d   : > { %v2637_v22 = vpop.permute.xlu1 %2636 }
 0x48e   : > { %v2707_v45 = vsel %vm2291_vm1, 0.0, %v2637_v22 }
 0x48f   : > { %2796 = vrot.lane.b32.xlu1 %v2707_v45, %s3836_s21  ;;  %v1859_v45 = vmul.f32 %v3647_v56, %v1662_v23 }
 0x491   : > { %v2639_v3 = vpop.permute.xlu1 %2638  ;;  %v1918_v4 = vsub.f32 1.0, %v1859_v45 }
 0x492   : > { %v2708_v13 = vsel %vm2292_vm14, 0.0, %v2639_v3  ;;  %v1857_v3 = vmul.f32 %v3649_v14, %v1661_v8  ;;  %v1667_v8 = vsub.f32 %v5128_v39, %v5578_v59 }
 0x493   : > { %2798 = vrot.lane.b32.xlu0 %v2708_v13, %s3836_s21  ;;  %v1915_v13 = vsub.f32 1.0, %v1853_v21  ;;  %v6428_v21 = vld [vmem:[#allocation61_spill] sm:$0xff] }
 0x494   : > { %v1917_v5 = vsub.f32 1.0, %v1857_v3 }
 0x495   : > { %v2641_v16 = vpop.permute.xlu1 %2640 }
 0x496   : > { %v2709_v6 = vsel %vm2293_vm15, 0.0, %v2641_v16  ;;  %v3651_v16 = vpop.eup %3650 }
 0x497   : > { %2800 = vrot.lane.b32.xlu1 %v2709_v6, %s3836_s21  ;;  %v2844_v6 = vsub.f32 %v1916_v52, %v2751_v9  ;;  %v3653_v37 = vpop.eup %3652 }
 0x498   : > { %v1863_v18 = vmul.f32 %v3653_v37, %v1664_v49  ;;  %v3655_v9 = vpop.eup %3654  ;;  %v1670_v49 = vsub.f32 %v5128_v39, %v5596_v40 }
 0x499   : > { %v2643_v29 = vpop.permute.xlu1 %2642  ;;  %v3657_v1 = vpop.eup %3656 }
 0x49a   : > { %v2710_v12 = vsel %vm2294_vm8, 0.0, %v2643_v29  ;;  %v1920_v30 = vsub.f32 1.0, %v1863_v18  ;;  %v3659_v23 = vpop.eup %3658 }
 0x49b   : > { %2802 = vrot.lane.b32.xlu0 %v2710_v12, %s3836_s21  ;;  %v1663_v12 = vsub.f32 %v5128_v39, %v5557_v27  ;;  %v1869_v45 = vmul.f32 %v3659_v23, %v1667_v8  ;;  %v6435_v8 = vld [vmem:[#allocation66_spill] sm:$0xff] }
 0x49d   : > { %v2645_v31 = vpop.permute.xlu1 %2644  ;;  %v1861_v57 = vmul.f32 %v3651_v16, %v1663_v12  ;;  %v1668_v16 = vsub.f32 %v5128_v39, %v5584_v24 }
 0x49e   : > { %v2711_v62 = vsel %vm2295_vm12, 0.0, %v2645_v31 }
 0x49f   : > { %2804 = vrot.lane.b32.xlu1 %v2711_v62, %s3836_s21  ;;  %v2753_v34 = vpop.permute.xlu0 %2752  ;;  %v1919_v27 = vsub.f32 1.0, %v1861_v57 }
 0x4a0   : > { %v2845_v62 = vsub.f32 %v1917_v5, %v2753_v34  ;;  %v1666_v34 = vsub.f32 %v5128_v39, %v5572_v20  ;;  %v6431_v5 = vld [vmem:[#allocation83_spill] sm:$0xff] }
 0x4a1   : > { %v2647_v33 = vpop.permute.xlu1 %2646 }
 0x4a2   : > { %v2712_v25 = vsel %vm2296_vm0, 0.0, %v2647_v33  ;;  %v1665_v33 = vsub.f32 %v5128_v39, %v5566_v42 }
 0x4a3   : > { %2806 = vrot.lane.b32.xlu0 %v2712_v25, %s3836_s21  ;;  %v2755_v19 = vpop.permute.xlu0 %2754  ;;  %v6427_v25 = vld [vmem:[#allocation81_spill] sm:$0xff] }
 0x4a4   : > { %v2846_v31 = vsub.f32 %v1918_v4, %v2755_v19  ;;  %3660 = vrcp.f32 %v6427_v25  ;;  %v1865_v26 = vmul.f32 %v3655_v9, %v1665_v33  ;;  %v1669_v4 = vsub.f32 %v5128_v39, %v5590_v61  ;;  %v6433_v25 = vld [vmem:[#allocation72_spill] sm:$0xff] }
 0x4a5   : > { %v2649_v54 = vpop.permute.xlu1 %2648  ;;  %3662 = vrcp.f32 %v6428_v21  ;;  %v1671_v33 = vsub.f32 %v5128_v39, %v5602_v32  ;;  %v6434_v21 = vld [vmem:[#allocation62_spill] sm:$0xff] }
 0x4a6   : > { %v2713_v22 = vsel %vm2297_vm10, 0.0, %v2649_v54  ;;  %v1921_v14 = vsub.f32 1.0, %v1865_v26 }
 0x4a7   : > { %2808 = vrot.lane.b32.xlu1 %v2713_v22, %s3836_s21  ;;  %2938 = vrot.lane.b32.xlu0 %v2842_v41, %s3835_s28  ;;  %v1867_v41 = vmul.f32 %v3657_v1, %v1666_v34  ;;  %v6429_v22 = vld [vmem:[#allocation71_spill] sm:$0xff]  ;;  %v1672_v34 = vsub.f32 %v5128_v39, %v5609_v48 }
 0x4a8   : > { %3664 = vrcp.f32 %v6429_v22 }
 0x4a9   : > { %v2749_v29 = vpop.permute.xlu1 %2748  ;;  %v1922_v52 = vsub.f32 1.0, %v1867_v41 }
 0x4aa   : > { %v2843_v28 = vsub.f32 %v1915_v13, %v2749_v29  ;;  %v1923_v29 = vsub.f32 1.0, %v1869_v45 }
 0x4ab   : > { %2942 = vrot.lane.b32.xlu0 %v2844_v6, %s3835_s28  ;;  %v6430_v6 = vld [vmem:[#allocation60_spill] sm:$0xff] }
 0x4ac   : > { %2940 = vrot.lane.b32.xlu1 %v2843_v28, %s3835_s28  ;;  %3666 = vrcp.f32 %v6430_v6 }
 0x4ad   : > { %3668 = vrcp.f32 %v6431_v5 }
 0x4ae   : > { %v3661_v3 = vpop.eup %3660  ;;  %3670 = vrcp.f32 %v6432_v15 }
 0x4af   : > { %2946 = vrot.lane.b32.xlu0 %v2846_v31, %s3835_s28  ;;  %v1871_v19 = vmul.f32 %v3661_v3, %v1668_v16  ;;  %v3663_v28 = vpop.eup %3662  ;;  %3672 = vrcp.f32 %v6433_v25  ;;  %v6436_v16 = vld [vmem:[#allocation73_spill] sm:$0xff] }
 0x4b0   : > { %2944 = vrot.lane.b32.xlu1 %v2845_v62, %s3835_s28  ;;  %v1873_v37 = vmul.f32 %v3663_v28, %v1669_v4  ;;  %3674 = vrcp.f32 %v6434_v21  ;;  %v6437_v4 = vld [vmem:[#allocation64_spill] sm:$0xff] }
 0x4b1   : > { %v2757_v46 = vpop.permute.xlu0 %2756  ;;  %v1924_v57 = vsub.f32 1.0, %v1871_v19  ;;  %3676 = vrcp.f32 %v6435_v8 }
 0x4b2   : > { %v2847_v7 = vsub.f32 %v1919_v27, %v2757_v46  ;;  %v3665_v31 = vpop.eup %3664  ;;  %v1799_v27 = vpop.permute.xlu1 %1798  ;;  %v1925_v18 = vsub.f32 1.0, %v1873_v37  ;;  %3678 = vrcp.f32 %v6436_v16 }
 0x4b3   : > { %v1875_v9 = vmul.f32 %v3665_v31, %v1670_v49  ;;  %3680 = vrcp.f32 %v6437_v4 }
 0x4b4   : > { %2948 = vrot.lane.b32.xlu1 %v2847_v7, %s3835_s28 }
 0x4b5   : > { %v2759_v17 = vpop.permute.xlu0 %2758 }
 0x4b6   : > { %v2848_v56 = vsub.f32 %v1920_v30, %v2759_v17  ;;  %v3667_v61 = vpop.eup %3666  ;;  %v1926_v30 = vsub.f32 1.0, %v1875_v9  ;;  %v1801_v1 = vpop.permute.xlu1 %1800 }
 0x4b7   : > { %v1877_v26 = vmul.f32 %v3667_v61, %v1671_v33  ;;  %v3669_v40 = vpop.eup %3668 }
 0x4b8   : > { %2950 = vrot.lane.b32.xlu0 %v2848_v56, %s3835_s28  ;;  %v1879_v41 = vmul.f32 %v3669_v40, %v1672_v34  ;;  %v3671_v32 = vpop.eup %3670  ;;  %v1678_v40 = vsub.f32 %v5128_v39, %v5651_v10 }
 0x4b9   : > { %v2761_v42 = vpop.permute.xlu0 %2760  ;;  %v3673_v48 = vpop.eup %3672 }
 0x4ba   : > { %v2849_v54 = vsub.f32 %v1921_v14, %v2761_v42  ;;  %v1927_v14 = vsub.f32 1.0, %v1877_v26  ;;  %v1803_v22 = vpop.permute.xlu1 %1802 }
 0x4bc   : > { %2952 = vrot.lane.b32.xlu1 %v2849_v54, %s3835_s28  ;;  %v1673_v54 = vsub.f32 %v5128_v39, %v5615_v51  ;;  %v3675_v51 = vpop.eup %3674 }
 0x4bd   : > { %v2763_v20 = vpop.permute.xlu0 %2762 }
 0x4be   : > { %v2850_v13 = vsub.f32 %v1922_v52, %v2763_v20  ;;  %v1928_v52 = vsub.f32 1.0, %v1879_v41  ;;  %v1881_v45 = vmul.f32 %v3671_v32, %v1673_v54  ;;  %v1805_v19 = vpop.permute.xlu1 %1804 }
 0x4c0   : > { %2954 = vrot.lane.b32.xlu0 %v2850_v13, %s3835_s28  ;;  %v1674_v13 = vsub.f32 %v5128_v39, %v5623_v50  ;;  %v1929_v6 = vsub.f32 1.0, %v1881_v45  ;;  %v3677_v50 = vpop.eup %3676 }
 0x4c1   : > { %v2765_v59 = vpop.permute.xlu0 %2764 }
 0x4c2   : > { %v2851_v12 = vsub.f32 %v1923_v29, %v2765_v59  ;;  %v1883_v29 = vmul.f32 %v3673_v48, %v1674_v13  ;;  %v1807_v49 = vpop.permute.xlu1 %1806  ;;  %v1681_v48 = vsub.f32 %v5128_v39, %v5673_v53 }
 0x4c4   : > { %2956 = vrot.lane.b32.xlu1 %v2851_v12, %s3835_s28  ;;  %v1675_v12 = vsub.f32 %v5128_v39, %v5629_v0  ;;  %v1930_v5 = vsub.f32 1.0, %v1883_v29  ;;  %v3679_v0 = vpop.eup %3678 }
 0x4c5   : > { %v2767_v24 = vpop.permute.xlu0 %2766  ;;  %v3681_v25 = vpop.eup %3680 }
 0x4c6   : > { %v2852_v62 = vsub.f32 %v1924_v57, %v2767_v24  ;;  %v1885_v57 = vmul.f32 %v3675_v51, %v1675_v12  ;;  %v1676_v24 = vsub.f32 %v5128_v39, %v5637_v60  ;;  %v1809_v60 = vpop.permute.xlu1 %1808  ;;  %v1683_v12 = vsub.f32 %v5128_v39, %v5690_v38 }
 0x4c8   : > { %2958 = vrot.lane.b32.xlu0 %v2852_v62, %s3835_s28  ;;  %v6438_v62 = vld [vmem:[#allocation67_spill] sm:$0xff]  ;;  %v1931_v15 = vsub.f32 1.0, %v1885_v57 }
 0x4c9   : > { %v2769_v46 = vpop.permute.xlu0 %2768  ;;  %3682 = vrcp.f32 %v6438_v62 }
 0x4ca   : > { %v2853_v7 = vsub.f32 %v1925_v18, %v2769_v46  ;;  %v1887_v18 = vmul.f32 %v3677_v50, %v1676_v24  ;;  %v1677_v46 = vsub.f32 %v5128_v39, %v5645_v55  ;;  %3684 = vrcp.f32 %v1799_v27 }
 0x4cb   : > { %3686 = vrcp.f32 %v1801_v1  ;;  %v1679_v27 = vsub.f32 %v5128_v39, %v5659_v58  ;;  %v1680_v1 = vsub.f32 %v5128_v39, %v5667_v36 }
 0x4cc   : > { %2960 = vrot.lane.b32.xlu1 %v2853_v7, %s3835_s28  ;;  %v1932_v7 = vsub.f32 1.0, %v1887_v18  ;;  %v1889_v33 = vmul.f32 %v3679_v0, %v1677_v46  ;;  %3688 = vrcp.f32 %v1803_v22  ;;  %v1685_v18 = vsub.f32 %v5128_v39, %v5707_v47 }
 0x4cd   : > { %v2771_v17 = vpop.permute.xlu0 %2770  ;;  %3690 = vrcp.f32 %v1805_v19  ;;  %v1687_v47 = vsub.f32 %v5128_v39, %v5718_v11  ;;  %v1689_v11 = vsub.f32 %v5128_v39, %v5730_v44 }
 0x4ce   : > { %v2854_v56 = vsub.f32 %v1926_v30, %v2771_v17  ;;  %v1933_v17 = vsub.f32 1.0, %v1889_v33  ;;  %3692 = vrcp.f32 %v1807_v49 }
 0x4cf   : > { %3694 = vrcp.f32 %v1809_v60 }
 0x4d0   : > { %2962 = vrot.lane.b32.xlu0 %v2854_v56, %s3835_s28  ;;  %v1891_v56 = vmul.f32 %v3681_v25, %v1678_v40 }
 0x4d1   : > { %v2773_v23 = vpop.permute.xlu0 %2772 }
 0x4d2   : > { %v2855_v42 = vsub.f32 %v1927_v14, %v2773_v23  ;;  %v1811_v14 = vpop.permute.xlu1 %1810  ;;  %v1934_v41 = vsub.f32 1.0, %v1891_v56 }
 0x4d3   : > { %v3683_v34 = vpop.eup %3682  ;;  %3696 = vrcp.f32 %v1811_v14 }
 0x4d4   : > { %2964 = vrot.lane.b32.xlu1 %v2855_v42, %s3835_s28  ;;  %v1893_v32 = vmul.f32 %v3683_v34, %v1679_v27  ;;  %v3685_v23 = vpop.eup %3684 }
 0x4d5   : > { %v2775_v3 = vpop.permute.xlu0 %2774  ;;  %v1895_v8 = vmul.f32 %v3685_v23, %v1680_v1 }
 0x4d6   : > { %v2856_v20 = vsub.f32 %v1928_v52, %v2775_v3  ;;  %v1935_v54 = vsub.f32 1.0, %v1893_v32  ;;  %v3687_v52 = vpop.eup %3686  ;;  %v1813_v45 = vpop.permute.xlu1 %1812 }
 0x4d7   : > { %v1936_v3 = vsub.f32 1.0, %v1895_v8  ;;  %v3689_v13 = vpop.eup %3688  ;;  %3698 = vrcp.f32 %v1813_v45 }
 0x4d8   : > { %2966 = vrot.lane.b32.xlu0 %v2856_v20, %s3835_s28  ;;  %v1897_v20 = vmul.f32 %v3687_v52, %v1681_v48  ;;  %v6439_v52 = vld [vmem:[#allocation12_spill] sm:$0xff] }
 0x4d9   : > { %v2777_v28 = vpop.permute.xlu0 %2776  ;;  %v6440_v45 = vsub.f32 1.0, %v6439_v52 }
 0x4da   : > { %v2857_v59 = vsub.f32 %v1929_v6, %v2777_v28  ;;  %v1682_v6 = vsub.f32 %v5128_v39, %v5681_v63  ;;  %v1815_v29 = vpop.permute.xlu1 %1814  ;;  %v1937_v51 = vsub.f32 1.0, %v1897_v20  ;;  %v3691_v28 = vpop.eup %3690 }
 0x4db   : > { %v3693_v57 = vpop.eup %3692  ;;  %3700 = vrcp.f32 %v1815_v29 }
 0x4dc   : > { %2968 = vrot.lane.b32.xlu1 %v2857_v59, %s3835_s28  ;;  %v1899_v19 = vmul.f32 %v3689_v13, %v1682_v6  ;;  %v3695_v49 = vpop.eup %3694 }
 0x4dd   : > { %v2779_v37 = vpop.permute.xlu0 %2778 }
 0x4de   : > { %v2858_v31 = vsub.f32 %v1930_v5, %v2779_v37  ;;  %v1938_v4 = vsub.f32 1.0, %v1899_v19  ;;  %v1901_v5 = vmul.f32 %v3691_v28, %v1683_v12  ;;  %v1817_v50 = vpop.permute.xlu1 %1816  ;;  %v6445_v19 = vld [vmem:[#allocation17_spill] sm:$0xff] }
 0x4df   : > { %3702 = vrcp.f32 %v1817_v50  ;;  %v6446_v28 = vsub.f32 1.0, %v6445_v19 }
 0x4e0   : > { %2970 = vrot.lane.b32.xlu0 %v2858_v31, %s3835_s28  ;;  %v1684_v31 = vsub.f32 %v5128_v39, %v5700_v43  ;;  %v1939_v24 = vsub.f32 1.0, %v1901_v5  ;;  %v1686_v43 = vsub.f32 %v5128_v39, %v5713_v2  ;;  %v1688_v2 = vsub.f32 %v5128_v39, %v5725_v35 }
 0x4e1   : > { %v2781_v9 = vpop.permute.xlu0 %2780 }
 0x4e2   : > { %v2859_v61 = vsub.f32 %v1931_v15, %v2781_v9  ;;  %v1903_v62 = vmul.f32 %v3693_v57, %v1684_v31  ;;  %v1905_v9 = vmul.f32 %v3695_v49, %v1685_v18 }
 0x4e4   : > { %2972 = vrot.lane.b32.xlu1 %v2859_v61, %s3835_s28  ;;  %v1940_v0 = vsub.f32 1.0, %v1903_v62  ;;  %v3697_v61 = vpop.eup %3696  ;;  %v1941_v33 = vsub.f32 1.0, %v1905_v9 }
 0x4e5   : > { %v2783_v30 = vpop.permute.xlu0 %2782  ;;  %v1907_v25 = vmul.f32 %v3697_v61, %v1686_v43  ;;  %v3699_v60 = vpop.eup %3698  ;;  %v6451_v61 = vld [vmem:[#allocation32_spill] sm:$0xff] }
 0x4e6   : > { %v2860_v26 = vsub.f32 %v1932_v7, %v2783_v30  ;;  %v3701_v56 = vpop.eup %3700 }
 0x4e7   : > { %v1942_v40 = vsub.f32 1.0, %v1907_v25  ;;  %v1911_v27 = vmul.f32 %v3701_v56, %v1688_v2  ;;  %v6455_v56 = vld [vmem:[#allocation38_spill] sm:$0xff] }
 0x4e8   : > { %2974 = vrot.lane.b32.xlu0 %v2860_v26, %s3835_s28 }
 0x4e9   : > { %v2785_v21 = vpop.permute.xlu0 %2784  ;;  %v3703_v14 = vpop.eup %3702  ;;  %v1944_v23 = vsub.f32 1.0, %v1911_v27 }
 0x4ea   : > { %v2861_v55 = vsub.f32 %v1933_v17, %v2785_v21  ;;  %v1909_v17 = vmul.f32 %v3699_v60, %v1687_v47  ;;  %v6453_v60 = vld [vmem:[#allocation31_spill] sm:$0xff] }
 0x4ec   : > { %2976 = vrot.lane.b32.xlu1 %v2861_v55, %s3835_s28  ;;  %v1943_v55 = vsub.f32 1.0, %v1909_v17 }
 0x4ed   : > { %v2787_v42 = vpop.permute.xlu0 %2786 }
 0x4ee   : > { %v2862_v10 = vsub.f32 %v1934_v41, %v2787_v42  ;;  %v1913_v42 = vmul.f32 %v3703_v14, %v1689_v11 }
 0x4f0   : > { %2978 = vrot.lane.b32.xlu0 %v2862_v10, %s3835_s28 }
 0x4f1   : > { %v2789_v58 = vpop.permute.xlu0 %2788 }
 0x4f2   : > { %v2863_v22 = vsub.f32 %v1935_v54, %v2789_v58  ;;  %v1945_v54 = vsub.f32 1.0, %v1913_v42  ;;  %v2875_v58 = vmax.f32 %v6440_v45, 0.0 }
 0x4f4   : > { %2980 = vrot.lane.b32.xlu1 %v2863_v22, %s3835_s28 }
 0x4f5   : > { %v2791_v16 = vpop.permute.xlu0 %2790 }
 0x4f6   : > { %v2864_v36 = vsub.f32 %v1936_v3, %v2791_v16  ;;  %v6441_v3 = vld [vmem:[#allocation13_spill] sm:$0xff]  ;;  %v6443_v16 = vld [vmem:[#allocation18_spill] sm:$0xff] }
 0x4f7   : > { %v6442_v39 = vsub.f32 1.0, %v6441_v3 }
 0x4f8   : > { %2982 = vrot.lane.b32.xlu0 %v2864_v36, %s3835_s28  ;;  %v6444_v36 = vsub.f32 1.0, %v6443_v16  ;;  %v6463_v16 = vld [vmem:[#allocation50_spill] sm:$0xff] }
 0x4f9   : > { %v2793_v59 = vpop.permute.xlu0 %2792  ;;  %v2874_v44 = vmax.f32 %v6442_v39, 0.0 }
 0x4fa   : > { %v2865_v53 = vsub.f32 %v1937_v51, %v2793_v59  ;;  %v2876_v6 = vmax.f32 %v6444_v36, 0.0  ;;  %v2877_v59 = vmax.f32 %v6446_v28, 0.0  ;;  %v6464_v36 = vsub.f32 1.0, %v6463_v16 }
 0x4fc   : > { %2984 = vrot.lane.b32.xlu1 %v2865_v53, %s3835_s28 }
 0x4fd   : > { %v2795_v63 = vpop.permute.xlu0 %2794 }
 0x4fe   : > { %v2866_v37 = vsub.f32 %v1938_v4, %v2795_v63  ;;  %v6447_v63 = vld [vmem:[#allocation24_spill] sm:$0xff] }
 0x500   : > { %2986 = vrot.lane.b32.xlu0 %v2866_v37, %s3835_s28  ;;  %v6448_v37 = vsub.f32 1.0, %v6447_v63  ;;  %v6467_v63 = vld [vmem:[#allocation56_spill] sm:$0xff] }
 0x501   : > { %v2797_v15 = vpop.permute.xlu1 %2796 }
 0x502   : > { %v2867_v38 = vsub.f32 %v1939_v24, %v2797_v15  ;;  %v2878_v31 = vmax.f32 %v6448_v37, 0.0  ;;  %v6449_v15 = vld [vmem:[#allocation23_spill] sm:$0xff]  ;;  %v6468_v37 = vsub.f32 1.0, %v6467_v63 }
 0x504   : > { %2988 = vrot.lane.b32.xlu1 %v2867_v38, %s3835_s28  ;;  %v6450_v38 = vsub.f32 1.0, %v6449_v15 }
 0x505   : > { %v2799_v46 = vpop.permute.xlu0 %2798 }
 0x506   : > { %v2868_v7 = vsub.f32 %v1940_v0, %v2799_v46  ;;  %v2879_v18 = vmax.f32 %v6450_v38, 0.0  ;;  %v6452_v46 = vsub.f32 1.0, %v6451_v61  ;;  %v6469_v38 = vld [vmem:[#allocation55_spill] sm:$0xff] }
 0x508   : > { %2990 = vrot.lane.b32.xlu0 %v2868_v7, %s3835_s28  ;;  %v2880_v7 = vmax.f32 %v6452_v46, 0.0 }
 0x509   : > { %v2801_v30 = vpop.permute.xlu1 %2800 }
 0x50a   : > { %v2869_v26 = vsub.f32 %v1941_v33, %v2801_v30  ;;  %v6454_v30 = vsub.f32 1.0, %v6453_v60 }
 0x50c   : > { %2992 = vrot.lane.b32.xlu1 %v2869_v26, %s3835_s28  ;;  %v2881_v26 = vmax.f32 %v6454_v30, 0.0 }
 0x50d   : > { %v2803_v34 = vpop.permute.xlu0 %2802 }
 0x50e   : > { %v2870_v21 = vsub.f32 %v1942_v40, %v2803_v34  ;;  %v6456_v34 = vsub.f32 1.0, %v6455_v56 }
 0x510   : > { %2994 = vrot.lane.b32.xlu0 %v2870_v21, %s3835_s28  ;;  %v2882_v21 = vmax.f32 %v6456_v34, 0.0 }
 0x511   : > { %v2805_v41 = vpop.permute.xlu1 %2804 }
 0x512   : > { %v2871_v32 = vsub.f32 %v1943_v55, %v2805_v41  ;;  %v6457_v41 = vld [vmem:[#allocation37_spill] sm:$0xff] }
 0x514   : > { %2996 = vrot.lane.b32.xlu1 %v2871_v32, %s3835_s28  ;;  %v6458_v32 = vsub.f32 1.0, %v6457_v41 }
 0x515   : > { %v2807_v10 = vpop.permute.xlu0 %2806 }
 0x516   : > { %v2872_v1 = vsub.f32 %v1944_v23, %v2807_v10  ;;  %v2883_v11 = vmax.f32 %v6458_v32, 0.0 }
 0x518   : > { %2998 = vrot.lane.b32.xlu0 %v2872_v1, %s3835_s28  ;;  %v6459_v1 = vld [vmem:[#allocation44_spill] sm:$0xff] }
 0x519   : > { %v2809_v35 = vpop.permute.xlu1 %2808  ;;  %v2939_v22 = vpop.permute.xlu0 %2938 }
 0x51a   : > { %v2873_v8 = vsub.f32 %v1945_v54, %v2809_v35  ;;  %v3034_v13 = vmul.f32 %v2939_v22, %v2874_v44  ;;  %v6460_v54 = vsub.f32 1.0, %v6459_v1  ;;  %v6461_v22 = vld [vmem:[#allocation43_spill] sm:$0xff] }
 0x51c   : > { %3000 = vrot.lane.b32.xlu1 %v2873_v8, %s3835_s28  ;;  %v3066_v12 = vsel %vm1584_vm4, %v3034_v13, 0.0  ;;  %v2884_v35 = vmax.f32 %v6460_v54, 0.0 }
 0x51d   : > { %v2943_v29 = vpop.permute.xlu0 %2942 }
 0x51e   : > { %v2941_v48 = vpop.permute.xlu1 %2940  ;;  %v3036_v4 = vmul.f32 %v2943_v29, %v2876_v6  ;;  %v2886_v6 = vmax.f32 %v6464_v36, 0.0 }
 0x51f   : > { %v3035_v20 = vmul.f32 %v2941_v48, %v2875_v58  ;;  %v6462_v48 = vsub.f32 1.0, %v6461_v22 }
 0x520   : > { %v3069_v50 = vsel %vm1584_vm4, %v3036_v4, 0.0 }
 0x521   : > { %v3067_v51 = vsel %vm1584_vm4, %v3035_v20, 0.0  ;;  %v2947_v24 = vpop.permute.xlu0 %2946  ;;  %v2885_v3 = vmax.f32 %v6462_v48, 0.0 }
 0x522   : > { %v2945_v53 = vpop.permute.xlu1 %2944  ;;  %v3068_v5 = vadd.f32 %v3067_v51, %v3066_v12  ;;  %v3038_v9 = vmul.f32 %v2947_v24, %v2878_v31  ;;  %v2888_v31 = vmax.f32 %v6468_v37, 0.0 }
 0x523   : > { %v3037_v57 = vmul.f32 %v2945_v53, %v2877_v59  ;;  %v6465_v59 = vld [vmem:[#allocation49_spill] sm:$0xff] }
 0x524   : > { %v3070_v62 = vadd.f32 %v3069_v50, %v3068_v5  ;;  %v3073_v40 = vsel %vm1584_vm4, %v3038_v9, 0.0  ;;  %v6466_v53 = vsub.f32 1.0, %v6465_v59 }
 0x525   : > { %v3071_v49 = vsel %vm1584_vm4, %v3037_v57, 0.0 }
 0x526   : > { %v2949_v0 = vpop.permute.xlu1 %2948  ;;  %v3072_v43 = vadd.f32 %v3071_v49, %v3070_v62  ;;  %v2887_v12 = vmax.f32 %v6466_v53, 0.0 }
 0x527   : > { %v3039_v25 = vmul.f32 %v2949_v0, %v2879_v18  ;;  %v6470_v18 = vsub.f32 1.0, %v6469_v38 }
 0x528   : > { %v3074_v2 = vadd.f32 %v3073_v40, %v3072_v43  ;;  %v6471_v43 = vld [vmem:[#allocation15_spill] sm:$0xff]  ;;  %v6473_v40 = vld [vmem:[#allocation14_spill] sm:$0xff] }
 0x529   : > { %v3075_v27 = vsel %vm1584_vm4, %v3039_v25, 0.0  ;;  %v2889_v0 = vmax.f32 %v6470_v18, 0.0 }
 0x52a   : > { %v2951_v33 = vpop.permute.xlu0 %2950  ;;  %v3076_v8 = vadd.f32 %v3075_v27, %v3074_v2  ;;  %v6475_v27 = vld [vmem:[#allocation20_spill] sm:$0xff] }
 0x52b   : > { %v3040_v17 = vmul.f32 %v2951_v33, %v2880_v7  ;;  %v6472_v33 = vsub.f32 1.0, %v6471_v43 }
 0x52d   : > { %v3077_v42 = vsel %vm1584_vm4, %v3040_v17, 0.0  ;;  %v2890_v25 = vmax.f32 %v6472_v33, 0.0  ;;  %v6474_v17 = vsub.f32 1.0, %v6473_v40 }
 0x52e   : > { %v2953_v47 = vpop.permute.xlu1 %2952  ;;  %v3078_v39 = vadd.f32 %v3077_v42, %v3076_v8 }
 0x52f   : > { %v3041_v14 = vmul.f32 %v2953_v47, %v2881_v26  ;;  %v2891_v56 = vmax.f32 %v6474_v17, 0.0 }
 0x531   : > { %v3079_v45 = vsel %vm1584_vm4, %v3041_v14, 0.0  ;;  %v6476_v14 = vsub.f32 1.0, %v6475_v27 }
 0x532   : > { %v2955_v55 = vpop.permute.xlu0 %2954  ;;  %v3080_v29 = vadd.f32 %v3079_v45, %v3078_v39 }
 0x533   : > { %v3042_v10 = vmul.f32 %v2955_v55, %v2882_v21  ;;  %v2892_v41 = vmax.f32 %v6476_v14, 0.0 }
 0x535   : > { %v3081_v20 = vsel %vm1584_vm4, %v3042_v10, 0.0  ;;  %v6477_v10 = vld [vmem:[#allocation19_spill] sm:$0xff] }
 0x536   : > { %v2957_v23 = vpop.permute.xlu1 %2956  ;;  %v3082_v4 = vadd.f32 %v3081_v20, %v3080_v29  ;;  %v6478_v1 = vsub.f32 1.0, %v6477_v10 }
 0x537   : > { %v3043_v58 = vmul.f32 %v2957_v23, %v2883_v11 }
 0x538   : > { %v2893_v54 = vmax.f32 %v6478_v1, 0.0 }
 0x539   : > { %v3083_v19 = vsel %vm1584_vm4, %v3043_v58, 0.0  ;;  %v6479_v58 = vld [vmem:[#allocation28_spill] sm:$0xff] }
 0x53a   : > { %v2959_v52 = vpop.permute.xlu0 %2958  ;;  %v3084_v24 = vadd.f32 %v3083_v19, %v3082_v4  ;;  %v6480_v22 = vsub.f32 1.0, %v6479_v58 }
 0x53b   : > { %v3044_v13 = vmul.f32 %v2959_v52, %v2884_v35 }
 0x53c   : > { %v2894_v48 = vmax.f32 %v6480_v22, 0.0 }
 0x53d   : > { %v3085_v57 = vsel %vm1584_vm4, %v3044_v13, 0.0  ;;  %v6481_v13 = vld [vmem:[#allocation27_spill] sm:$0xff] }
 0x53e   : > { %v2961_v44 = vpop.permute.xlu1 %2960  ;;  %v3086_v9 = vadd.f32 %v3085_v57, %v3084_v24  ;;  %v6482_v16 = vsub.f32 1.0, %v6481_v13 }
 0x53f   : > { %v3045_v28 = vmul.f32 %v2961_v44, %v2885_v3 }
 0x540   : > { %v2895_v36 = vmax.f32 %v6482_v16, 0.0 }
 0x541   : > { %v3087_v49 = vsel %vm1584_vm4, %v3045_v28, 0.0  ;;  %v6483_v28 = vld [vmem:[#allocation36_spill] sm:$0xff] }
 0x542   : > { %v2963_v51 = vpop.permute.xlu0 %2962  ;;  %v3088_v60 = vadd.f32 %v3087_v49, %v3086_v9  ;;  %v6484_v59 = vsub.f32 1.0, %v6483_v28 }
 0x543   : > { %v3046_v50 = vmul.f32 %v2963_v51, %v2886_v6 }
 0x544   : > { %v2896_v53 = vmax.f32 %v6484_v59, 0.0 }
 0x545   : > { %v3089_v46 = vsel %vm1584_vm4, %v3046_v50, 0.0  ;;  %v6485_v50 = vld [vmem:[#allocation35_spill] sm:$0xff] }
 0x546   : > { %v2965_v5 = vpop.permute.xlu1 %2964  ;;  %v3090_v34 = vadd.f32 %v3089_v46, %v3088_v60  ;;  %v6486_v63 = vsub.f32 1.0, %v6485_v50 }
 0x547   : > { %v3047_v15 = vmul.f32 %v2965_v5, %v2887_v12 }
 0x548   : > { %v2897_v37 = vmax.f32 %v6486_v63, 0.0 }
 0x549   : > { %v3091_v26 = vsel %vm1584_vm4, %v3047_v15, 0.0  ;;  %v6487_v15 = vld [vmem:[#allocation42_spill] sm:$0xff] }
 0x54a   : > { %v2967_v62 = vpop.permute.xlu0 %2966  ;;  %v3092_v32 = vadd.f32 %v3091_v26, %v3090_v34  ;;  %v6488_v38 = vsub.f32 1.0, %v6487_v15 }
 0x54b   : > { %v3048_v7 = vmul.f32 %v2967_v62, %v2888_v31 }
 0x54c   : > { %v2898_v18 = vmax.f32 %v6488_v38, 0.0 }
 0x54d   : > { %v3093_v2 = vsel %vm1584_vm4, %v3048_v7, 0.0  ;;  %v6489_v7 = vld [vmem:[#allocation41_spill] sm:$0xff] }
 0x54e   : > { %v2969_v61 = vpop.permute.xlu1 %2968  ;;  %v3094_v35 = vadd.f32 %v3093_v2, %v3092_v32  ;;  %v6490_v43 = vsub.f32 1.0, %v6489_v7 }
 0x54f   : > { %v3049_v47 = vmul.f32 %v2969_v61, %v2889_v0 }
 0x550   : > { %v2899_v33 = vmax.f32 %v6490_v43, 0.0 }
 0x551   : > { %v3095_v23 = vsel %vm1584_vm4, %v3049_v47, 0.0  ;;  %v6491_v47 = vld [vmem:[#allocation48_spill] sm:$0xff] }
 0x552   : > { %v2971_v30 = vpop.permute.xlu0 %2970  ;;  %v3096_v3 = vadd.f32 %v3095_v23, %v3094_v35  ;;  %v6492_v40 = vsub.f32 1.0, %v6491_v47 }
 0x553   : > { %v3050_v55 = vmul.f32 %v2971_v30, %v2890_v25 }
 0x554   : > { %v2900_v17 = vmax.f32 %v6492_v40, 0.0 }
 0x555   : > { %v3097_v52 = vsel %vm1584_vm4, %v3050_v55, 0.0  ;;  %v6493_v55 = vld [vmem:[#allocation47_spill] sm:$0xff] }
 0x556   : > { %v2973_v21 = vpop.permute.xlu1 %2972  ;;  %v3098_v6 = vadd.f32 %v3097_v52, %v3096_v3  ;;  %v6494_v27 = vsub.f32 1.0, %v6493_v55 }
 0x557   : > { %v3051_v42 = vmul.f32 %v2973_v21, %v2891_v56 }
 0x558   : > { %v2901_v14 = vmax.f32 %v6494_v27, 0.0 }
 0x559   : > { %v3099_v44 = vsel %vm1584_vm4, %v3051_v42, 0.0  ;;  %v6495_v42 = vld [vmem:[#allocation54_spill] sm:$0xff] }
 0x55a   : > { %v2975_v11 = vpop.permute.xlu0 %2974  ;;  %v3100_v12 = vadd.f32 %v3099_v44, %v3098_v6  ;;  %v6496_v10 = vsub.f32 1.0, %v6495_v42 }
 0x55b   : > { %v3052_v45 = vmul.f32 %v2975_v11, %v2892_v41 }
 0x55c   : > { %v2902_v1 = vmax.f32 %v6496_v10, 0.0 }
 0x55d   : > { %v3101_v51 = vsel %vm1584_vm4, %v3052_v45, 0.0  ;;  %v6497_v45 = vld [vmem:[#allocation53_spill] sm:$0xff] }
 0x55e   : > { %v2977_v8 = vpop.permute.xlu1 %2976  ;;  %v3102_v31 = vadd.f32 %v3101_v51, %v3100_v12  ;;  %v6498_v58 = vsub.f32 1.0, %v6497_v45 }
 0x55f   : > { %v3053_v20 = vmul.f32 %v2977_v8, %v2893_v54 }
 0x560   : > { %v2903_v22 = vmax.f32 %v6498_v58, 0.0 }
 0x561   : > { %v3103_v5 = vsel %vm1584_vm4, %v3053_v20, 0.0 }
 0x562   : > { %v2979_v39 = vpop.permute.xlu0 %2978  ;;  %v3104_v0 = vadd.f32 %v3103_v5, %v3102_v31 }
 0x563   : > { %v3054_v19 = vmul.f32 %v2979_v39, %v2894_v48 }
 0x565   : > { %v3105_v62 = vsel %vm1584_vm4, %v3054_v19, 0.0 }
 0x566   : > { %v2981_v29 = vpop.permute.xlu1 %2980  ;;  %v3106_v25 = vadd.f32 %v3105_v62, %v3104_v0 }
 0x567   : > { %v3055_v57 = vmul.f32 %v2981_v29, %v2895_v36  ;;  %v6499_v36 = vld [vmem:[#allocation58_spill] sm:$0xff] }
 0x568   : > { %v6500_v6 = vsub.f32 1.0, %v6499_v36 }
 0x569   : > { %v3107_v61 = vsel %vm1584_vm4, %v3055_v57, 0.0 }
 0x56a   : > { %v2983_v4 = vpop.permute.xlu0 %2982  ;;  %v3108_v56 = vadd.f32 %v3107_v61, %v3106_v25  ;;  %v2904_v29 = vmax.f32 %v6500_v6, 0.0 }
 0x56b   : > { %v3056_v49 = vmul.f32 %v2983_v4, %v2896_v53  ;;  %v6501_v4 = vld [vmem:[#allocation57_spill] sm:$0xff] }
 0x56c   : > { %v6502_v5 = vsub.f32 1.0, %v6501_v4 }
 0x56d   : > { %v3109_v30 = vsel %vm1584_vm4, %v3056_v49, 0.0 }
 0x56e   : > { %v2985_v24 = vpop.permute.xlu1 %2984  ;;  %v3110_v41 = vadd.f32 %v3109_v30, %v3108_v56  ;;  %v2905_v57 = vmax.f32 %v6502_v5, 0.0 }
 0x56f   : > { %v3057_v46 = vmul.f32 %v2985_v24, %v2897_v37 }
 0x571   : > { %v3111_v21 = vsel %vm1584_vm4, %v3057_v46, 0.0 }
 0x572   : > { %v2987_v9 = vpop.permute.xlu0 %2986  ;;  %v3112_v54 = vadd.f32 %v3111_v21, %v3110_v41 }
 0x573   : > { %v3058_v26 = vmul.f32 %v2987_v9, %v2898_v18 }
 0x575   : > { %v3113_v11 = vsel %vm1584_vm4, %v3058_v26, 0.0 }
 0x576   : > { %v2989_v60 = vpop.permute.xlu1 %2988  ;;  %v3114_v48 = vadd.f32 %v3113_v11, %v3112_v54 }
 0x577   : > { %v3059_v2 = vmul.f32 %v2989_v60, %v2899_v33 }
 0x579   : > { %v3115_v8 = vsel %vm1584_vm4, %v3059_v2, 0.0 }
 0x57a   : > { %v2991_v34 = vpop.permute.xlu0 %2990  ;;  %v3116_v44 = vadd.f32 %v3115_v8, %v3114_v48 }
 0x57b   : > { %v3060_v23 = vmul.f32 %v2991_v34, %v2900_v17 }
 0x57d   : > { %v3117_v3 = vsel %vm1584_vm4, %v3060_v23, 0.0 }
 0x57e   : > { %v2993_v32 = vpop.permute.xlu1 %2992  ;;  %v3118_v51 = vadd.f32 %v3117_v3, %v3116_v44 }
 0x57f   : > { %v3061_v52 = vmul.f32 %v2993_v32, %v2901_v14 }
 0x581   : > { %v3119_v13 = vsel %vm1584_vm4, %v3061_v52, 0.0 }
 0x582   : > { %v2995_v35 = vpop.permute.xlu0 %2994  ;;  %v3120_v28 = vadd.f32 %v3119_v13, %v3118_v51 }
 0x583   : > { %v3062_v39 = vmul.f32 %v2995_v35, %v2902_v1 }
 0x585   : > { %v3121_v19 = vsel %vm1584_vm4, %v3062_v39, 0.0 }
 0x586   : > { %v2997_v20 = vpop.permute.xlu1 %2996  ;;  %v3122_v50 = vadd.f32 %v3121_v19, %v3120_v28 }
 0x587   : > { %v3063_v16 = vmul.f32 %v2997_v20, %v2903_v22 }
 0x589   : > { %v3123_v53 = vsel %vm1584_vm4, %v3063_v16, 0.0 }
 0x58a   : > { %v2999_v59 = vpop.permute.xlu0 %2998  ;;  %v3124_v37 = vadd.f32 %v3123_v53, %v3122_v50 }
 0x58b   : > { %v3064_v12 = vmul.f32 %v2999_v59, %v2904_v29 }
 0x58d   : > { %v3125_v63 = vsel %vm1584_vm4, %v3064_v12, 0.0 }
 0x58e   : > { %v3001_v31 = vpop.permute.xlu1 %3000  ;;  %v3126_v62 = vadd.f32 %v3125_v63, %v3124_v37 }
 0x58f   : > { %v3065_v24 = vmul.f32 %v3001_v31, %v2905_v57 }
 0x591   : > { %v3127_v49 = vsel %vm1584_vm4, %v3065_v24, 0.0 }
 0x592   : > { %v3128_v15 = vadd.f32 %v3127_v49, %v3126_v62 }
 0x594   : > { %3129 = vadd.xlane.f32.xlu0 %v3128_v15 }
 0x621   : > { %v3130_v38 = vpop.xlane.xlu0 %3129 }
 0x622   : > { %v3131_v18 = vrot.slane %v3130_v38, 4 }
 0x624   : > { %v3132_v0 = vadd.f32 %v3131_v18, %v3130_v38 }
 0x626   : > { %v3133_v9 = vrot.slane %v3132_v0, 2 }
 0x628   : > { %v3134_v61 = vadd.f32 %v3133_v9, %v3132_v0 }
 0x62a   : > { %v3135_v46 = vrot.slane %v3134_v61, 1 }
 0x62c   : > { %v3136_v7 = vadd.f32 %v3135_v46, %v3134_v61 }
 0x62e   : > { %3456 = vpush %v3136_v7 }
 0x65f   : > { %s3457_s11 = spop %3456 }
 0x660   : > { %v3138_v43 = vstv %s3457_s11 }
 0x661   : > { %3139 = vst [vmem:[%s3970_s8] sm:$0x1] %v3138_v43 }
 0x662 PF: > { %s3361_s14 = sshll.u32 %s3818_s22, 4  ;;  %s3153_s13 = sshll.u32 %s3970_s8, 4  ;;  %s3154_s13 = int_to_ptr.vmem [resolvable:$true] %s3153_s13 }
 0x663   : > { %s6048_s12 = scalar_lea.hbm %s6103_s5, %s3361_s14  ;;  %s6503_s16 = sand.u32 1, %s3806_s19  }
 0x664   : > { %s3141_s17 = scalar_lea.sflag [#allocation4], %s6503_s16  ;;  %s3736_s27 = scalar_lea.vmem %s3154_s13, 16 }
 0x665   : > { %p3737_p4 = scmp.ne.s32.totalorder %s3154_s13, %s3736_s27  ;;  %s3837_s7 = smov [#allocation3]  }
 0x666   : > { %s3740_s2 = sshll.u32 %s3837_s7, 4  ;;  %s3741_s2 = int_to_ptr.vmem [resolvable:$false] %s3740_s2 }
 0x667   : > { %p3738_p5 = pnand %p3737_p4, %p3917_p3  ;;  %s3742_s20 = scalar_lea.vmem %s3741_s2, 32 }
 0x668   : > { %p3743_p7 = scmp.lt.s32.totalorder %s3154_s13, %s3741_s2  ;;  %p3744_p8 = scmp.lt.s32.totalorder %s3742_s20, %s3736_s27 }
 0x669   : > { %p3739_p6 = pneg %p3738_p5 }
 0x66a   : > { %p3745_p10 = por %p3744_p8, %p3743_p7 }
 0x66c   : > { %p3746_p11 = pnand %p3745_p10, %p3739_p6 }
 0x66e   : > { %3749 = shalt.err (!%p3746_p11)
}
 0x66f   : > { %s3750_s22 = scalar_lea.hbm %s6048_s12, 16  ;;  %s3754_s24 = scalar_lea.hbm %s6103_s5, 32 }
 0x670   : > { %p3751_p12 = scmp.ne.s32.totalorder %s6048_s12, %s3750_s22  ;;  %p3755_p1 = scmp.lt.u32.totalorder %s6048_s12, %s6103_s5 }
 0x671   : > { %p3756_p2 = scmp.lt.u32.totalorder %s3754_s24, %s3750_s22  ;;  %p3758_p5 = scmp.lt.u32.totalorder %s3750_s22, %s6048_s12 }
 0x672   : > { %p3752_p13 = pnand %p3751_p12, %p3917_p3 }
 0x673   : > { %p3757_p4 = por %p3756_p2, %p3755_p1 }
 0x674   : > { %p3753_p0 = pneg %p3752_p13 }
 0x675   : > { %p3759_p6 = por %p3758_p5, %p3757_p4 }
 0x677   : > { %p3760_p7 = pnand %p3759_p6, %p3753_p0 }
 0x679   : > { %3763 = shalt.err (!%p3760_p7)
}
 0x67a   : > { %3458 = dma.vmem_to_hbm [thread:$0]  (%p3917_p3), %s3154_s13, 16, %s6048_s12, %s3141_s17  }
 0x67b PF: > { %p3464_p8 = scmp.ge.s32.totalorder %s3830_s25, 2  ;;  %s3165_s28 = sand.u32 1, %s3802_s18  }
 0x67c   : > { %s3166_s21 = scalar_lea.sflag [#allocation4], %s3165_s28 }
 0x67d   : > { %p3461_p10 = pnand %p3464_p8, %p3927_p9 }
 0x67f   : > { %3797 = dma.done.wait (!%p3461_p10), %s3166_s21, 16  }
 0x680   : > { %3799 = vsyncadd (!%p3461_p10), %s3166_s21, 4294967280  ;;  %s18_s25 = sadd.s32 1, %s3830_s25   ;;  %s6504_s10 = sld [smem:[#allocation6_spill]] }
 0x681   : > { %p15_p11 = scmp.ge.s32.totalorder %s18_s25, 6   ;;  %s6505_s20 = sld [smem:[#allocation11_spill]] }
 0x682   : > { %s6506_s21 = sld [smem:[#allocation7_spill]]  ;;  %s6507_s22 = sld [smem:[#allocation8_spill]] }
 0x683   : > { %s6508_s23 = sld [smem:[#allocation9_spill]]  ;;  %s6509_s24 = sld [smem:[#allocation10_spill]] }
 0x684   : > { %s6510_s18 = smov %s3806_s19  ;;  %17 = sbr.rel (!%p15_p11) target bundleno = 7 (0x7), region = 95 }
 0x686   : > { %s6511_s19 = smov %s6504_s10 }
 0x68b   :  { %3170 = vsyncpa [#allocation4], 1 }
 0x68c   :  { %3172 = vsyncpa [#allocation4 + $0x1], 1 }

</bundles_post_ra>
